<compile_context>
chip_gen: v5e
topology: v5e:2x2
jax: 0.10.0
libtpu: 0.0.40
codegen_flags: <defaults>
</compile_context>

<pallas_src>
import math
import numpy as np
import jax
import jax.numpy as jnp
from jax import lax
from jax.experimental import pallas as pl
from jax.experimental.pallas import tpu as pltpu

# ----------------------------- config ---------------------------------------
SAMPLE_RATE = 800
WINDOW_SIZE = 64          # n_fft == win_length
HOP_SIZE    = 32
MEL_BINS    = 16
FMIN, FMAX  = 0.0, 400.0
NUM_CLASSES = 10
BATCH       = 2
AUDIO_LEN   = 2 * SAMPLE_RATE                    # (batch, sample_rate*2)

NFREQ      = WINDOW_SIZE // 2 + 1                # 33
NFRAMES    = AUDIO_LEN // HOP_SIZE + 1           # 51 == ast_tdim
SPEC_LANES = 128                                 # packed cos|sin output lanes

# tiny AST ("model_size" shrunk for the synthetic kernel)
EMBED_DIM = 32
NUM_HEADS = 4
HEAD_DIM  = EMBED_DIM // NUM_HEADS
DEPTH     = 2
MLP_HID   = 4 * EMBED_DIM
PATCH     = 16
FSTRIDE   = 10
TSTRIDE   = 10
F_DIM     = (MEL_BINS - PATCH) // FSTRIDE + 1    # 1
T_DIM     = (NFRAMES - PATCH) // TSTRIDE + 1     # 4
NPATCH    = F_DIM * T_DIM                        # 4
NTOK      = NPATCH + 2                           # cls + dist + patches = 6

AMIN   = 1e-10
REF    = 1.0
BN_EPS = 1e-5
LN_EPS_VIT  = 1e-6
LN_EPS_HEAD = 1e-5
ATTN_SCALE  = HEAD_DIM ** -0.5
LOG_REF     = 10.0 * math.log10(max(AMIN, REF))

_BLOCK_PARAMS = ["ln1_w", "ln1_b", "qkv_w", "qkv_b", "proj_w", "proj_b",
                 "ln2_w", "ln2_b", "fc1_w", "fc1_b", "fc2_w", "fc2_b"]


def _weight_names():
    names = ["basis", "mel_fb_ext", "bn_scale", "bn_shift",
             "patch_w", "patch_b", "cls_token", "dist_token", "pos_embed",
             "head_mask"]
    for d in range(DEPTH):
        names += [f"blk{d}_{p}" for p in _BLOCK_PARAMS]
    names += ["vit_norm_w", "vit_norm_b", "head_ln_w", "head_ln_b",
              "head_w", "head_b"]
    return names


WEIGHT_NAMES = _weight_names()


# ----------------------------- constants / filterbanks -----------------------
def make_mel_filterbank(sr, n_fft, n_mels, fmin, fmax):
    n_freq = n_fft // 2 + 1
    hz_to_mel = lambda f: 2595.0 * np.log10(1.0 + np.asarray(f, np.float64) / 700.0)
    mel_to_hz = lambda m: 700.0 * (10.0 ** (np.asarray(m, np.float64) / 2595.0) - 1.0)
    mels = np.linspace(hz_to_mel(fmin), hz_to_mel(fmax), n_mels + 2)
    hz = mel_to_hz(mels)
    fftfreqs = np.linspace(0.0, sr / 2.0, n_freq)
    fdiff = np.diff(hz)
    ramps = hz[:, None] - fftfreqs[None, :]
    fb = np.zeros((n_mels, n_freq), np.float64)
    for i in range(n_mels):
        lower = -ramps[i] / fdiff[i]
        upper = ramps[i + 2] / fdiff[i + 1]
        fb[i] = np.maximum(0.0, np.minimum(lower, upper))
    enorm = 2.0 / (hz[2:n_mels + 2] - hz[:n_mels])
    fb *= enorm[:, None]
    return fb.T.astype(np.float32)               # (n_freq, n_mels)


def make_dft_bases(n_fft):
    # periodic hann window
    n = np.arange(n_fft)
    win = 0.5 - 0.5 * np.cos(2.0 * np.pi * n / n_fft)
    k = np.arange(n_fft // 2 + 1)
    ang = 2.0 * np.pi * np.outer(n, k) / n_fft                   # (W, F)
    cosb = (np.cos(ang) * win[:, None]).astype(np.float32)
    sinb = (-np.sin(ang) * win[:, None]).astype(np.float32)
    return cosb, sinb


def make_head_mask():
    # head_mask[h*NTOK + i, d] = 1 if d belongs to head h else 0
    m = np.zeros((NUM_HEADS * NTOK, EMBED_DIM), np.float32)
    for h in range(NUM_HEADS):
        m[h * NTOK:(h + 1) * NTOK, h * HEAD_DIM:(h + 1) * HEAD_DIM] = 1.0
    return m


# ----------------------------- fused kernel ----------------------------------
def _layernorm(x, w, b, eps):
    mu = jnp.mean(x, axis=-1, keepdims=True)
    var = jnp.mean((x - mu) ** 2, axis=-1, keepdims=True)
    return (x - mu) * lax.rsqrt(var + eps) * w + b


def ast_fused_kernel(frames_ref, *rest):
    out_ref = rest[-1]
    w = {name: rest[i] for i, name in enumerate(WEIGHT_NAMES)}

    # ---- STFT power spectrogram (packed cos|sin basis, one MXU matmul) ----
    fr = frames_ref[0]                                           # (T, W)
    y = jnp.dot(fr, w["basis"][...],
                preferred_element_type=jnp.float32)              # (T, 128)
    # mel filterbank rows are duplicated for the re/im halves, so re^2 + im^2
    # folds into the mel matmul with no lane slicing.
    mel = jnp.dot(y * y, w["mel_fb_ext"][...],
                  preferred_element_type=jnp.float32)            # (T, M)
    logmel = 10.0 * jnp.log10(jnp.maximum(mel, AMIN)) - LOG_REF
    # BatchNorm2d over mel channel, eval mode (init_bn: weight=1, bias=0;
    # running mean=0, var=1) folded into per-mel scale/shift.
    feat = logmel * w["bn_scale"][...] + w["bn_shift"][...]      # (T, M)

    # ---- patch embedding: 16x16 patches, stride (10,10) -> one matmul ----
    prows = []
    for p in range(NPATCH):
        t0 = p * TSTRIDE
        pieces = [feat[t0 + kt:t0 + kt + 1, :] for kt in range(PATCH)]
        prows.append(jnp.concatenate(pieces, axis=1))            # (1, 256)
    patches = jnp.concatenate(prows, axis=0)                     # (NPATCH, 256)
    emb = jnp.dot(patches, w["patch_w"][...],
                  preferred_element_type=jnp.float32) + w["patch_b"][...]

    # ---- tokens + positional embedding ----
    x = jnp.concatenate([w["cls_token"][...], w["dist_token"][...], emb],
                        axis=0) + w["pos_embed"][...]            # (NTOK, D)

    head_mask = w["head_mask"][...]                              # (H*NTOK, D)

    # ---- transformer blocks (all DEPTH blocks fused, unrolled) ----
    for d in range(DEPTH):
        g = lambda n, _d=d: w[f"blk{_d}_{n}"][...]
        h = _layernorm(x, g("ln1_w"), g("ln1_b"), LN_EPS_VIT)
        qkv = jnp.dot(h, g("qkv_w"),
                      preferred_element_type=jnp.float32) + g("qkv_b")
        q = qkv[:, 0 * EMBED_DIM:1 * EMBED_DIM]
        k = qkv[:, 1 * EMBED_DIM:2 * EMBED_DIM]
        v = qkv[:, 2 * EMBED_DIM:3 * EMBED_DIM]
        # Heads on the sublane axis: replicate q per head and lane-mask it, so
        # a single (H*N, D) x (N, D)^T matmul produces every head's scores.
        q_big = jnp.concatenate([q] * NUM_HEADS, axis=0) * head_mask
        scores = lax.dot_general(q_big, k, (((1,), (1,)), ((), ())),
                                 preferred_element_type=jnp.float32) * ATTN_SCALE
        scores = scores - jnp.max(scores, axis=-1, keepdims=True)
        e = jnp.exp(scores)
        att = e * pl.reciprocal(jnp.sum(e, axis=-1, keepdims=True), approx=True)
        ctx = jnp.dot(att, v,
                      preferred_element_type=jnp.float32) * head_mask  # (H*N, D)
        attn = ctx[0:NTOK]
        for hh in range(1, NUM_HEADS):
            attn = attn + ctx[hh * NTOK:(hh + 1) * NTOK]               # (N, D)
        attn = jnp.dot(attn, g("proj_w"),
                       preferred_element_type=jnp.float32) + g("proj_b")
        x = x + attn
        h2 = _layernorm(x, g("ln2_w"), g("ln2_b"), LN_EPS_VIT)
        h2 = jnp.dot(h2, g("fc1_w"),
                     preferred_element_type=jnp.float32) + g("fc1_b")
        # TODO(synk): timm ViT uses exact (erf) GELU; tanh approx keeps it on the EUP.
        h2 = jax.nn.gelu(h2, approximate=True)
        h2 = jnp.dot(h2, g("fc2_w"),
                     preferred_element_type=jnp.float32) + g("fc2_b")
        x = x + h2

    # ---- head: final norm on cls/dist, average, LayerNorm + Linear ----
    t0 = _layernorm(x[0:1, :], w["vit_norm_w"][...], w["vit_norm_b"][...], LN_EPS_VIT)
    t1 = _layernorm(x[1:2, :], w["vit_norm_w"][...], w["vit_norm_b"][...], LN_EPS_VIT)
    pooled = (t0 + t1) * 0.5
    pooled = _layernorm(pooled, w["head_ln_w"][...], w["head_ln_b"][...], LN_EPS_HEAD)
    logits = jnp.dot(pooled, w["head_w"][...],
                     preferred_element_type=jnp.float32) + w["head_b"][...]
    out_ref[0] = logits


# ----------------------------- wrapper ----------------------------------------
def _full_spec(shape):
    nd = len(shape)
    return pl.BlockSpec(shape, lambda b, _nd=nd: (0,) * _nd)


def forward(audio, params):
    B = audio.shape[0]
    # --- STFT framing (center=True, reflect pad) done once in the wrapper ---
    pad = WINDOW_SIZE // 2
    xp = jnp.pad(audio, ((0, 0), (pad, pad)), mode="reflect")
    idx = (np.arange(NFRAMES)[:, None] * HOP_SIZE
           + np.arange(WINDOW_SIZE)[None, :])
    frames = xp[:, idx]                                          # (B, T, W)

    in_specs = [pl.BlockSpec((1, NFRAMES, WINDOW_SIZE), lambda b: (b, 0, 0))]
    args = [frames]
    for name in WEIGHT_NAMES:
        in_specs.append(_full_spec(params[name].shape))
        args.append(params[name])

    out = pl.pallas_call(
        ast_fused_kernel,
        grid=(B,),
        in_specs=in_specs,
        out_specs=pl.BlockSpec((1, 1, NUM_CLASSES), lambda b: (b, 0, 0)),
        out_shape=jax.ShapeDtypeStruct((B, 1, NUM_CLASSES), jnp.float32),
        compiler_params=pltpu.CompilerParams(
            dimension_semantics=("parallel",)),   # one batch elem per TC on v7x
    )(*args)
    return {"clipwise_output": out[:, 0, :]}


# ----------------------------- parameter init ---------------------------------
def init_params(key):
    cosb, sinb = make_dft_bases(WINDOW_SIZE)                     # (W, F) each
    basis = np.zeros((WINDOW_SIZE, SPEC_LANES), np.float32)      # cos | sin, 128 lanes
    basis[:, :NFREQ] = cosb
    basis[:, 64:64 + NFREQ] = sinb

    melfb = make_mel_filterbank(SAMPLE_RATE, WINDOW_SIZE, MEL_BINS, FMIN, FMAX)
    mel_ext = np.zeros((SPEC_LANES, MEL_BINS), np.float32)
    mel_ext[:NFREQ, :] = melfb          # re^2 part
    mel_ext[64:64 + NFREQ, :] = melfb   # im^2 part

    keys = jax.random.split(key, 5 + 4 * DEPTH)
    kit = iter(keys)

    def nrm(shape, scale=0.02):
        return scale * jax.random.normal(next(kit), shape, jnp.float32)

    params = {
        "basis": jnp.asarray(basis),
        "mel_fb_ext": jnp.asarray(mel_ext),
        # BN2d eval: weight=1, bias=0, running_mean=0, running_var=1 folded.
        "bn_scale": jnp.full((1, MEL_BINS), 1.0 / math.sqrt(1.0 + BN_EPS),
                             jnp.float32),
        "bn_shift": jnp.zeros((1, MEL_BINS), jnp.float32),
        "patch_w": nrm((PATCH * PATCH, EMBED_DIM)),
        "patch_b": jnp.zeros((1, EMBED_DIM), jnp.float32),
        "cls_token": nrm((1, EMBED_DIM)),
        "dist_token": nrm((1, EMBED_DIM)),
        "pos_embed": nrm((NTOK, EMBED_DIM)),
        "head_mask": jnp.asarray(make_head_mask()),
        "vit_norm_w": jnp.ones((1, EMBED_DIM), jnp.float32),
        "vit_norm_b": jnp.zeros((1, EMBED_DIM), jnp.float32),
        "head_ln_w": jnp.ones((1, EMBED_DIM), jnp.float32),
        "head_ln_b": jnp.zeros((1, EMBED_DIM), jnp.float32),
        "head_w": nrm((EMBED_DIM, NUM_CLASSES)),
        "head_b": jnp.zeros((1, NUM_CLASSES), jnp.float32),
    }
    for d in range(DEPTH):
        params[f"blk{d}_ln1_w"] = jnp.ones((1, EMBED_DIM), jnp.float32)
        params[f"blk{d}_ln1_b"] = jnp.zeros((1, EMBED_DIM), jnp.float32)
        params[f"blk{d}_qkv_w"] = nrm((EMBED_DIM, 3 * EMBED_DIM))
        params[f"blk{d}_qkv_b"] = jnp.zeros((1, 3 * EMBED_DIM), jnp.float32)
        params[f"blk{d}_proj_w"] = nrm((EMBED_DIM, EMBED_DIM))
        params[f"blk{d}_proj_b"] = jnp.zeros((1, EMBED_DIM), jnp.float32)
        params[f"blk{d}_ln2_w"] = jnp.ones((1, EMBED_DIM), jnp.float32)
        params[f"blk{d}_ln2_b"] = jnp.zeros((1, EMBED_DIM), jnp.float32)
        params[f"blk{d}_fc1_w"] = nrm((EMBED_DIM, MLP_HID))
        params[f"blk{d}_fc1_b"] = jnp.zeros((1, MLP_HID), jnp.float32)
        params[f"blk{d}_fc2_w"] = nrm((MLP_HID, EMBED_DIM))
        params[f"blk{d}_fc2_b"] = jnp.zeros((1, EMBED_DIM), jnp.float32)
    return params


# ----------------------------- main --------------------------------------------
if __name__ == "__main__":
    key = jax.random.PRNGKey(0)
    k_audio, k_params = jax.random.split(key)
    audio = jax.random.normal(k_audio, (BATCH, AUDIO_LEN), jnp.float32)
    params = init_params(k_params)

    fwd = jax.jit(forward)
    out = fwd(audio, params)
    logits = jax.block_until_ready(out["clipwise_output"])
    assert logits.shape == (BATCH, NUM_CLASSES)
    assert bool(jnp.all(jnp.isfinite(logits)))
    print("KERNEL_OK")
</pallas_src>

<mosaic_0001>
module attributes {stable_mosaic.version = 11 : i64} {
  func.func @ast_fused_kernel(%arg0: i32, %arg1: memref<1x51x64xf32, #tpu.memory_space<vmem>>, %arg2: memref<64x128xf32, #tpu.memory_space<vmem>>, %arg3: memref<128x16xf32, #tpu.memory_space<vmem>>, %arg4: memref<1x16xf32, #tpu.memory_space<vmem>>, %arg5: memref<1x16xf32, #tpu.memory_space<vmem>>, %arg6: memref<256x32xf32, #tpu.memory_space<vmem>>, %arg7: memref<1x32xf32, #tpu.memory_space<vmem>>, %arg8: memref<1x32xf32, #tpu.memory_space<vmem>>, %arg9: memref<1x32xf32, #tpu.memory_space<vmem>>, %arg10: memref<6x32xf32, #tpu.memory_space<vmem>>, %arg11: memref<24x32xf32, #tpu.memory_space<vmem>>, %arg12: memref<1x32xf32, #tpu.memory_space<vmem>>, %arg13: memref<1x32xf32, #tpu.memory_space<vmem>>, %arg14: memref<32x96xf32, #tpu.memory_space<vmem>>, %arg15: memref<1x96xf32, #tpu.memory_space<vmem>>, %arg16: memref<32x32xf32, #tpu.memory_space<vmem>>, %arg17: memref<1x32xf32, #tpu.memory_space<vmem>>, %arg18: memref<1x32xf32, #tpu.memory_space<vmem>>, %arg19: memref<1x32xf32, #tpu.memory_space<vmem>>, %arg20: memref<32x128xf32, #tpu.memory_space<vmem>>, %arg21: memref<1x128xf32, #tpu.memory_space<vmem>>, %arg22: memref<128x32xf32, #tpu.memory_space<vmem>>, %arg23: memref<1x32xf32, #tpu.memory_space<vmem>>, %arg24: memref<1x32xf32, #tpu.memory_space<vmem>>, %arg25: memref<1x32xf32, #tpu.memory_space<vmem>>, %arg26: memref<32x96xf32, #tpu.memory_space<vmem>>, %arg27: memref<1x96xf32, #tpu.memory_space<vmem>>, %arg28: memref<32x32xf32, #tpu.memory_space<vmem>>, %arg29: memref<1x32xf32, #tpu.memory_space<vmem>>, %arg30: memref<1x32xf32, #tpu.memory_space<vmem>>, %arg31: memref<1x32xf32, #tpu.memory_space<vmem>>, %arg32: memref<32x128xf32, #tpu.memory_space<vmem>>, %arg33: memref<1x128xf32, #tpu.memory_space<vmem>>, %arg34: memref<128x32xf32, #tpu.memory_space<vmem>>, %arg35: memref<1x32xf32, #tpu.memory_space<vmem>>, %arg36: memref<1x32xf32, #tpu.memory_space<vmem>>, %arg37: memref<1x32xf32, #tpu.memory_space<vmem>>, %arg38: memref<1x32xf32, #tpu.memory_space<vmem>>, %arg39: memref<1x32xf32, #tpu.memory_space<vmem>>, %arg40: memref<32x10xf32, #tpu.memory_space<vmem>>, %arg41: memref<1x10xf32, #tpu.memory_space<vmem>>, %arg42: memref<1x1x10xf32, #tpu.memory_space<vmem>>) attributes {dimension_semantics = [#tpu.dimension_semantics<parallel>], iteration_bounds = array<i64: 2>, scalar_prefetch = 0 : i64, scratch_operands = 0 : i64, tpu.core_type = #tpu.core_type<tc>, window_params = [{transform_indices = @transform_0, window_bounds = array<i64: 1, 51, 64>}, {pipeline_mode = #tpu.pipeline_mode<synchronous>, transform_indices = @transform_1, window_bounds = array<i64: 64, 128>}, {pipeline_mode = #tpu.pipeline_mode<synchronous>, transform_indices = @transform_2, window_bounds = array<i64: 128, 16>}, {pipeline_mode = #tpu.pipeline_mode<synchronous>, transform_indices = @transform_3, window_bounds = array<i64: 1, 16>}, {pipeline_mode = #tpu.pipeline_mode<synchronous>, transform_indices = @transform_4, window_bounds = array<i64: 1, 16>}, {pipeline_mode = #tpu.pipeline_mode<synchronous>, transform_indices = @transform_5, window_bounds = array<i64: 256, 32>}, {pipeline_mode = #tpu.pipeline_mode<synchronous>, transform_indices = @transform_6, window_bounds = array<i64: 1, 32>}, {pipeline_mode = #tpu.pipeline_mode<synchronous>, transform_indices = @transform_7, window_bounds = array<i64: 1, 32>}, {pipeline_mode = #tpu.pipeline_mode<synchronous>, transform_indices = @transform_8, window_bounds = array<i64: 1, 32>}, {pipeline_mode = #tpu.pipeline_mode<synchronous>, transform_indices = @transform_9, window_bounds = array<i64: 6, 32>}, {pipeline_mode = #tpu.pipeline_mode<synchronous>, transform_indices = @transform_10, window_bounds = array<i64: 24, 32>}, {pipeline_mode = #tpu.pipeline_mode<synchronous>, transform_indices = @transform_11, window_bounds = array<i64: 1, 32>}, {pipeline_mode = #tpu.pipeline_mode<synchronous>, transform_indices = @transform_12, window_bounds = array<i64: 1, 32>}, {pipeline_mode = #tpu.pipeline_mode<synchronous>, transform_indices = @transform_13, window_bounds = array<i64: 32, 96>}, {pipeline_mode = #tpu.pipeline_mode<synchronous>, transform_indices = @transform_14, window_bounds = array<i64: 1, 96>}, {pipeline_mode = #tpu.pipeline_mode<synchronous>, transform_indices = @transform_15, window_bounds = array<i64: 32, 32>}, {pipeline_mode = #tpu.pipeline_mode<synchronous>, transform_indices = @transform_16, window_bounds = array<i64: 1, 32>}, {pipeline_mode = #tpu.pipeline_mode<synchronous>, transform_indices = @transform_17, window_bounds = array<i64: 1, 32>}, {pipeline_mode = #tpu.pipeline_mode<synchronous>, transform_indices = @transform_18, window_bounds = array<i64: 1, 32>}, {pipeline_mode = #tpu.pipeline_mode<synchronous>, transform_indices = @transform_19, window_bounds = array<i64: 32, 128>}, {pipeline_mode = #tpu.pipeline_mode<synchronous>, transform_indices = @transform_20, window_bounds = array<i64: 1, 128>}, {pipeline_mode = #tpu.pipeline_mode<synchronous>, transform_indices = @transform_21, window_bounds = array<i64: 128, 32>}, {pipeline_mode = #tpu.pipeline_mode<synchronous>, transform_indices = @transform_22, window_bounds = array<i64: 1, 32>}, {pipeline_mode = #tpu.pipeline_mode<synchronous>, transform_indices = @transform_23, window_bounds = array<i64: 1, 32>}, {pipeline_mode = #tpu.pipeline_mode<synchronous>, transform_indices = @transform_24, window_bounds = array<i64: 1, 32>}, {pipeline_mode = #tpu.pipeline_mode<synchronous>, transform_indices = @transform_25, window_bounds = array<i64: 32, 96>}, {pipeline_mode = #tpu.pipeline_mode<synchronous>, transform_indices = @transform_26, window_bounds = array<i64: 1, 96>}, {pipeline_mode = #tpu.pipeline_mode<synchronous>, transform_indices = @transform_27, window_bounds = array<i64: 32, 32>}, {pipeline_mode = #tpu.pipeline_mode<synchronous>, transform_indices = @transform_28, window_bounds = array<i64: 1, 32>}, {pipeline_mode = #tpu.pipeline_mode<synchronous>, transform_indices = @transform_29, window_bounds = array<i64: 1, 32>}, {pipeline_mode = #tpu.pipeline_mode<synchronous>, transform_indices = @transform_30, window_bounds = array<i64: 1, 32>}, {pipeline_mode = #tpu.pipeline_mode<synchronous>, transform_indices = @transform_31, window_bounds = array<i64: 32, 128>}, {pipeline_mode = #tpu.pipeline_mode<synchronous>, transform_indices = @transform_32, window_bounds = array<i64: 1, 128>}, {pipeline_mode = #tpu.pipeline_mode<synchronous>, transform_indices = @transform_33, window_bounds = array<i64: 128, 32>}, {pipeline_mode = #tpu.pipeline_mode<synchronous>, transform_indices = @transform_34, window_bounds = array<i64: 1, 32>}, {pipeline_mode = #tpu.pipeline_mode<synchronous>, transform_indices = @transform_35, window_bounds = array<i64: 1, 32>}, {pipeline_mode = #tpu.pipeline_mode<synchronous>, transform_indices = @transform_36, window_bounds = array<i64: 1, 32>}, {pipeline_mode = #tpu.pipeline_mode<synchronous>, transform_indices = @transform_37, window_bounds = array<i64: 1, 32>}, {pipeline_mode = #tpu.pipeline_mode<synchronous>, transform_indices = @transform_38, window_bounds = array<i64: 1, 32>}, {pipeline_mode = #tpu.pipeline_mode<synchronous>, transform_indices = @transform_39, window_bounds = array<i64: 32, 10>}, {pipeline_mode = #tpu.pipeline_mode<synchronous>, transform_indices = @transform_40, window_bounds = array<i64: 1, 10>}, {transform_indices = @transform_41, window_bounds = array<i64: 1, 1, 10>}]} {
    %c0 = arith.constant 0 : index
    %c0_0 = arith.constant 0 : index
    %c0_1 = arith.constant 0 : index
    %0 = vector.load %arg1[%c0, %c0_0, %c0_1] : memref<1x51x64xf32, #tpu.memory_space<vmem>>, vector<1x51x64xf32>
    %1 = vector.shape_cast %0 : vector<1x51x64xf32> to vector<51x64xf32>
    %c0_2 = arith.constant 0 : index
    %c0_3 = arith.constant 0 : index
    %2 = vector.load %arg2[%c0_2, %c0_3] : memref<64x128xf32, #tpu.memory_space<vmem>>, vector<64x128xf32>
    %cst = arith.constant dense<0.000000e+00> : vector<51x128xf32>
    %3 = tpu.matmul %1, %2, %cst {dimension_numbers = #tpu.dot_dimension_numbers<[1], [0], [0], [1], [0, 0, 1, 1], [], []>} : vector<51x64xf32>, vector<64x128xf32>, vector<51x128xf32> -> vector<51x128xf32>
    %4 = arith.mulf %3, %3 : vector<51x128xf32>
    %c0_4 = arith.constant 0 : index
    %c0_5 = arith.constant 0 : index
    %5 = vector.load %arg3[%c0_4, %c0_5] : memref<128x16xf32, #tpu.memory_space<vmem>>, vector<128x16xf32>
    %cst_6 = arith.constant dense<0.000000e+00> : vector<51x16xf32>
    %6 = tpu.matmul %4, %5, %cst_6 {dimension_numbers = #tpu.dot_dimension_numbers<[1], [0], [0], [1], [0, 0, 1, 1], [], []>} : vector<51x128xf32>, vector<128x16xf32>, vector<51x16xf32> -> vector<51x16xf32>
    %cst_7 = arith.constant 1.000000e-10 : f32
    %7 = vector.broadcast %cst_7 : f32 to vector<51x16xf32>
    %8 = arith.maximumf %6, %7 : vector<51x16xf32>
    %9 = math.log %8 : vector<51x16xf32>
    %cst_8 = arith.constant 0.434294492 : f32
    %10 = vector.broadcast %cst_8 : f32 to vector<51x16xf32>
    %11 = arith.mulf %9, %10 : vector<51x16xf32>
    %cst_9 = arith.constant 1.000000e+01 : f32
    %12 = vector.broadcast %cst_9 : f32 to vector<51x16xf32>
    %13 = arith.mulf %12, %11 : vector<51x16xf32>
    %cst_10 = arith.constant 0.000000e+00 : f32
    %14 = vector.broadcast %cst_10 : f32 to vector<51x16xf32>
    %15 = arith.subf %13, %14 : vector<51x16xf32>
    %c0_11 = arith.constant 0 : index
    %c0_12 = arith.constant 0 : index
    %16 = vector.load %arg4[%c0_11, %c0_12] : memref<1x16xf32, #tpu.memory_space<vmem>>, vector<1x16xf32>
    %17 = vector.broadcast %16 : vector<1x16xf32> to vector<51x16xf32>
    %18 = arith.mulf %15, %17 : vector<51x16xf32>
    %c0_13 = arith.constant 0 : index
    %c0_14 = arith.constant 0 : index
    %19 = vector.load %arg5[%c0_13, %c0_14] : memref<1x16xf32, #tpu.memory_space<vmem>>, vector<1x16xf32>
    %20 = vector.broadcast %19 : vector<1x16xf32> to vector<51x16xf32>
    %21 = arith.addf %18, %20 : vector<51x16xf32>
    %22 = vector.extract_strided_slice %21 {offsets = [0, 0], sizes = [1, 16], strides = [1, 1]} : vector<51x16xf32> to vector<1x16xf32>
    %23 = vector.extract_strided_slice %21 {offsets = [1, 0], sizes = [1, 16], strides = [1, 1]} : vector<51x16xf32> to vector<1x16xf32>
    %24 = vector.extract_strided_slice %21 {offsets = [2, 0], sizes = [1, 16], strides = [1, 1]} : vector<51x16xf32> to vector<1x16xf32>
    %25 = vector.extract_strided_slice %21 {offsets = [3, 0], sizes = [1, 16], strides = [1, 1]} : vector<51x16xf32> to vector<1x16xf32>
    %26 = vector.extract_strided_slice %21 {offsets = [4, 0], sizes = [1, 16], strides = [1, 1]} : vector<51x16xf32> to vector<1x16xf32>
    %27 = vector.extract_strided_slice %21 {offsets = [5, 0], sizes = [1, 16], strides = [1, 1]} : vector<51x16xf32> to vector<1x16xf32>
    %28 = vector.extract_strided_slice %21 {offsets = [6, 0], sizes = [1, 16], strides = [1, 1]} : vector<51x16xf32> to vector<1x16xf32>
    %29 = vector.extract_strided_slice %21 {offsets = [7, 0], sizes = [1, 16], strides = [1, 1]} : vector<51x16xf32> to vector<1x16xf32>
    %30 = vector.extract_strided_slice %21 {offsets = [8, 0], sizes = [1, 16], strides = [1, 1]} : vector<51x16xf32> to vector<1x16xf32>
    %31 = vector.extract_strided_slice %21 {offsets = [9, 0], sizes = [1, 16], strides = [1, 1]} : vector<51x16xf32> to vector<1x16xf32>
    %32 = vector.extract_strided_slice %21 {offsets = [10, 0], sizes = [1, 16], strides = [1, 1]} : vector<51x16xf32> to vector<1x16xf32>
    %33 = vector.extract_strided_slice %21 {offsets = [11, 0], sizes = [1, 16], strides = [1, 1]} : vector<51x16xf32> to vector<1x16xf32>
    %34 = vector.extract_strided_slice %21 {offsets = [12, 0], sizes = [1, 16], strides = [1, 1]} : vector<51x16xf32> to vector<1x16xf32>
    %35 = vector.extract_strided_slice %21 {offsets = [13, 0], sizes = [1, 16], strides = [1, 1]} : vector<51x16xf32> to vector<1x16xf32>
    %36 = vector.extract_strided_slice %21 {offsets = [14, 0], sizes = [1, 16], strides = [1, 1]} : vector<51x16xf32> to vector<1x16xf32>
    %37 = vector.extract_strided_slice %21 {offsets = [15, 0], sizes = [1, 16], strides = [1, 1]} : vector<51x16xf32> to vector<1x16xf32>
    %38 = tpu.concatenate %22, %23, %24, %25, %26, %27, %28, %29, %30, %31, %32, %33, %34, %35, %36, %37 in 1 : vector<1x16xf32>, vector<1x16xf32>, vector<1x16xf32>, vector<1x16xf32>, vector<1x16xf32>, vector<1x16xf32>, vector<1x16xf32>, vector<1x16xf32>, vector<1x16xf32>, vector<1x16xf32>, vector<1x16xf32>, vector<1x16xf32>, vector<1x16xf32>, vector<1x16xf32>, vector<1x16xf32>, vector<1x16xf32> -> vector<1x256xf32>
    %39 = vector.extract_strided_slice %21 {offsets = [10, 0], sizes = [1, 16], strides = [1, 1]} : vector<51x16xf32> to vector<1x16xf32>
    %40 = vector.extract_strided_slice %21 {offsets = [11, 0], sizes = [1, 16], strides = [1, 1]} : vector<51x16xf32> to vector<1x16xf32>
    %41 = vector.extract_strided_slice %21 {offsets = [12, 0], sizes = [1, 16], strides = [1, 1]} : vector<51x16xf32> to vector<1x16xf32>
    %42 = vector.extract_strided_slice %21 {offsets = [13, 0], sizes = [1, 16], strides = [1, 1]} : vector<51x16xf32> to vector<1x16xf32>
    %43 = vector.extract_strided_slice %21 {offsets = [14, 0], sizes = [1, 16], strides = [1, 1]} : vector<51x16xf32> to vector<1x16xf32>
    %44 = vector.extract_strided_slice %21 {offsets = [15, 0], sizes = [1, 16], strides = [1, 1]} : vector<51x16xf32> to vector<1x16xf32>
    %45 = vector.extract_strided_slice %21 {offsets = [16, 0], sizes = [1, 16], strides = [1, 1]} : vector<51x16xf32> to vector<1x16xf32>
    %46 = vector.extract_strided_slice %21 {offsets = [17, 0], sizes = [1, 16], strides = [1, 1]} : vector<51x16xf32> to vector<1x16xf32>
    %47 = vector.extract_strided_slice %21 {offsets = [18, 0], sizes = [1, 16], strides = [1, 1]} : vector<51x16xf32> to vector<1x16xf32>
    %48 = vector.extract_strided_slice %21 {offsets = [19, 0], sizes = [1, 16], strides = [1, 1]} : vector<51x16xf32> to vector<1x16xf32>
    %49 = vector.extract_strided_slice %21 {offsets = [20, 0], sizes = [1, 16], strides = [1, 1]} : vector<51x16xf32> to vector<1x16xf32>
    %50 = vector.extract_strided_slice %21 {offsets = [21, 0], sizes = [1, 16], strides = [1, 1]} : vector<51x16xf32> to vector<1x16xf32>
    %51 = vector.extract_strided_slice %21 {offsets = [22, 0], sizes = [1, 16], strides = [1, 1]} : vector<51x16xf32> to vector<1x16xf32>
    %52 = vector.extract_strided_slice %21 {offsets = [23, 0], sizes = [1, 16], strides = [1, 1]} : vector<51x16xf32> to vector<1x16xf32>
    %53 = vector.extract_strided_slice %21 {offsets = [24, 0], sizes = [1, 16], strides = [1, 1]} : vector<51x16xf32> to vector<1x16xf32>
    %54 = vector.extract_strided_slice %21 {offsets = [25, 0], sizes = [1, 16], strides = [1, 1]} : vector<51x16xf32> to vector<1x16xf32>
    %55 = tpu.concatenate %39, %40, %41, %42, %43, %44, %45, %46, %47, %48, %49, %50, %51, %52, %53, %54 in 1 : vector<1x16xf32>, vector<1x16xf32>, vector<1x16xf32>, vector<1x16xf32>, vector<1x16xf32>, vector<1x16xf32>, vector<1x16xf32>, vector<1x16xf32>, vector<1x16xf32>, vector<1x16xf32>, vector<1x16xf32>, vector<1x16xf32>, vector<1x16xf32>, vector<1x16xf32>, vector<1x16xf32>, vector<1x16xf32> -> vector<1x256xf32>
    %56 = vector.extract_strided_slice %21 {offsets = [20, 0], sizes = [1, 16], strides = [1, 1]} : vector<51x16xf32> to vector<1x16xf32>
    %57 = vector.extract_strided_slice %21 {offsets = [21, 0], sizes = [1, 16], strides = [1, 1]} : vector<51x16xf32> to vector<1x16xf32>
    %58 = vector.extract_strided_slice %21 {offsets = [22, 0], sizes = [1, 16], strides = [1, 1]} : vector<51x16xf32> to vector<1x16xf32>
    %59 = vector.extract_strided_slice %21 {offsets = [23, 0], sizes = [1, 16], strides = [1, 1]} : vector<51x16xf32> to vector<1x16xf32>
    %60 = vector.extract_strided_slice %21 {offsets = [24, 0], sizes = [1, 16], strides = [1, 1]} : vector<51x16xf32> to vector<1x16xf32>
    %61 = vector.extract_strided_slice %21 {offsets = [25, 0], sizes = [1, 16], strides = [1, 1]} : vector<51x16xf32> to vector<1x16xf32>
    %62 = vector.extract_strided_slice %21 {offsets = [26, 0], sizes = [1, 16], strides = [1, 1]} : vector<51x16xf32> to vector<1x16xf32>
    %63 = vector.extract_strided_slice %21 {offsets = [27, 0], sizes = [1, 16], strides = [1, 1]} : vector<51x16xf32> to vector<1x16xf32>
    %64 = vector.extract_strided_slice %21 {offsets = [28, 0], sizes = [1, 16], strides = [1, 1]} : vector<51x16xf32> to vector<1x16xf32>
    %65 = vector.extract_strided_slice %21 {offsets = [29, 0], sizes = [1, 16], strides = [1, 1]} : vector<51x16xf32> to vector<1x16xf32>
    %66 = vector.extract_strided_slice %21 {offsets = [30, 0], sizes = [1, 16], strides = [1, 1]} : vector<51x16xf32> to vector<1x16xf32>
    %67 = vector.extract_strided_slice %21 {offsets = [31, 0], sizes = [1, 16], strides = [1, 1]} : vector<51x16xf32> to vector<1x16xf32>
    %68 = vector.extract_strided_slice %21 {offsets = [32, 0], sizes = [1, 16], strides = [1, 1]} : vector<51x16xf32> to vector<1x16xf32>
    %69 = vector.extract_strided_slice %21 {offsets = [33, 0], sizes = [1, 16], strides = [1, 1]} : vector<51x16xf32> to vector<1x16xf32>
    %70 = vector.extract_strided_slice %21 {offsets = [34, 0], sizes = [1, 16], strides = [1, 1]} : vector<51x16xf32> to vector<1x16xf32>
    %71 = vector.extract_strided_slice %21 {offsets = [35, 0], sizes = [1, 16], strides = [1, 1]} : vector<51x16xf32> to vector<1x16xf32>
    %72 = tpu.concatenate %56, %57, %58, %59, %60, %61, %62, %63, %64, %65, %66, %67, %68, %69, %70, %71 in 1 : vector<1x16xf32>, vector<1x16xf32>, vector<1x16xf32>, vector<1x16xf32>, vector<1x16xf32>, vector<1x16xf32>, vector<1x16xf32>, vector<1x16xf32>, vector<1x16xf32>, vector<1x16xf32>, vector<1x16xf32>, vector<1x16xf32>, vector<1x16xf32>, vector<1x16xf32>, vector<1x16xf32>, vector<1x16xf32> -> vector<1x256xf32>
    %73 = vector.extract_strided_slice %21 {offsets = [30, 0], sizes = [1, 16], strides = [1, 1]} : vector<51x16xf32> to vector<1x16xf32>
    %74 = vector.extract_strided_slice %21 {offsets = [31, 0], sizes = [1, 16], strides = [1, 1]} : vector<51x16xf32> to vector<1x16xf32>
    %75 = vector.extract_strided_slice %21 {offsets = [32, 0], sizes = [1, 16], strides = [1, 1]} : vector<51x16xf32> to vector<1x16xf32>
    %76 = vector.extract_strided_slice %21 {offsets = [33, 0], sizes = [1, 16], strides = [1, 1]} : vector<51x16xf32> to vector<1x16xf32>
    %77 = vector.extract_strided_slice %21 {offsets = [34, 0], sizes = [1, 16], strides = [1, 1]} : vector<51x16xf32> to vector<1x16xf32>
    %78 = vector.extract_strided_slice %21 {offsets = [35, 0], sizes = [1, 16], strides = [1, 1]} : vector<51x16xf32> to vector<1x16xf32>
    %79 = vector.extract_strided_slice %21 {offsets = [36, 0], sizes = [1, 16], strides = [1, 1]} : vector<51x16xf32> to vector<1x16xf32>
    %80 = vector.extract_strided_slice %21 {offsets = [37, 0], sizes = [1, 16], strides = [1, 1]} : vector<51x16xf32> to vector<1x16xf32>
    %81 = vector.extract_strided_slice %21 {offsets = [38, 0], sizes = [1, 16], strides = [1, 1]} : vector<51x16xf32> to vector<1x16xf32>
    %82 = vector.extract_strided_slice %21 {offsets = [39, 0], sizes = [1, 16], strides = [1, 1]} : vector<51x16xf32> to vector<1x16xf32>
    %83 = vector.extract_strided_slice %21 {offsets = [40, 0], sizes = [1, 16], strides = [1, 1]} : vector<51x16xf32> to vector<1x16xf32>
    %84 = vector.extract_strided_slice %21 {offsets = [41, 0], sizes = [1, 16], strides = [1, 1]} : vector<51x16xf32> to vector<1x16xf32>
    %85 = vector.extract_strided_slice %21 {offsets = [42, 0], sizes = [1, 16], strides = [1, 1]} : vector<51x16xf32> to vector<1x16xf32>
    %86 = vector.extract_strided_slice %21 {offsets = [43, 0], sizes = [1, 16], strides = [1, 1]} : vector<51x16xf32> to vector<1x16xf32>
    %87 = vector.extract_strided_slice %21 {offsets = [44, 0], sizes = [1, 16], strides = [1, 1]} : vector<51x16xf32> to vector<1x16xf32>
    %88 = vector.extract_strided_slice %21 {offsets = [45, 0], sizes = [1, 16], strides = [1, 1]} : vector<51x16xf32> to vector<1x16xf32>
    %89 = tpu.concatenate %73, %74, %75, %76, %77, %78, %79, %80, %81, %82, %83, %84, %85, %86, %87, %88 in 1 : vector<1x16xf32>, vector<1x16xf32>, vector<1x16xf32>, vector<1x16xf32>, vector<1x16xf32>, vector<1x16xf32>, vector<1x16xf32>, vector<1x16xf32>, vector<1x16xf32>, vector<1x16xf32>, vector<1x16xf32>, vector<1x16xf32>, vector<1x16xf32>, vector<1x16xf32>, vector<1x16xf32>, vector<1x16xf32> -> vector<1x256xf32>
    %90 = tpu.concatenate %38, %55, %72, %89 in 0 : vector<1x256xf32>, vector<1x256xf32>, vector<1x256xf32>, vector<1x256xf32> -> vector<4x256xf32>
    %c0_15 = arith.constant 0 : index
    %c0_16 = arith.constant 0 : index
    %91 = vector.load %arg6[%c0_15, %c0_16] : memref<256x32xf32, #tpu.memory_space<vmem>>, vector<256x32xf32>
    %cst_17 = arith.constant dense<0.000000e+00> : vector<4x32xf32>
    %92 = tpu.matmul %90, %91, %cst_17 {dimension_numbers = #tpu.dot_dimension_numbers<[1], [0], [0], [1], [0, 0, 1, 1], [], []>} : vector<4x256xf32>, vector<256x32xf32>, vector<4x32xf32> -> vector<4x32xf32>
    %c0_18 = arith.constant 0 : index
    %c0_19 = arith.constant 0 : index
    %93 = vector.load %arg7[%c0_18, %c0_19] : memref<1x32xf32, #tpu.memory_space<vmem>>, vector<1x32xf32>
    %94 = vector.broadcast %93 : vector<1x32xf32> to vector<4x32xf32>
    %95 = arith.addf %92, %94 : vector<4x32xf32>
    %c0_20 = arith.constant 0 : index
    %c0_21 = arith.constant 0 : index
    %96 = vector.load %arg8[%c0_20, %c0_21] : memref<1x32xf32, #tpu.memory_space<vmem>>, vector<1x32xf32>
    %c0_22 = arith.constant 0 : index
    %c0_23 = arith.constant 0 : index
    %97 = vector.load %arg9[%c0_22, %c0_23] : memref<1x32xf32, #tpu.memory_space<vmem>>, vector<1x32xf32>
    %98 = tpu.concatenate %96, %97, %95 in 0 : vector<1x32xf32>, vector<1x32xf32>, vector<4x32xf32> -> vector<6x32xf32>
    %c0_24 = arith.constant 0 : index
    %c0_25 = arith.constant 0 : index
    %99 = vector.load %arg10[%c0_24, %c0_25] : memref<6x32xf32, #tpu.memory_space<vmem>>, vector<6x32xf32>
    %100 = arith.addf %98, %99 : vector<6x32xf32>
    %c0_26 = arith.constant 0 : index
    %c0_27 = arith.constant 0 : index
    %101 = vector.load %arg11[%c0_26, %c0_27] : memref<24x32xf32, #tpu.memory_space<vmem>>, vector<24x32xf32>
    %c0_28 = arith.constant 0 : index
    %c0_29 = arith.constant 0 : index
    %102 = vector.load %arg12[%c0_28, %c0_29] : memref<1x32xf32, #tpu.memory_space<vmem>>, vector<1x32xf32>
    %c0_30 = arith.constant 0 : index
    %c0_31 = arith.constant 0 : index
    %103 = vector.load %arg13[%c0_30, %c0_31] : memref<1x32xf32, #tpu.memory_space<vmem>>, vector<1x32xf32>
    %cst_32 = arith.constant dense<0.000000e+00> : vector<6xf32>
    %104 = vector.multi_reduction <add>, %100, %cst_32 [1] : vector<6x32xf32> to vector<6xf32>
    %105 = vector.shape_cast %104 : vector<6xf32> to vector<6x1xf32>
    %cst_33 = arith.constant 3.200000e+01 : f32
    %106 = vector.broadcast %cst_33 : f32 to vector<6x1xf32>
    %107 = arith.divf %105, %106 : vector<6x1xf32>
    %108 = vector.broadcast %107 : vector<6x1xf32> to vector<6x32xf32>
    %109 = arith.subf %100, %108 : vector<6x32xf32>
    %110 = arith.mulf %109, %109 : vector<6x32xf32>
    %cst_34 = arith.constant dense<0.000000e+00> : vector<6xf32>
    %111 = vector.multi_reduction <add>, %110, %cst_34 [1] : vector<6x32xf32> to vector<6xf32>
    %112 = vector.shape_cast %111 : vector<6xf32> to vector<6x1xf32>
    %cst_35 = arith.constant 3.200000e+01 : f32
    %113 = vector.broadcast %cst_35 : f32 to vector<6x1xf32>
    %114 = arith.divf %112, %113 : vector<6x1xf32>
    %115 = vector.broadcast %107 : vector<6x1xf32> to vector<6x32xf32>
    %116 = arith.subf %100, %115 : vector<6x32xf32>
    %cst_36 = arith.constant 9.99999997E-7 : f32
    %117 = vector.broadcast %cst_36 : f32 to vector<6x1xf32>
    %118 = arith.addf %114, %117 : vector<6x1xf32>
    %119 = math.rsqrt %118 : vector<6x1xf32>
    %120 = vector.broadcast %119 : vector<6x1xf32> to vector<6x32xf32>
    %121 = arith.mulf %116, %120 : vector<6x32xf32>
    %122 = vector.broadcast %102 : vector<1x32xf32> to vector<6x32xf32>
    %123 = arith.mulf %121, %122 : vector<6x32xf32>
    %124 = vector.broadcast %103 : vector<1x32xf32> to vector<6x32xf32>
    %125 = arith.addf %123, %124 : vector<6x32xf32>
    %c0_37 = arith.constant 0 : index
    %c0_38 = arith.constant 0 : index
    %126 = vector.load %arg14[%c0_37, %c0_38] : memref<32x96xf32, #tpu.memory_space<vmem>>, vector<32x96xf32>
    %cst_39 = arith.constant dense<0.000000e+00> : vector<6x96xf32>
    %127 = tpu.matmul %125, %126, %cst_39 {dimension_numbers = #tpu.dot_dimension_numbers<[1], [0], [0], [1], [0, 0, 1, 1], [], []>} : vector<6x32xf32>, vector<32x96xf32>, vector<6x96xf32> -> vector<6x96xf32>
    %c0_40 = arith.constant 0 : index
    %c0_41 = arith.constant 0 : index
    %128 = vector.load %arg15[%c0_40, %c0_41] : memref<1x96xf32, #tpu.memory_space<vmem>>, vector<1x96xf32>
    %129 = vector.broadcast %128 : vector<1x96xf32> to vector<6x96xf32>
    %130 = arith.addf %127, %129 : vector<6x96xf32>
    %131 = vector.extract_strided_slice %130 {offsets = [0, 0], sizes = [6, 32], strides = [1, 1]} : vector<6x96xf32> to vector<6x32xf32>
    %132 = vector.extract_strided_slice %130 {offsets = [0, 32], sizes = [6, 32], strides = [1, 1]} : vector<6x96xf32> to vector<6x32xf32>
    %133 = vector.extract_strided_slice %130 {offsets = [0, 64], sizes = [6, 32], strides = [1, 1]} : vector<6x96xf32> to vector<6x32xf32>
    %134 = tpu.concatenate %131, %131, %131, %131 in 0 : vector<6x32xf32>, vector<6x32xf32>, vector<6x32xf32>, vector<6x32xf32> -> vector<24x32xf32>
    %135 = arith.mulf %134, %101 : vector<24x32xf32>
    %cst_42 = arith.constant dense<0.000000e+00> : vector<24x6xf32>
    %136 = tpu.matmul %135, %132, %cst_42 {dimension_numbers = #tpu.dot_dimension_numbers<[1], [1], [0], [0], [0, 0, 1, 0], [], []>} : vector<24x32xf32>, vector<6x32xf32>, vector<24x6xf32> -> vector<24x6xf32>
    %cst_43 = arith.constant 0.353553385 : f32
    %137 = vector.broadcast %cst_43 : f32 to vector<24x6xf32>
    %138 = arith.mulf %136, %137 : vector<24x6xf32>
    %cst_44 = arith.constant dense<0xFF800000> : vector<24xf32>
    %139 = vector.multi_reduction <maximumf>, %138, %cst_44 [1] : vector<24x6xf32> to vector<24xf32>
    %140 = vector.shape_cast %139 : vector<24xf32> to vector<24x1xf32>
    %141 = vector.broadcast %140 : vector<24x1xf32> to vector<24x6xf32>
    %142 = arith.subf %138, %141 : vector<24x6xf32>
    %143 = math.exp %142 : vector<24x6xf32>
    %cst_45 = arith.constant dense<0.000000e+00> : vector<24xf32>
    %144 = vector.multi_reduction <add>, %143, %cst_45 [1] : vector<24x6xf32> to vector<24xf32>
    %145 = vector.shape_cast %144 : vector<24xf32> to vector<24x1xf32>
    %146 = tpu.reciprocal %145 {approx = true} : vector<24x1xf32> -> vector<24x1xf32>
    %147 = vector.broadcast %146 : vector<24x1xf32> to vector<24x6xf32>
    %148 = arith.mulf %143, %147 : vector<24x6xf32>
    %cst_46 = arith.constant dense<0.000000e+00> : vector<24x32xf32>
    %149 = tpu.matmul %148, %133, %cst_46 {dimension_numbers = #tpu.dot_dimension_numbers<[1], [0], [0], [1], [0, 0, 1, 1], [], []>} : vector<24x6xf32>, vector<6x32xf32>, vector<24x32xf32> -> vector<24x32xf32>
    %150 = arith.mulf %149, %101 : vector<24x32xf32>
    %151 = vector.extract_strided_slice %150 {offsets = [0, 0], sizes = [6, 32], strides = [1, 1]} : vector<24x32xf32> to vector<6x32xf32>
    %152 = vector.extract_strided_slice %150 {offsets = [6, 0], sizes = [6, 32], strides = [1, 1]} : vector<24x32xf32> to vector<6x32xf32>
    %153 = arith.addf %151, %152 : vector<6x32xf32>
    %154 = vector.extract_strided_slice %150 {offsets = [12, 0], sizes = [6, 32], strides = [1, 1]} : vector<24x32xf32> to vector<6x32xf32>
    %155 = arith.addf %153, %154 : vector<6x32xf32>
    %156 = vector.extract_strided_slice %150 {offsets = [18, 0], sizes = [6, 32], strides = [1, 1]} : vector<24x32xf32> to vector<6x32xf32>
    %157 = arith.addf %155, %156 : vector<6x32xf32>
    %c0_47 = arith.constant 0 : index
    %c0_48 = arith.constant 0 : index
    %158 = vector.load %arg16[%c0_47, %c0_48] : memref<32x32xf32, #tpu.memory_space<vmem>>, vector<32x32xf32>
    %cst_49 = arith.constant dense<0.000000e+00> : vector<6x32xf32>
    %159 = tpu.matmul %157, %158, %cst_49 {dimension_numbers = #tpu.dot_dimension_numbers<[1], [0], [0], [1], [0, 0, 1, 1], [], []>} : vector<6x32xf32>, vector<32x32xf32>, vector<6x32xf32> -> vector<6x32xf32>
    %c0_50 = arith.constant 0 : index
    %c0_51 = arith.constant 0 : index
    %160 = vector.load %arg17[%c0_50, %c0_51] : memref<1x32xf32, #tpu.memory_space<vmem>>, vector<1x32xf32>
    %161 = vector.broadcast %160 : vector<1x32xf32> to vector<6x32xf32>
    %162 = arith.addf %159, %161 : vector<6x32xf32>
    %163 = arith.addf %100, %162 : vector<6x32xf32>
    %c0_52 = arith.constant 0 : index
    %c0_53 = arith.constant 0 : index
    %164 = vector.load %arg18[%c0_52, %c0_53] : memref<1x32xf32, #tpu.memory_space<vmem>>, vector<1x32xf32>
    %c0_54 = arith.constant 0 : index
    %c0_55 = arith.constant 0 : index
    %165 = vector.load %arg19[%c0_54, %c0_55] : memref<1x32xf32, #tpu.memory_space<vmem>>, vector<1x32xf32>
    %cst_56 = arith.constant dense<0.000000e+00> : vector<6xf32>
    %166 = vector.multi_reduction <add>, %163, %cst_56 [1] : vector<6x32xf32> to vector<6xf32>
    %167 = vector.shape_cast %166 : vector<6xf32> to vector<6x1xf32>
    %cst_57 = arith.constant 3.200000e+01 : f32
    %168 = vector.broadcast %cst_57 : f32 to vector<6x1xf32>
    %169 = arith.divf %167, %168 : vector<6x1xf32>
    %170 = vector.broadcast %169 : vector<6x1xf32> to vector<6x32xf32>
    %171 = arith.subf %163, %170 : vector<6x32xf32>
    %172 = arith.mulf %171, %171 : vector<6x32xf32>
    %cst_58 = arith.constant dense<0.000000e+00> : vector<6xf32>
    %173 = vector.multi_reduction <add>, %172, %cst_58 [1] : vector<6x32xf32> to vector<6xf32>
    %174 = vector.shape_cast %173 : vector<6xf32> to vector<6x1xf32>
    %cst_59 = arith.constant 3.200000e+01 : f32
    %175 = vector.broadcast %cst_59 : f32 to vector<6x1xf32>
    %176 = arith.divf %174, %175 : vector<6x1xf32>
    %177 = vector.broadcast %169 : vector<6x1xf32> to vector<6x32xf32>
    %178 = arith.subf %163, %177 : vector<6x32xf32>
    %cst_60 = arith.constant 9.99999997E-7 : f32
    %179 = vector.broadcast %cst_60 : f32 to vector<6x1xf32>
    %180 = arith.addf %176, %179 : vector<6x1xf32>
    %181 = math.rsqrt %180 : vector<6x1xf32>
    %182 = vector.broadcast %181 : vector<6x1xf32> to vector<6x32xf32>
    %183 = arith.mulf %178, %182 : vector<6x32xf32>
    %184 = vector.broadcast %164 : vector<1x32xf32> to vector<6x32xf32>
    %185 = arith.mulf %183, %184 : vector<6x32xf32>
    %186 = vector.broadcast %165 : vector<1x32xf32> to vector<6x32xf32>
    %187 = arith.addf %185, %186 : vector<6x32xf32>
    %c0_61 = arith.constant 0 : index
    %c0_62 = arith.constant 0 : index
    %188 = vector.load %arg20[%c0_61, %c0_62] : memref<32x128xf32, #tpu.memory_space<vmem>>, vector<32x128xf32>
    %cst_63 = arith.constant dense<0.000000e+00> : vector<6x128xf32>
    %189 = tpu.matmul %187, %188, %cst_63 {dimension_numbers = #tpu.dot_dimension_numbers<[1], [0], [0], [1], [0, 0, 1, 1], [], []>} : vector<6x32xf32>, vector<32x128xf32>, vector<6x128xf32> -> vector<6x128xf32>
    %c0_64 = arith.constant 0 : index
    %c0_65 = arith.constant 0 : index
    %190 = vector.load %arg21[%c0_64, %c0_65] : memref<1x128xf32, #tpu.memory_space<vmem>>, vector<1x128xf32>
    %191 = vector.broadcast %190 : vector<1x128xf32> to vector<6x128xf32>
    %192 = arith.addf %189, %191 : vector<6x128xf32>
    %193 = arith.mulf %192, %192 : vector<6x128xf32>
    %194 = arith.mulf %192, %193 : vector<6x128xf32>
    %cst_66 = arith.constant 4.471500e-02 : f32
    %195 = vector.broadcast %cst_66 : f32 to vector<6x128xf32>
    %196 = arith.mulf %195, %194 : vector<6x128xf32>
    %197 = arith.addf %192, %196 : vector<6x128xf32>
    %cst_67 = arith.constant 0.797884583 : f32
    %198 = vector.broadcast %cst_67 : f32 to vector<6x128xf32>
    %199 = arith.mulf %198, %197 : vector<6x128xf32>
    %200 = math.tanh %199 : vector<6x128xf32>
    %cst_68 = arith.constant 1.000000e+00 : f32
    %201 = vector.broadcast %cst_68 : f32 to vector<6x128xf32>
    %202 = arith.addf %201, %200 : vector<6x128xf32>
    %cst_69 = arith.constant 5.000000e-01 : f32
    %203 = vector.broadcast %cst_69 : f32 to vector<6x128xf32>
    %204 = arith.mulf %203, %202 : vector<6x128xf32>
    %205 = arith.mulf %192, %204 : vector<6x128xf32>
    %c0_70 = arith.constant 0 : index
    %c0_71 = arith.constant 0 : index
    %206 = vector.load %arg22[%c0_70, %c0_71] : memref<128x32xf32, #tpu.memory_space<vmem>>, vector<128x32xf32>
    %cst_72 = arith.constant dense<0.000000e+00> : vector<6x32xf32>
    %207 = tpu.matmul %205, %206, %cst_72 {dimension_numbers = #tpu.dot_dimension_numbers<[1], [0], [0], [1], [0, 0, 1, 1], [], []>} : vector<6x128xf32>, vector<128x32xf32>, vector<6x32xf32> -> vector<6x32xf32>
    %c0_73 = arith.constant 0 : index
    %c0_74 = arith.constant 0 : index
    %208 = vector.load %arg23[%c0_73, %c0_74] : memref<1x32xf32, #tpu.memory_space<vmem>>, vector<1x32xf32>
    %209 = vector.broadcast %208 : vector<1x32xf32> to vector<6x32xf32>
    %210 = arith.addf %207, %209 : vector<6x32xf32>
    %211 = arith.addf %163, %210 : vector<6x32xf32>
    %c0_75 = arith.constant 0 : index
    %c0_76 = arith.constant 0 : index
    %212 = vector.load %arg24[%c0_75, %c0_76] : memref<1x32xf32, #tpu.memory_space<vmem>>, vector<1x32xf32>
    %c0_77 = arith.constant 0 : index
    %c0_78 = arith.constant 0 : index
    %213 = vector.load %arg25[%c0_77, %c0_78] : memref<1x32xf32, #tpu.memory_space<vmem>>, vector<1x32xf32>
    %cst_79 = arith.constant dense<0.000000e+00> : vector<6xf32>
    %214 = vector.multi_reduction <add>, %211, %cst_79 [1] : vector<6x32xf32> to vector<6xf32>
    %215 = vector.shape_cast %214 : vector<6xf32> to vector<6x1xf32>
    %cst_80 = arith.constant 3.200000e+01 : f32
    %216 = vector.broadcast %cst_80 : f32 to vector<6x1xf32>
    %217 = arith.divf %215, %216 : vector<6x1xf32>
    %218 = vector.broadcast %217 : vector<6x1xf32> to vector<6x32xf32>
    %219 = arith.subf %211, %218 : vector<6x32xf32>
    %220 = arith.mulf %219, %219 : vector<6x32xf32>
    %cst_81 = arith.constant dense<0.000000e+00> : vector<6xf32>
    %221 = vector.multi_reduction <add>, %220, %cst_81 [1] : vector<6x32xf32> to vector<6xf32>
    %222 = vector.shape_cast %221 : vector<6xf32> to vector<6x1xf32>
    %cst_82 = arith.constant 3.200000e+01 : f32
    %223 = vector.broadcast %cst_82 : f32 to vector<6x1xf32>
    %224 = arith.divf %222, %223 : vector<6x1xf32>
    %225 = vector.broadcast %217 : vector<6x1xf32> to vector<6x32xf32>
    %226 = arith.subf %211, %225 : vector<6x32xf32>
    %cst_83 = arith.constant 9.99999997E-7 : f32
    %227 = vector.broadcast %cst_83 : f32 to vector<6x1xf32>
    %228 = arith.addf %224, %227 : vector<6x1xf32>
    %229 = math.rsqrt %228 : vector<6x1xf32>
    %230 = vector.broadcast %229 : vector<6x1xf32> to vector<6x32xf32>
    %231 = arith.mulf %226, %230 : vector<6x32xf32>
    %232 = vector.broadcast %212 : vector<1x32xf32> to vector<6x32xf32>
    %233 = arith.mulf %231, %232 : vector<6x32xf32>
    %234 = vector.broadcast %213 : vector<1x32xf32> to vector<6x32xf32>
    %235 = arith.addf %233, %234 : vector<6x32xf32>
    %c0_84 = arith.constant 0 : index
    %c0_85 = arith.constant 0 : index
    %236 = vector.load %arg26[%c0_84, %c0_85] : memref<32x96xf32, #tpu.memory_space<vmem>>, vector<32x96xf32>
    %cst_86 = arith.constant dense<0.000000e+00> : vector<6x96xf32>
    %237 = tpu.matmul %235, %236, %cst_86 {dimension_numbers = #tpu.dot_dimension_numbers<[1], [0], [0], [1], [0, 0, 1, 1], [], []>} : vector<6x32xf32>, vector<32x96xf32>, vector<6x96xf32> -> vector<6x96xf32>
    %c0_87 = arith.constant 0 : index
    %c0_88 = arith.constant 0 : index
    %238 = vector.load %arg27[%c0_87, %c0_88] : memref<1x96xf32, #tpu.memory_space<vmem>>, vector<1x96xf32>
    %239 = vector.broadcast %238 : vector<1x96xf32> to vector<6x96xf32>
    %240 = arith.addf %237, %239 : vector<6x96xf32>
    %241 = vector.extract_strided_slice %240 {offsets = [0, 0], sizes = [6, 32], strides = [1, 1]} : vector<6x96xf32> to vector<6x32xf32>
    %242 = vector.extract_strided_slice %240 {offsets = [0, 32], sizes = [6, 32], strides = [1, 1]} : vector<6x96xf32> to vector<6x32xf32>
    %243 = vector.extract_strided_slice %240 {offsets = [0, 64], sizes = [6, 32], strides = [1, 1]} : vector<6x96xf32> to vector<6x32xf32>
    %244 = tpu.concatenate %241, %241, %241, %241 in 0 : vector<6x32xf32>, vector<6x32xf32>, vector<6x32xf32>, vector<6x32xf32> -> vector<24x32xf32>
    %245 = arith.mulf %244, %101 : vector<24x32xf32>
    %cst_89 = arith.constant dense<0.000000e+00> : vector<24x6xf32>
    %246 = tpu.matmul %245, %242, %cst_89 {dimension_numbers = #tpu.dot_dimension_numbers<[1], [1], [0], [0], [0, 0, 1, 0], [], []>} : vector<24x32xf32>, vector<6x32xf32>, vector<24x6xf32> -> vector<24x6xf32>
    %cst_90 = arith.constant 0.353553385 : f32
    %247 = vector.broadcast %cst_90 : f32 to vector<24x6xf32>
    %248 = arith.mulf %246, %247 : vector<24x6xf32>
    %cst_91 = arith.constant dense<0xFF800000> : vector<24xf32>
    %249 = vector.multi_reduction <maximumf>, %248, %cst_91 [1] : vector<24x6xf32> to vector<24xf32>
    %250 = vector.shape_cast %249 : vector<24xf32> to vector<24x1xf32>
    %251 = vector.broadcast %250 : vector<24x1xf32> to vector<24x6xf32>
    %252 = arith.subf %248, %251 : vector<24x6xf32>
    %253 = math.exp %252 : vector<24x6xf32>
    %cst_92 = arith.constant dense<0.000000e+00> : vector<24xf32>
    %254 = vector.multi_reduction <add>, %253, %cst_92 [1] : vector<24x6xf32> to vector<24xf32>
    %255 = vector.shape_cast %254 : vector<24xf32> to vector<24x1xf32>
    %256 = tpu.reciprocal %255 {approx = true} : vector<24x1xf32> -> vector<24x1xf32>
    %257 = vector.broadcast %256 : vector<24x1xf32> to vector<24x6xf32>
    %258 = arith.mulf %253, %257 : vector<24x6xf32>
    %cst_93 = arith.constant dense<0.000000e+00> : vector<24x32xf32>
    %259 = tpu.matmul %258, %243, %cst_93 {dimension_numbers = #tpu.dot_dimension_numbers<[1], [0], [0], [1], [0, 0, 1, 1], [], []>} : vector<24x6xf32>, vector<6x32xf32>, vector<24x32xf32> -> vector<24x32xf32>
    %260 = arith.mulf %259, %101 : vector<24x32xf32>
    %261 = vector.extract_strided_slice %260 {offsets = [0, 0], sizes = [6, 32], strides = [1, 1]} : vector<24x32xf32> to vector<6x32xf32>
    %262 = vector.extract_strided_slice %260 {offsets = [6, 0], sizes = [6, 32], strides = [1, 1]} : vector<24x32xf32> to vector<6x32xf32>
    %263 = arith.addf %261, %262 : vector<6x32xf32>
    %264 = vector.extract_strided_slice %260 {offsets = [12, 0], sizes = [6, 32], strides = [1, 1]} : vector<24x32xf32> to vector<6x32xf32>
    %265 = arith.addf %263, %264 : vector<6x32xf32>
    %266 = vector.extract_strided_slice %260 {offsets = [18, 0], sizes = [6, 32], strides = [1, 1]} : vector<24x32xf32> to vector<6x32xf32>
    %267 = arith.addf %265, %266 : vector<6x32xf32>
    %c0_94 = arith.constant 0 : index
    %c0_95 = arith.constant 0 : index
    %268 = vector.load %arg28[%c0_94, %c0_95] : memref<32x32xf32, #tpu.memory_space<vmem>>, vector<32x32xf32>
    %cst_96 = arith.constant dense<0.000000e+00> : vector<6x32xf32>
    %269 = tpu.matmul %267, %268, %cst_96 {dimension_numbers = #tpu.dot_dimension_numbers<[1], [0], [0], [1], [0, 0, 1, 1], [], []>} : vector<6x32xf32>, vector<32x32xf32>, vector<6x32xf32> -> vector<6x32xf32>
    %c0_97 = arith.constant 0 : index
    %c0_98 = arith.constant 0 : index
    %270 = vector.load %arg29[%c0_97, %c0_98] : memref<1x32xf32, #tpu.memory_space<vmem>>, vector<1x32xf32>
    %271 = vector.broadcast %270 : vector<1x32xf32> to vector<6x32xf32>
    %272 = arith.addf %269, %271 : vector<6x32xf32>
    %273 = arith.addf %211, %272 : vector<6x32xf32>
    %c0_99 = arith.constant 0 : index
    %c0_100 = arith.constant 0 : index
    %274 = vector.load %arg30[%c0_99, %c0_100] : memref<1x32xf32, #tpu.memory_space<vmem>>, vector<1x32xf32>
    %c0_101 = arith.constant 0 : index
    %c0_102 = arith.constant 0 : index
    %275 = vector.load %arg31[%c0_101, %c0_102] : memref<1x32xf32, #tpu.memory_space<vmem>>, vector<1x32xf32>
    %cst_103 = arith.constant dense<0.000000e+00> : vector<6xf32>
    %276 = vector.multi_reduction <add>, %273, %cst_103 [1] : vector<6x32xf32> to vector<6xf32>
    %277 = vector.shape_cast %276 : vector<6xf32> to vector<6x1xf32>
    %cst_104 = arith.constant 3.200000e+01 : f32
    %278 = vector.broadcast %cst_104 : f32 to vector<6x1xf32>
    %279 = arith.divf %277, %278 : vector<6x1xf32>
    %280 = vector.broadcast %279 : vector<6x1xf32> to vector<6x32xf32>
    %281 = arith.subf %273, %280 : vector<6x32xf32>
    %282 = arith.mulf %281, %281 : vector<6x32xf32>
    %cst_105 = arith.constant dense<0.000000e+00> : vector<6xf32>
    %283 = vector.multi_reduction <add>, %282, %cst_105 [1] : vector<6x32xf32> to vector<6xf32>
    %284 = vector.shape_cast %283 : vector<6xf32> to vector<6x1xf32>
    %cst_106 = arith.constant 3.200000e+01 : f32
    %285 = vector.broadcast %cst_106 : f32 to vector<6x1xf32>
    %286 = arith.divf %284, %285 : vector<6x1xf32>
    %287 = vector.broadcast %279 : vector<6x1xf32> to vector<6x32xf32>
    %288 = arith.subf %273, %287 : vector<6x32xf32>
    %cst_107 = arith.constant 9.99999997E-7 : f32
    %289 = vector.broadcast %cst_107 : f32 to vector<6x1xf32>
    %290 = arith.addf %286, %289 : vector<6x1xf32>
    %291 = math.rsqrt %290 : vector<6x1xf32>
    %292 = vector.broadcast %291 : vector<6x1xf32> to vector<6x32xf32>
    %293 = arith.mulf %288, %292 : vector<6x32xf32>
    %294 = vector.broadcast %274 : vector<1x32xf32> to vector<6x32xf32>
    %295 = arith.mulf %293, %294 : vector<6x32xf32>
    %296 = vector.broadcast %275 : vector<1x32xf32> to vector<6x32xf32>
    %297 = arith.addf %295, %296 : vector<6x32xf32>
    %c0_108 = arith.constant 0 : index
    %c0_109 = arith.constant 0 : index
    %298 = vector.load %arg32[%c0_108, %c0_109] : memref<32x128xf32, #tpu.memory_space<vmem>>, vector<32x128xf32>
    %cst_110 = arith.constant dense<0.000000e+00> : vector<6x128xf32>
    %299 = tpu.matmul %297, %298, %cst_110 {dimension_numbers = #tpu.dot_dimension_numbers<[1], [0], [0], [1], [0, 0, 1, 1], [], []>} : vector<6x32xf32>, vector<32x128xf32>, vector<6x128xf32> -> vector<6x128xf32>
    %c0_111 = arith.constant 0 : index
    %c0_112 = arith.constant 0 : index
    %300 = vector.load %arg33[%c0_111, %c0_112] : memref<1x128xf32, #tpu.memory_space<vmem>>, vector<1x128xf32>
    %301 = vector.broadcast %300 : vector<1x128xf32> to vector<6x128xf32>
    %302 = arith.addf %299, %301 : vector<6x128xf32>
    %303 = arith.mulf %302, %302 : vector<6x128xf32>
    %304 = arith.mulf %302, %303 : vector<6x128xf32>
    %cst_113 = arith.constant 4.471500e-02 : f32
    %305 = vector.broadcast %cst_113 : f32 to vector<6x128xf32>
    %306 = arith.mulf %305, %304 : vector<6x128xf32>
    %307 = arith.addf %302, %306 : vector<6x128xf32>
    %cst_114 = arith.constant 0.797884583 : f32
    %308 = vector.broadcast %cst_114 : f32 to vector<6x128xf32>
    %309 = arith.mulf %308, %307 : vector<6x128xf32>
    %310 = math.tanh %309 : vector<6x128xf32>
    %cst_115 = arith.constant 1.000000e+00 : f32
    %311 = vector.broadcast %cst_115 : f32 to vector<6x128xf32>
    %312 = arith.addf %311, %310 : vector<6x128xf32>
    %cst_116 = arith.constant 5.000000e-01 : f32
    %313 = vector.broadcast %cst_116 : f32 to vector<6x128xf32>
    %314 = arith.mulf %313, %312 : vector<6x128xf32>
    %315 = arith.mulf %302, %314 : vector<6x128xf32>
    %c0_117 = arith.constant 0 : index
    %c0_118 = arith.constant 0 : index
    %316 = vector.load %arg34[%c0_117, %c0_118] : memref<128x32xf32, #tpu.memory_space<vmem>>, vector<128x32xf32>
    %cst_119 = arith.constant dense<0.000000e+00> : vector<6x32xf32>
    %317 = tpu.matmul %315, %316, %cst_119 {dimension_numbers = #tpu.dot_dimension_numbers<[1], [0], [0], [1], [0, 0, 1, 1], [], []>} : vector<6x128xf32>, vector<128x32xf32>, vector<6x32xf32> -> vector<6x32xf32>
    %c0_120 = arith.constant 0 : index
    %c0_121 = arith.constant 0 : index
    %318 = vector.load %arg35[%c0_120, %c0_121] : memref<1x32xf32, #tpu.memory_space<vmem>>, vector<1x32xf32>
    %319 = vector.broadcast %318 : vector<1x32xf32> to vector<6x32xf32>
    %320 = arith.addf %317, %319 : vector<6x32xf32>
    %321 = arith.addf %273, %320 : vector<6x32xf32>
    %322 = vector.extract_strided_slice %321 {offsets = [0, 0], sizes = [1, 32], strides = [1, 1]} : vector<6x32xf32> to vector<1x32xf32>
    %c0_122 = arith.constant 0 : index
    %c0_123 = arith.constant 0 : index
    %323 = vector.load %arg36[%c0_122, %c0_123] : memref<1x32xf32, #tpu.memory_space<vmem>>, vector<1x32xf32>
    %c0_124 = arith.constant 0 : index
    %c0_125 = arith.constant 0 : index
    %324 = vector.load %arg37[%c0_124, %c0_125] : memref<1x32xf32, #tpu.memory_space<vmem>>, vector<1x32xf32>
    %cst_126 = arith.constant dense<0.000000e+00> : vector<1xf32>
    %325 = vector.multi_reduction <add>, %322, %cst_126 [1] : vector<1x32xf32> to vector<1xf32>
    %326 = vector.shape_cast %325 : vector<1xf32> to vector<1x1xf32>
    %cst_127 = arith.constant 3.200000e+01 : f32
    %327 = vector.broadcast %cst_127 : f32 to vector<1x1xf32>
    %328 = arith.divf %326, %327 : vector<1x1xf32>
    %329 = vector.broadcast %328 : vector<1x1xf32> to vector<1x32xf32>
    %330 = arith.subf %322, %329 : vector<1x32xf32>
    %331 = arith.mulf %330, %330 : vector<1x32xf32>
    %cst_128 = arith.constant dense<0.000000e+00> : vector<1xf32>
    %332 = vector.multi_reduction <add>, %331, %cst_128 [1] : vector<1x32xf32> to vector<1xf32>
    %333 = vector.shape_cast %332 : vector<1xf32> to vector<1x1xf32>
    %cst_129 = arith.constant 3.200000e+01 : f32
    %334 = vector.broadcast %cst_129 : f32 to vector<1x1xf32>
    %335 = arith.divf %333, %334 : vector<1x1xf32>
    %336 = vector.broadcast %328 : vector<1x1xf32> to vector<1x32xf32>
    %337 = arith.subf %322, %336 : vector<1x32xf32>
    %cst_130 = arith.constant 9.99999997E-7 : f32
    %338 = vector.broadcast %cst_130 : f32 to vector<1x1xf32>
    %339 = arith.addf %335, %338 : vector<1x1xf32>
    %340 = math.rsqrt %339 : vector<1x1xf32>
    %341 = vector.broadcast %340 : vector<1x1xf32> to vector<1x32xf32>
    %342 = arith.mulf %337, %341 : vector<1x32xf32>
    %343 = arith.mulf %342, %323 : vector<1x32xf32>
    %344 = arith.addf %343, %324 : vector<1x32xf32>
    %345 = vector.extract_strided_slice %321 {offsets = [1, 0], sizes = [1, 32], strides = [1, 1]} : vector<6x32xf32> to vector<1x32xf32>
    %c0_131 = arith.constant 0 : index
    %c0_132 = arith.constant 0 : index
    %346 = vector.load %arg36[%c0_131, %c0_132] : memref<1x32xf32, #tpu.memory_space<vmem>>, vector<1x32xf32>
    %c0_133 = arith.constant 0 : index
    %c0_134 = arith.constant 0 : index
    %347 = vector.load %arg37[%c0_133, %c0_134] : memref<1x32xf32, #tpu.memory_space<vmem>>, vector<1x32xf32>
    %cst_135 = arith.constant dense<0.000000e+00> : vector<1xf32>
    %348 = vector.multi_reduction <add>, %345, %cst_135 [1] : vector<1x32xf32> to vector<1xf32>
    %349 = vector.shape_cast %348 : vector<1xf32> to vector<1x1xf32>
    %cst_136 = arith.constant 3.200000e+01 : f32
    %350 = vector.broadcast %cst_136 : f32 to vector<1x1xf32>
    %351 = arith.divf %349, %350 : vector<1x1xf32>
    %352 = vector.broadcast %351 : vector<1x1xf32> to vector<1x32xf32>
    %353 = arith.subf %345, %352 : vector<1x32xf32>
    %354 = arith.mulf %353, %353 : vector<1x32xf32>
    %cst_137 = arith.constant dense<0.000000e+00> : vector<1xf32>
    %355 = vector.multi_reduction <add>, %354, %cst_137 [1] : vector<1x32xf32> to vector<1xf32>
    %356 = vector.shape_cast %355 : vector<1xf32> to vector<1x1xf32>
    %cst_138 = arith.constant 3.200000e+01 : f32
    %357 = vector.broadcast %cst_138 : f32 to vector<1x1xf32>
    %358 = arith.divf %356, %357 : vector<1x1xf32>
    %359 = vector.broadcast %351 : vector<1x1xf32> to vector<1x32xf32>
    %360 = arith.subf %345, %359 : vector<1x32xf32>
    %cst_139 = arith.constant 9.99999997E-7 : f32
    %361 = vector.broadcast %cst_139 : f32 to vector<1x1xf32>
    %362 = arith.addf %358, %361 : vector<1x1xf32>
    %363 = math.rsqrt %362 : vector<1x1xf32>
    %364 = vector.broadcast %363 : vector<1x1xf32> to vector<1x32xf32>
    %365 = arith.mulf %360, %364 : vector<1x32xf32>
    %366 = arith.mulf %365, %346 : vector<1x32xf32>
    %367 = arith.addf %366, %347 : vector<1x32xf32>
    %368 = arith.addf %344, %367 : vector<1x32xf32>
    %cst_140 = arith.constant 5.000000e-01 : f32
    %369 = vector.broadcast %cst_140 : f32 to vector<1x32xf32>
    %370 = arith.mulf %368, %369 : vector<1x32xf32>
    %c0_141 = arith.constant 0 : index
    %c0_142 = arith.constant 0 : index
    %371 = vector.load %arg38[%c0_141, %c0_142] : memref<1x32xf32, #tpu.memory_space<vmem>>, vector<1x32xf32>
    %c0_143 = arith.constant 0 : index
    %c0_144 = arith.constant 0 : index
    %372 = vector.load %arg39[%c0_143, %c0_144] : memref<1x32xf32, #tpu.memory_space<vmem>>, vector<1x32xf32>
    %cst_145 = arith.constant dense<0.000000e+00> : vector<1xf32>
    %373 = vector.multi_reduction <add>, %370, %cst_145 [1] : vector<1x32xf32> to vector<1xf32>
    %374 = vector.shape_cast %373 : vector<1xf32> to vector<1x1xf32>
    %cst_146 = arith.constant 3.200000e+01 : f32
    %375 = vector.broadcast %cst_146 : f32 to vector<1x1xf32>
    %376 = arith.divf %374, %375 : vector<1x1xf32>
    %377 = vector.broadcast %376 : vector<1x1xf32> to vector<1x32xf32>
    %378 = arith.subf %370, %377 : vector<1x32xf32>
    %379 = arith.mulf %378, %378 : vector<1x32xf32>
    %cst_147 = arith.constant dense<0.000000e+00> : vector<1xf32>
    %380 = vector.multi_reduction <add>, %379, %cst_147 [1] : vector<1x32xf32> to vector<1xf32>
    %381 = vector.shape_cast %380 : vector<1xf32> to vector<1x1xf32>
    %cst_148 = arith.constant 3.200000e+01 : f32
    %382 = vector.broadcast %cst_148 : f32 to vector<1x1xf32>
    %383 = arith.divf %381, %382 : vector<1x1xf32>
    %384 = vector.broadcast %376 : vector<1x1xf32> to vector<1x32xf32>
    %385 = arith.subf %370, %384 : vector<1x32xf32>
    %cst_149 = arith.constant 9.99999974E-6 : f32
    %386 = vector.broadcast %cst_149 : f32 to vector<1x1xf32>
    %387 = arith.addf %383, %386 : vector<1x1xf32>
    %388 = math.rsqrt %387 : vector<1x1xf32>
    %389 = vector.broadcast %388 : vector<1x1xf32> to vector<1x32xf32>
    %390 = arith.mulf %385, %389 : vector<1x32xf32>
    %391 = arith.mulf %390, %371 : vector<1x32xf32>
    %392 = arith.addf %391, %372 : vector<1x32xf32>
    %c0_150 = arith.constant 0 : index
    %c0_151 = arith.constant 0 : index
    %393 = vector.load %arg40[%c0_150, %c0_151] : memref<32x10xf32, #tpu.memory_space<vmem>>, vector<32x10xf32>
    %cst_152 = arith.constant dense<0.000000e+00> : vector<1x10xf32>
    %394 = tpu.matmul %392, %393, %cst_152 {dimension_numbers = #tpu.dot_dimension_numbers<[1], [0], [0], [1], [0, 0, 1, 1], [], []>} : vector<1x32xf32>, vector<32x10xf32>, vector<1x10xf32> -> vector<1x10xf32>
    %c0_153 = arith.constant 0 : index
    %c0_154 = arith.constant 0 : index
    %395 = vector.load %arg41[%c0_153, %c0_154] : memref<1x10xf32, #tpu.memory_space<vmem>>, vector<1x10xf32>
    %396 = arith.addf %394, %395 : vector<1x10xf32>
    %c0_155 = arith.constant 0 : index
    %c0_156 = arith.constant 0 : index
    %c0_157 = arith.constant 0 : index
    %397 = vector.load %arg42[%c0_155, %c0_156, %c0_157] : memref<1x1x10xf32, #tpu.memory_space<vmem>>, vector<1x1x10xf32>
    %398 = vector.shape_cast %397 : vector<1x1x10xf32> to vector<1x10xf32>
    %399 = vector.shape_cast %396 : vector<1x10xf32> to vector<1x1x10xf32>
    tpu.vector_store %arg42[%c0_155, %c0_156, %c0_157], %399 {strides = array<i32>} : memref<1x1x10xf32, #tpu.memory_space<vmem>>, vector<1x1x10xf32>,
    return
  }
  func.func @transform_0(%arg0: i32) -> (i32, i32, i32) {
    %c0_i32 = arith.constant 0 : i32
    %c0_i32_0 = arith.constant 0 : i32
    %c0_i32_1 = arith.constant 0 : i32
    return %arg0, %c0_i32, %c0_i32_0 : i32, i32, i32
  }
  func.func @transform_1(%arg0: i32) -> (i32, i32) {
    %c0_i32 = arith.constant 0 : i32
    %c0_i32_0 = arith.constant 0 : i32
    %c0_i32_1 = arith.constant 0 : i32
    return %c0_i32, %c0_i32_0 : i32, i32
  }
  func.func @transform_2(%arg0: i32) -> (i32, i32) {
    %c0_i32 = arith.constant 0 : i32
    %c0_i32_0 = arith.constant 0 : i32
    %c0_i32_1 = arith.constant 0 : i32
    return %c0_i32, %c0_i32_0 : i32, i32
  }
  func.func @transform_3(%arg0: i32) -> (i32, i32) {
    %c0_i32 = arith.constant 0 : i32
    %c0_i32_0 = arith.constant 0 : i32
    %c0_i32_1 = arith.constant 0 : i32
    return %c0_i32, %c0_i32_0 : i32, i32
  }
  func.func @transform_4(%arg0: i32) -> (i32, i32) {
    %c0_i32 = arith.constant 0 : i32
    %c0_i32_0 = arith.constant 0 : i32
    %c0_i32_1 = arith.constant 0 : i32
    return %c0_i32, %c0_i32_0 : i32, i32
  }
  func.func @transform_5(%arg0: i32) -> (i32, i32) {
    %c0_i32 = arith.constant 0 : i32
    %c0_i32_0 = arith.constant 0 : i32
    %c0_i32_1 = arith.constant 0 : i32
    return %c0_i32, %c0_i32_0 : i32, i32
  }
  func.func @transform_6(%arg0: i32) -> (i32, i32) {
    %c0_i32 = arith.constant 0 : i32
    %c0_i32_0 = arith.constant 0 : i32
    %c0_i32_1 = arith.constant 0 : i32
    return %c0_i32, %c0_i32_0 : i32, i32
  }
  func.func @transform_7(%arg0: i32) -> (i32, i32) {
    %c0_i32 = arith.constant 0 : i32
    %c0_i32_0 = arith.constant 0 : i32
    %c0_i32_1 = arith.constant 0 : i32
    return %c0_i32, %c0_i32_0 : i32, i32
  }
  func.func @transform_8(%arg0: i32) -> (i32, i32) {
    %c0_i32 = arith.constant 0 : i32
    %c0_i32_0 = arith.constant 0 : i32
    %c0_i32_1 = arith.constant 0 : i32
    return %c0_i32, %c0_i32_0 : i32, i32
  }
  func.func @transform_9(%arg0: i32) -> (i32, i32) {
    %c0_i32 = arith.constant 0 : i32
    %c0_i32_0 = arith.constant 0 : i32
    %c0_i32_1 = arith.constant 0 : i32
    return %c0_i32, %c0_i32_0 : i32, i32
  }
  func.func @transform_10(%arg0: i32) -> (i32, i32) {
    %c0_i32 = arith.constant 0 : i32
    %c0_i32_0 = arith.constant 0 : i32
    %c0_i32_1 = arith.constant 0 : i32
    return %c0_i32, %c0_i32_0 : i32, i32
  }
  func.func @transform_11(%arg0: i32) -> (i32, i32) {
    %c0_i32 = arith.constant 0 : i32
    %c0_i32_0 = arith.constant 0 : i32
    %c0_i32_1 = arith.constant 0 : i32
    return %c0_i32, %c0_i32_0 : i32, i32
  }
  func.func @transform_12(%arg0: i32) -> (i32, i32) {
    %c0_i32 = arith.constant 0 : i32
    %c0_i32_0 = arith.constant 0 : i32
    %c0_i32_1 = arith.constant 0 : i32
    return %c0_i32, %c0_i32_0 : i32, i32
  }
  func.func @transform_13(%arg0: i32) -> (i32, i32) {
    %c0_i32 = arith.constant 0 : i32
    %c0_i32_0 = arith.constant 0 : i32
    %c0_i32_1 = arith.constant 0 : i32
    return %c0_i32, %c0_i32_0 : i32, i32
  }
  func.func @transform_14(%arg0: i32) -> (i32, i32) {
    %c0_i32 = arith.constant 0 : i32
    %c0_i32_0 = arith.constant 0 : i32
    %c0_i32_1 = arith.constant 0 : i32
    return %c0_i32, %c0_i32_0 : i32, i32
  }
  func.func @transform_15(%arg0: i32) -> (i32, i32) {
    %c0_i32 = arith.constant 0 : i32
    %c0_i32_0 = arith.constant 0 : i32
    %c0_i32_1 = arith.constant 0 : i32
    return %c0_i32, %c0_i32_0 : i32, i32
  }
  func.func @transform_16(%arg0: i32) -> (i32, i32) {
    %c0_i32 = arith.constant 0 : i32
    %c0_i32_0 = arith.constant 0 : i32
    %c0_i32_1 = arith.constant 0 : i32
    return %c0_i32, %c0_i32_0 : i32, i32
  }
  func.func @transform_17(%arg0: i32) -> (i32, i32) {
    %c0_i32 = arith.constant 0 : i32
    %c0_i32_0 = arith.constant 0 : i32
    %c0_i32_1 = arith.constant 0 : i32
    return %c0_i32, %c0_i32_0 : i32, i32
  }
  func.func @transform_18(%arg0: i32) -> (i32, i32) {
    %c0_i32 = arith.constant 0 : i32
    %c0_i32_0 = arith.constant 0 : i32
    %c0_i32_1 = arith.constant 0 : i32
    return %c0_i32, %c0_i32_0 : i32, i32
  }
  func.func @transform_19(%arg0: i32) -> (i32, i32) {
    %c0_i32 = arith.constant 0 : i32
    %c0_i32_0 = arith.constant 0 : i32
    %c0_i32_1 = arith.constant 0 : i32
    return %c0_i32, %c0_i32_0 : i32, i32
  }
  func.func @transform_20(%arg0: i32) -> (i32, i32) {
    %c0_i32 = arith.constant 0 : i32
    %c0_i32_0 = arith.constant 0 : i32
    %c0_i32_1 = arith.constant 0 : i32
    return %c0_i32, %c0_i32_0 : i32, i32
  }
  func.func @transform_21(%arg0: i32) -> (i32, i32) {
    %c0_i32 = arith.constant 0 : i32
    %c0_i32_0 = arith.constant 0 : i32
    %c0_i32_1 = arith.constant 0 : i32
    return %c0_i32, %c0_i32_0 : i32, i32
  }
  func.func @transform_22(%arg0: i32) -> (i32, i32) {
    %c0_i32 = arith.constant 0 : i32
    %c0_i32_0 = arith.constant 0 : i32
    %c0_i32_1 = arith.constant 0 : i32
    return %c0_i32, %c0_i32_0 : i32, i32
  }
  func.func @transform_23(%arg0: i32) -> (i32, i32) {
    %c0_i32 = arith.constant 0 : i32
    %c0_i32_0 = arith.constant 0 : i32
    %c0_i32_1 = arith.constant 0 : i32
    return %c0_i32, %c0_i32_0 : i32, i32
  }
  func.func @transform_24(%arg0: i32) -> (i32, i32) {
    %c0_i32 = arith.constant 0 : i32
    %c0_i32_0 = arith.constant 0 : i32
    %c0_i32_1 = arith.constant 0 : i32
    return %c0_i32, %c0_i32_0 : i32, i32
  }
  func.func @transform_25(%arg0: i32) -> (i32, i32) {
    %c0_i32 = arith.constant 0 : i32
    %c0_i32_0 = arith.constant 0 : i32
    %c0_i32_1 = arith.constant 0 : i32
    return %c0_i32, %c0_i32_0 : i32, i32
  }
  func.func @transform_26(%arg0: i32) -> (i32, i32) {
    %c0_i32 = arith.constant 0 : i32
    %c0_i32_0 = arith.constant 0 : i32
    %c0_i32_1 = arith.constant 0 : i32
    return %c0_i32, %c0_i32_0 : i32, i32
  }
  func.func @transform_27(%arg0: i32) -> (i32, i32) {
    %c0_i32 = arith.constant 0 : i32
    %c0_i32_0 = arith.constant 0 : i32
    %c0_i32_1 = arith.constant 0 : i32
    return %c0_i32, %c0_i32_0 : i32, i32
  }
  func.func @transform_28(%arg0: i32) -> (i32, i32) {
    %c0_i32 = arith.constant 0 : i32
    %c0_i32_0 = arith.constant 0 : i32
    %c0_i32_1 = arith.constant 0 : i32
    return %c0_i32, %c0_i32_0 : i32, i32
  }
  func.func @transform_29(%arg0: i32) -> (i32, i32) {
    %c0_i32 = arith.constant 0 : i32
    %c0_i32_0 = arith.constant 0 : i32
    %c0_i32_1 = arith.constant 0 : i32
    return %c0_i32, %c0_i32_0 : i32, i32
  }
  func.func @transform_30(%arg0: i32) -> (i32, i32) {
    %c0_i32 = arith.constant 0 : i32
    %c0_i32_0 = arith.constant 0 : i32
    %c0_i32_1 = arith.constant 0 : i32
    return %c0_i32, %c0_i32_0 : i32, i32
  }
  func.func @transform_31(%arg0: i32) -> (i32, i32) {
    %c0_i32 = arith.constant 0 : i32
    %c0_i32_0 = arith.constant 0 : i32
    %c0_i32_1 = arith.constant 0 : i32
    return %c0_i32, %c0_i32_0 : i32, i32
  }
  func.func @transform_32(%arg0: i32) -> (i32, i32) {
    %c0_i32 = arith.constant 0 : i32
    %c0_i32_0 = arith.constant 0 : i32
    %c0_i32_1 = arith.constant 0 : i32
    return %c0_i32, %c0_i32_0 : i32, i32
  }
  func.func @transform_33(%arg0: i32) -> (i32, i32) {
    %c0_i32 = arith.constant 0 : i32
    %c0_i32_0 = arith.constant 0 : i32
    %c0_i32_1 = arith.constant 0 : i32
    return %c0_i32, %c0_i32_0 : i32, i32
  }
  func.func @transform_34(%arg0: i32) -> (i32, i32) {
    %c0_i32 = arith.constant 0 : i32
    %c0_i32_0 = arith.constant 0 : i32
    %c0_i32_1 = arith.constant 0 : i32
    return %c0_i32, %c0_i32_0 : i32, i32
  }
  func.func @transform_35(%arg0: i32) -> (i32, i32) {
    %c0_i32 = arith.constant 0 : i32
    %c0_i32_0 = arith.constant 0 : i32
    %c0_i32_1 = arith.constant 0 : i32
    return %c0_i32, %c0_i32_0 : i32, i32
  }
  func.func @transform_36(%arg0: i32) -> (i32, i32) {
    %c0_i32 = arith.constant 0 : i32
    %c0_i32_0 = arith.constant 0 : i32
    %c0_i32_1 = arith.constant 0 : i32
    return %c0_i32, %c0_i32_0 : i32, i32
  }
  func.func @transform_37(%arg0: i32) -> (i32, i32) {
    %c0_i32 = arith.constant 0 : i32
    %c0_i32_0 = arith.constant 0 : i32
    %c0_i32_1 = arith.constant 0 : i32
    return %c0_i32, %c0_i32_0 : i32, i32
  }
  func.func @transform_38(%arg0: i32) -> (i32, i32) {
    %c0_i32 = arith.constant 0 : i32
    %c0_i32_0 = arith.constant 0 : i32
    %c0_i32_1 = arith.constant 0 : i32
    return %c0_i32, %c0_i32_0 : i32, i32
  }
  func.func @transform_39(%arg0: i32) -> (i32, i32) {
    %c0_i32 = arith.constant 0 : i32
    %c0_i32_0 = arith.constant 0 : i32
    %c0_i32_1 = arith.constant 0 : i32
    return %c0_i32, %c0_i32_0 : i32, i32
  }
  func.func @transform_40(%arg0: i32) -> (i32, i32) {
    %c0_i32 = arith.constant 0 : i32
    %c0_i32_0 = arith.constant 0 : i32
    %c0_i32_1 = arith.constant 0 : i32
    return %c0_i32, %c0_i32_0 : i32, i32
  }
  func.func @transform_41(%arg0: i32) -> (i32, i32, i32) {
    %c0_i32 = arith.constant 0 : i32
    %c0_i32_0 = arith.constant 0 : i32
    %c0_i32_1 = arith.constant 0 : i32
    return %arg0, %c0_i32, %c0_i32_0 : i32, i32, i32
  }
}

</mosaic_0001>

<bundles_post_ra>
// kernel: forward.1
= control target key start
LH: loop header
LB: loop body
LE: loop exit
PB: predicated region body
PF: predicated region fallthrough
CT: control target
= control target key end

     0   :  { %s3077_s6 = smov 1   ;;  %s3078_s10 = smov 2   ;;  %s3892_s0 = inlined_call_operand.smem [shape: u32[42], index: -1, kind: input, shape index: {}] }
   0x1   :  { %s3134_s5 = sld [smem:[%s3892_s0]]   ;;  %s3079_s14 = smov 3  }
   0x2   :  { %s3139_s9 = sld [smem:[%s3892_s0 + %s3077_s6]]   ;;  %s3080_s18 = smov 4  }
   0x3   :  { %s3144_s13 = sld [smem:[%s3892_s0 + %s3078_s10]]   ;;  %s3081_s22 = smov 5  }
   0x4   :  { %s3149_s17 = sld [smem:[%s3892_s0 + %s3079_s14]]   ;;  %s3082_s26 = smov 6  }
   0x5   :  { %s3154_s21 = sld [smem:[%s3892_s0 + %s3080_s18]]   ;;  %s3083_s30 = smov 7  }
   0x6   :  { %s3159_s25 = sld [smem:[%s3892_s0 + %s3081_s22]]   ;;  %s3084_s4 = smov 8  }
   0x7   :  { %3926 = sst [smem:[#allocation5_spill]] %s3134_s5  ;;  %s3085_s10 = smov 9  }
   0x8   :  { %3927 = sst [smem:[#allocation6_spill]] %s3139_s9  ;;  %s3086_s15 = smov 10  }
   0x9   :  { %3928 = sst [smem:[#allocation7_spill]] %s3144_s13  ;;  %s3087_s20 = smov 11  }
   0xa   :  { %s3164_s29 = sld [smem:[%s3892_s0 + %s3082_s26]]   ;;  %s3088_s26 = smov 12  }
   0xb   :  { %s3169_s3 = sld [smem:[%s3892_s0 + %s3083_s30]]   ;;  %s3089_s1 = smov 13  }
   0xc   :  { %s3174_s8 = sld [smem:[%s3892_s0 + %s3084_s4]]   ;;  %s3090_s7 = smov 14  }
   0xd   :  { %s3179_s14 = sld [smem:[%s3892_s0 + %s3085_s10]]   ;;  %s3092_s22 = smov 16  }
   0xe   :  { %s3184_s19 = sld [smem:[%s3892_s0 + %s3086_s15]]   ;;  %s3091_s15 = smov 15  }
   0xf   :  { %s3189_s24 = sld [smem:[%s3892_s0 + %s3087_s20]]   ;;  %s3093_s28 = smov 17  }
  0x10   :  { %s3194_s30 = sld [smem:[%s3892_s0 + %s3088_s26]]  }
  0x11   :  { %3929 = sst [smem:[#allocation8_spill]] %s3169_s3 }
  0x12   :  { %3930 = sst [smem:[#allocation9_spill]] %s3174_s8 }
  0x13   :  { %s3199_s6 = sld [smem:[%s3892_s0 + %s3089_s1]]  }
  0x14   :  { %3931 = sst [smem:[#allocation10_spill]] %s3184_s19 }
  0x15   :  { %s3204_s12 = sld [smem:[%s3892_s0 + %s3090_s7]]   ;;  %s3094_s7 = smov 18  }
  0x16   :  { %s3209_s20 = sld [smem:[%s3892_s0 + %s3091_s15]]   ;;  %s3095_s15 = smov 19  }
  0x17   :  { %s3214_s27 = sld [smem:[%s3892_s0 + %s3092_s22]]   ;;  %s3096_s22 = smov 20  }
  0x18   :  { %s3219_s4 = sld [smem:[%s3892_s0 + %s3093_s28]]   ;;  %s3097_s28 = smov 21  }
  0x19   :  { %3932 = sst [smem:[#allocation11_spill]] %s3199_s6 }
  0x1a   :  { %s3224_s19 = sld [smem:[%s3892_s0 + %s3094_s7]]   ;;  %s3098_s7 = smov 22  }
  0x1b   :  { %3933 = sst [smem:[#allocation12_spill]] %s3204_s12 }
  0x1c   :  { %3934 = sst [smem:[#allocation13_spill]] %s3209_s20 }
  0x1d   :  { %3935 = sst [smem:[#allocation14_spill]] %s3214_s27 }
  0x1e   :  { %3936 = sst [smem:[#allocation15_spill]] %s3219_s4 }
  0x1f   :  { %s3229_s20 = sld [smem:[%s3892_s0 + %s3095_s15]]   ;;  %s3099_s15 = smov 23  }
  0x20   :  { %3937 = sst [smem:[#allocation16_spill]] %s3224_s19 }
  0x21   :  { %s3234_s27 = sld [smem:[%s3892_s0 + %s3096_s22]]   ;;  %s3100_s22 = smov 24  }
  0x22   :  { %s3239_s4 = sld [smem:[%s3892_s0 + %s3097_s28]]   ;;  %s3101_s28 = smov 25  }
  0x23   :  { %s3244_s19 = sld [smem:[%s3892_s0 + %s3098_s7]]   ;;  %s3102_s7 = smov 26  }
  0x25   :  { %3938 = sst [smem:[#allocation17_spill]] %s3229_s20 }
  0x26   :  { %s3249_s20 = sld [smem:[%s3892_s0 + %s3099_s15]]   ;;  %s3103_s15 = smov 27  }
  0x27   :  { %3939 = sst [smem:[#allocation18_spill]] %s3234_s27 }
  0x28   :  { %3940 = sst [smem:[#allocation19_spill]] %s3239_s4 }
  0x29   :  { %3941 = sst [smem:[#allocation20_spill]] %s3244_s19 }
  0x2a   :  { %s3254_s27 = sld [smem:[%s3892_s0 + %s3100_s22]]   ;;  %s3104_s22 = smov 28  }
  0x2b   :  { %s3259_s4 = sld [smem:[%s3892_s0 + %s3101_s28]]   ;;  %s3105_s28 = smov 29  }
  0x2c   :  { %3942 = sst [smem:[#allocation21_spill]] %s3249_s20 }
  0x2d   :  { %s3264_s19 = sld [smem:[%s3892_s0 + %s3102_s7]]   ;;  %s3106_s7 = smov 30  }
  0x2e   :  { %s3269_s20 = sld [smem:[%s3892_s0 + %s3103_s15]]   ;;  %s3107_s15 = smov 31  }
  0x30   :  { %3943 = sst [smem:[#allocation22_spill]] %s3254_s27 }
  0x31   :  { %3944 = sst [smem:[#allocation23_spill]] %s3259_s4 }
  0x32   :  { %s3274_s27 = sld [smem:[%s3892_s0 + %s3104_s22]]   ;;  %s3108_s22 = smov 32  }
  0x33   :  { %3945 = sst [smem:[#allocation24_spill]] %s3264_s19 }
  0x34   :  { %3946 = sst [smem:[#allocation25_spill]] %s3269_s20 }
  0x35   :  { %s3279_s4 = sld [smem:[%s3892_s0 + %s3105_s28]]   ;;  %s3109_s28 = smov 33  }
  0x36   :  { %s3284_s19 = sld [smem:[%s3892_s0 + %s3106_s7]]   ;;  %s3110_s7 = smov 34  }
  0x37   :  { %s3289_s20 = sld [smem:[%s3892_s0 + %s3107_s15]]   ;;  %s3111_s15 = smov 35  }
  0x38   :  { %3947 = sst [smem:[#allocation26_spill]] %s3274_s27 }
  0x39   :  { %s3294_s27 = sld [smem:[%s3892_s0 + %s3108_s22]]   ;;  %s3112_s22 = smov 36  }
  0x3b   :  { %3948 = sst [smem:[#allocation27_spill]] %s3279_s4 }
  0x3c   :  { %3949 = sst [smem:[#allocation28_spill]] %s3284_s19 }
  0x3d   :  { %3950 = sst [smem:[#allocation29_spill]] %s3289_s20 }
  0x3e   :  { %s3299_s4 = sld [smem:[%s3892_s0 + %s3109_s28]]   ;;  %s3113_s28 = smov 37  }
  0x3f   :  { %3951 = sst [smem:[#allocation30_spill]] %s3294_s27 }
  0x40   :  { %s3304_s19 = sld [smem:[%s3892_s0 + %s3110_s7]]   ;;  %s3114_s7 = smov 38  }
  0x41   :  { %s3309_s20 = sld [smem:[%s3892_s0 + %s3111_s15]]   ;;  %s3115_s15 = smov 39  }
  0x42   :  { %s3314_s27 = sld [smem:[%s3892_s0 + %s3112_s22]]   ;;  %s3116_s22 = smov 40  }
  0x44   :  { %3952 = sst [smem:[#allocation31_spill]] %s3299_s4 }
  0x45   :  { %s3319_s4 = sld [smem:[%s3892_s0 + %s3113_s28]]   ;;  %s3117_s28 = smov 41  }
  0x46   :  { %3953 = sst [smem:[#allocation32_spill]] %s3304_s19 }
  0x47   :  { %3954 = sst [smem:[#allocation33_spill]] %s3309_s20 }
  0x48   :  { %3955 = sst [smem:[#allocation34_spill]] %s3314_s27 }
  0x49   :  { %s3324_s19 = sld [smem:[%s3892_s0 + %s3114_s7]]  }
  0x4a   :  { %s3329_s20 = sld [smem:[%s3892_s0 + %s3115_s15]]  }
  0x4b   :  { %3956 = sst [smem:[#allocation35_spill]] %s3319_s4 }
  0x4c   :  { %s3334_s27 = sld [smem:[%s3892_s0 + %s3116_s22]]  }
  0x4d   :  { %s3339_s4 = sld [smem:[%s3892_s0 + %s3117_s28]]  }
  0x4e   :  { %88 = vsyncpa [#allocation3], 0 }
  0x4f   :  { %90 = vsyncpa [#allocation3 + $0x1], 0  ;;  %s3341_s7 = smov 0   ;;  %s3343_s10 = smov 0  }
  0x50   :  { %s3345_s11 = smov 0   ;;  %s3347_s15 = smov 0  }
  0x51 LB: > { %s3957_s6 = sld [smem:[#allocation11_spill]]  ;;  %s3362_s0 = sadd.s32 4294967295, %s3075_s15   ;;  %s3071_s11 = sphi %s3345_s11, %s3999_s11   ;;  %s3067_s10 = sphi %s3343_s10, %s3998_s10   ;;  %s3063_s7 = sphi %s3341_s7, %s3997_s7   ;;  %s3075_s15 = sphi %s3347_s15, %s4000_s15  }
  0x52   : > { %s3958_s13 = sld [smem:[#allocation7_spill]]  ;;  %s2709_s16 = sadd.s32 4294967294, %s3075_s15  }
  0x53   : > { %s3959_s9 = sld [smem:[#allocation6_spill]]  ;;  %s3366_s18 = sadd.s32 1, %s3075_s15  }
  0x54   : > { %s969_s22 = sadd.s32 1, %s3071_s11  ;;  %s966_s23 = ssub.s32 %s3075_s15, %s3366_s18 }
  0x55   : > { %p979_p0 = scmp.ne.s32.totalorder %s3071_s11, %s3067_s10  ;;  %p967_p1 = scmp.eq.s32.totalorder %s966_s23, 0 }
  0x56   : > { %p980_p2 = scmp.eq.s32.totalorder %s3362_s0, 1  ;;  %p985_p3 = scmp.ne.s32.totalorder %s3067_s10, %s3063_s7 }
  0x57   : > { %p986_p4 = scmp.eq.s32.totalorder %s2709_s16, 1  ;;  %p2712_p7 = scmp.ge.s32.totalorder %s3075_s15, 1 }
  0x58   : > { %s3377_s26 = scalar_select %p967_p1, %s3071_s11, %s969_s22  }
  0x59   : > { %p3379_p5 = por %p980_p2, %p979_p0  ;;  %p3383_p6 = por %p986_p4, %p985_p3 }
  0x5a   : > { %p1132_p8 = scmp.lt.s32.totalorder %s3075_s15, 3 }
  0x5c   : > { %p1133_p9 = pnand %p2712_p7, %p1132_p8 }
  0x5d   : > { %s3962_s5 = sld [smem:[#allocation5_spill]] (!%p1133_p9)  ;;  %p1231_p10 = scmp.lt.s32.totalorder (!%p1133_p9), %s3362_s0, 1 }
  0x5e   : > { %1136 = sbr.rel (%p1133_p9) target bundleno = 4876 (0x130c), region = 184  ;;  %s3905_s23 = smov (!%p1133_p9), 80  }
  0x5f   : > { %s3970_s8 = sld [smem:[#allocation9_spill]] (!%p1133_p9) }
  0x60   : > { %s3971_s3 = sld [smem:[#allocation8_spill]] (!%p1133_p9) }
  0x61   : > { %s3972_s12 = sld [smem:[#allocation12_spill]] (!%p1133_p9) }
  0x63   : > { %v1250_v0 = vld [vmem:[%s3959_s9 + $0x38] sm:$0xff]  ;;  %v1249_v1 = vld [vmem:[%s3959_s9 + $0x30] sm:$0xff]  ;;  %v1248_v2 = vld [vmem:[%s3959_s9 + $0x28] sm:$0xff]  ;;  %s1232_s2 = scalar_select %p1231_p10, %s3362_s0, 1  ;;  %vm1251_vm0 = vcmask 523264   ;;  %vm1479_vm1 = vcmask 130048  }
  0x64   : > { %1281 = vmatpush.msra.mxu0 %v1250_v0  ;;  %v1247_v3 = vld [vmem:[%s3959_s9 + $0x20] sm:$0xff]  ;;  %v1246_v4 = vld [vmem:[%s3959_s9 + $0x18] sm:$0xff]  ;;  %v1245_v5 = vld [vmem:[%s3959_s9 + $0x10] sm:$0xff]  ;;  %vm1481_vm2 = vcmask 261120   ;;  %vm1483_vm3 = vcmask 392192   ;;  %vm1486_vm4 = vcmask 654336  }
  0x65   : > { %s2746_s16 = smul.u32 56, %s1232_s2  ;;  %v1244_v6 = vld [vmem:[%s3959_s9 + $0x8] sm:$0xff]  ;;  %v1243_v7 = vld [vmem:[%s3959_s9] sm:$0xff]  ;;  %v1333_v10 = vld [vmem:[%s3958_s13 + $0x78] sm:$0xff]  ;;  %s3903_s2 = smov 48   ;;  %vm1488_vm5 = vcmask 785408  }
  0x66   : > { %1282 = vmatpush.msra.mxu0 %v1249_v1  ;;  %v1332_v11 = vld [vmem:[%s3958_s13 + $0x70] sm:$0xff]  ;;  %1334 = vmatpush.msra.mxu1 %v1333_v10  ;;  %v1331_v12 = vld [vmem:[%s3958_s13 + $0x68] sm:$0xff]  ;;  %v1330_v13 = vld [vmem:[%s3958_s13 + $0x60] sm:$0xff]  ;;  %s3967_s9 = smov 64   ;;  %vm1490_vm6 = vcmask 916480   ;;  %vm1662_vm7 = vcmask 1040384  }
  0x67   : > { %s3399_s22 = scalar_lea.vmem %s3962_s5, %s2746_s16  ;;  %v1329_v15 = vld [vmem:[%s3958_s13 + $0x58] sm:$0xff]  ;;  %v1328_v16 = vld [vmem:[%s3958_s13 + $0x50] sm:$0xff]  ;;  %v1327_v17 = vld [vmem:[%s3958_s13 + $0x48] sm:$0xff]  ;;  %s3913_s16 = smov 16   ;;  %vm1665_vm8 = vcmask 1041408   ;;  %vm1668_vm9 = vcmask 1042432  }
  0x68   : > { %1283 = vmatpush.msra.mxu0 %v1248_v2  ;;  %v1236_v8 = vld [vmem:[%s3399_s22] sm:$0xff]  ;;  %v1237_v9 = vld [vmem:[%s3399_s22 + $0x8] sm:$0xff]  ;;  %1335 = vmatpush.msra.mxu1 %v1332_v11  ;;  %v1238_v14 = vld [vmem:[%s3399_s22 + $0x10] sm:$0xff]  ;;  %s3966_s5 = smov 96   ;;  %vm1764_vm10 = vcmask 259072   ;;  %vm1840_vm15 = vcmask 1045504  }
  0x69   : > { %v1326_v18 = vld [vmem:[%s3958_s13 + $0x40] sm:$0xff]  ;;  %v1239_v19 = vld [vmem:[%s3399_s22 + $0x18] sm:$0xff]  ;;  %v1324_v21 = vld [vmem:[%s3958_s13 + $0x30] sm:$0xff] }
  0x6a   : > { %1284 = vmatpush.msra.mxu0 %v1247_v3  ;;  %1336 = vmatpush.msra.mxu1 %v1331_v12  ;;  %v1325_v20 = vld [vmem:[%s3958_s13 + $0x38] sm:$0xff]  ;;  %v1323_v22 = vld [vmem:[%s3958_s13 + $0x28] sm:$0xff]  ;;  %v1322_v23 = vld [vmem:[%s3958_s13 + $0x20] sm:$0xff] }
  0x6b   : > { %v1240_v24 = vld [vmem:[%s3399_s22 + $0x20] sm:$0xff]  ;;  %v1321_v25 = vld [vmem:[%s3958_s13 + $0x18] sm:$0xff]  ;;  %v1320_v26 = vld [vmem:[%s3958_s13 + $0x10] sm:$0xff] }
  0x6c   : > { %1285 = vmatpush.msra.mxu0 %v1246_v4  ;;  %1337 = vmatpush.msra.mxu1 %v1330_v13  ;;  %v1241_v27 = vld [vmem:[%s3399_s22 + $0x28] sm:$0xff]  ;;  %v1318_v29 = vld [vmem:[%s3958_s13] sm:$0xff] }
  0x6d   : > { %v1319_v28 = vld [vmem:[%s3958_s13 + $0x8] sm:$0xff]  ;;  %v3431_v55 = vld [vmem:[%s3149_s17] ss:$0 sm:$0xff]  ;;  %s3968_s13 = smov 16  }
  0x6e   : > { %1286 = vmatpush.msra.mxu0 %v1245_v5  ;;  %1338 = vmatpush.msra.mxu1 %v1329_v15  ;;  %v3435_v62 = vld [vmem:[%s3154_s21] ss:$0 sm:$0xff] }
  0x70   : > { %1287 = vmatpush.msra.mxu0 %v1244_v6  ;;  %1339 = vmatpush.msra.mxu1 %v1328_v16 }
  0x72   : > { %1288 = vmatpush.msra.mxu0 %v1243_v7  ;;  %1340 = vmatpush.msra.mxu1 %v1327_v17 }
  0x73   : > { %2714 = vmatmul.msk.f32.vlgmr.msra.gmra.mxu0 %vm1251_vm0, %v1236_v8 }
  0x74   : > { %1341 = vmatpush.msra.mxu1 %v1326_v18 }
  0x76   : > { %1342 = vmatpush.msra.mxu1 %v1325_v20 }
  0x78   : > { %1343 = vmatpush.msra.mxu1 %v1324_v21 }
  0x7a   : > { %1344 = vmatpush.msra.mxu1 %v1323_v22 }
  0x7b   : > { %2715 = vmatmul.msk.f32.gmra.mxu0 %vm1251_vm0, %v1237_v9 }
  0x7c   : > { %1345 = vmatpush.msra.mxu1 %v1322_v23 }
  0x7e   : > { %1346 = vmatpush.msra.mxu1 %v1321_v25 }
  0x80   : > { %1347 = vmatpush.msra.mxu1 %v1320_v26 }
  0x82   : > { %1348 = vmatpush.msra.mxu1 %v1319_v28 }
  0x83   : > { %2716 = vmatmul.msk.f32.gmra.mxu0 %vm1251_vm0, %v1238_v14 }
  0x84   : > { %1349 = vmatpush.msra.mxu1 %v1318_v29 }
  0x8b   : > { %2717 = vmatmul.msk.f32.gmra.mxu0 %vm1251_vm0, %v1239_v19 }
  0x93   : > { %2718 = vmatmul.msk.f32.gmra.mxu0 %vm1251_vm0, %v1240_v24 }
  0x9b   : > { %2719 = vmatmul.msk.f32.gmra.mxu0 %vm1251_vm0, %v1241_v27 }
  0xf0   : > { %v1290_v30 = vpop.f32.mrf.mxu0 }
  0xf1   : > { %v1311_v31 = vmul.f32 %v1290_v30, %v1290_v30 }
  0xf3   : > { %1350 = vmatmul.f32.vlgmr.msra.gmra.mxu1 %v1311_v31 }
  0xf8   : > { %v1293_v32 = vpop.f32.mrf.mxu0 }
  0xf9   : > { %v1312_v33 = vmul.f32 %v1293_v32, %v1293_v32 }
  0xfb   : > { %1353 = vmatmul.f32.gmra.mxu1 %v1312_v33 }
 0x100   : > { %v1296_v34 = vpop.f32.mrf.mxu0 }
 0x101   : > { %v1313_v35 = vmul.f32 %v1296_v34, %v1296_v34 }
 0x103   : > { %1356 = vmatmul.f32.gmra.mxu1 %v1313_v35 }
 0x108   : > { %v1299_v36 = vpop.f32.mrf.mxu0 }
 0x109   : > { %v1314_v37 = vmul.f32 %v1299_v36, %v1299_v36 }
 0x10b   : > { %1359 = vmatmul.f32.gmra.mxu1 %v1314_v37 }
 0x110   : > { %v1302_v38 = vpop.f32.mrf.mxu0 }
 0x111   : > { %v1315_v39 = vmul.f32 %v1302_v38, %v1302_v38 }
 0x113   : > { %1362 = vmatmul.f32.gmra.mxu1 %v1315_v39 }
 0x118   : > { %v1305_v40 = vpop.f32.mrf.mxu0 }
 0x119   : > { %v1316_v41 = vmul.f32 %v1305_v40, %v1305_v40 }
 0x11b   : > { %1365 = vmatmul.f32.gmra.mxu1 %v1316_v41 }
 0x170   : > { %v1351_v42 = vpop.f32.mrf.mxu1 }
 0x171   : > { %v1371_v43 = vmax.f32 %v1351_v42, 1e-10 }
 0x173   : > { %2957 = vlog2.f32 %v1371_v43 }
 0x178   : > { %v1354_v44 = vpop.f32.mrf.mxu1 }
 0x179   : > { %v1372_v45 = vmax.f32 %v1354_v44, 1e-10  ;;  %v2958_v46 = vpop.eup %2957 }
 0x17a   : > { %v1378_v47 = vmul.f32 0.6931472, %v2958_v46 }
 0x17b   : > { %2959 = vlog2.f32 %v1372_v45 }
 0x17c   : > { %v1389_v52 = vmul.f32 0.4342945, %v1378_v47 }
 0x17e   : > { %v1395_v54 = vmul.f32 10.0, %v1389_v52 }
 0x180   : > { %v1357_v48 = vpop.f32.mrf.mxu1  ;;  %v1405_v61 = vmul.f32 %v3431_v55, %v1395_v54 }
 0x181   : > { %v2960_v49 = vpop.eup %2959  ;;  %v1373_v50 = vmax.f32 %v1357_v48, 1e-10 }
 0x182   : > { %v1380_v51 = vmul.f32 0.6931472, %v2960_v49  ;;  %v3439_v2 = vadd.f32 %v3435_v62, %v1405_v61 }
 0x183   : > { %2961 = vlog2.f32 %v1373_v50 }
 0x184   : > { %v1390_v53 = vmul.f32 0.4342945, %v1380_v51  ;;  %v1438_v10 = vrot.slane %v3439_v2, 5  ;;  %v1434_v30 = vrot.slane %v3439_v2, 4  ;;  %v1422_v45 = vrot.slane %v3439_v2, 1 }
 0x186   : > { %v1396_v56 = vmul.f32 10.0, %v1390_v53 }
 0x188   : > { %v1360_v57 = vpop.f32.mrf.mxu1  ;;  %v1406_v63 = vmul.f32 %v3431_v55, %v1396_v56 }
 0x189   : > { %v2962_v58 = vpop.eup %2961  ;;  %v1374_v59 = vmax.f32 %v1360_v57, 1e-10 }
 0x18a   : > { %v1382_v60 = vmul.f32 0.6931472, %v2962_v58  ;;  %v3442_v3 = vadd.f32 %v3435_v62, %v1406_v63 }
 0x18b   : > { %2963 = vlog2.f32 %v1374_v59  ;;  %v1426_v59 = vrot.slane %v3439_v2, 2 }
 0x18c   : > { %v1391_v0 = vmul.f32 0.4342945, %v1382_v60  ;;  %v1459_v11 = vrot.slane %v3442_v3, 3  ;;  %v1451_v12 = vrot.slane %v3442_v3, 1  ;;  %v1463_v31 = vrot.slane %v3442_v3, 4 }
 0x18d   : > { %v1455_v33 = vrot.slane %v3442_v3, 2  ;;  %v1467_v58 = vrot.slane %v3442_v3, 5  ;;  %v1430_v60 = vrot.slane %v3439_v2, 3 }
 0x18e   : > { %v1397_v1 = vmul.f32 10.0, %v1391_v0 }
 0x190   : > { %v1407_v4 = vmul.f32 %v3431_v55, %v1397_v1  ;;  %v1363_v5 = vpop.f32.mrf.mxu1 }
 0x191   : > { %v2964_v6 = vpop.eup %2963  ;;  %v1375_v7 = vmax.f32 %v1363_v5, 1e-10 }
 0x192   : > { %v3446_v8 = vadd.f32 %v3435_v62, %v1407_v4  ;;  %v1384_v9 = vmul.f32 0.6931472, %v2964_v6  ;;  %v1442_v6 = vrot.slane %v3439_v2, 6 }
 0x193   : > { %2965 = vlog2.f32 %v1375_v7 }
 0x194   : > { %v1392_v13 = vmul.f32 0.4342945, %v1384_v9  ;;  %v1524_v14 = vrot.slane %v3446_v8, 5  ;;  %v1516_v15 = vrot.slane %v3446_v8, 3  ;;  %v1508_v16 = vrot.slane %v3446_v8, 1 }
 0x195   : > { %v1520_v27 = vrot.slane %v3446_v8, 4  ;;  %v1512_v28 = vrot.slane %v3446_v8, 2  ;;  %v1500_v46 = vrot.slane %v3446_v8, 6  ;;  %v1504_v47 = vrot.slane %v3446_v8, 7 }
 0x196   : > { %v1398_v17 = vmul.f32 10.0, %v1392_v13  ;;  %v2855_v18 = vpack.i.bf16 %v1524_v14, %v1438_v10  ;;  %v2845_v19 = vpack.i.bf16 %v1516_v15, %v1459_v11  ;;  %v2835_v20 = vpack.i.bf16 %v1508_v16, %v1451_v12 }
 0x197   : > { %v2850_v35 = vpack.i.bf16 %v1520_v27, %v1434_v30  ;;  %v2840_v37 = vpack.i.bf16 %v1512_v28, %v1455_v33  ;;  %v1686_v30 = vld [vmem:[%s3159_s25 + $0x78] sm:$0xff]  ;;  %v1685_v33 = vld [vmem:[%s3159_s25 + $0x70] sm:$0xff] }
 0x198   : > { %v1408_v21 = vmul.f32 %v3431_v55, %v1398_v17  ;;  %2856 = vrot.lane.b32.xlu2 %v2855_v18, %s3905_s23  ;;  %2846 = vrot.lane.b32.xlu1 %v2845_v19, %s3903_s2  ;;  %v1366_v22 = vpop.f32.mrf.mxu1  ;;  %s3907_s2 = smov 64   ;;  %s3909_s23 = smov 32  }
 0x199   : > { %v2966_v23 = vpop.eup %2965  ;;  %2836 = vrot.lane.b32.xlu0 %v2835_v20, %s3913_s16  ;;  %v1376_v24 = vmax.f32 %v1366_v22, 1e-10  ;;  %v1471_v22 = vrot.slane %v3442_v3, 6  ;;  %1707 = vmatpush.msra.mxu2 %v1686_v30 }
 0x19a   : > { %v3459_v25 = vadd.f32 %v3435_v62, %v1408_v21  ;;  %v1386_v26 = vmul.f32 0.6931472, %v2966_v23  ;;  %v1475_v23 = vrot.slane %v3442_v3, 7 }
 0x19b   : > { %2967 = vlog2.f32 %v1376_v24  ;;  %v1446_v24 = vrot.slane %v3439_v2, 7  ;;  %1708 = vmatpush.msra.mxu2 %v1685_v33 }
 0x19c   : > { %v1393_v29 = vmul.f32 0.4342945, %v1386_v26  ;;  %v1546_v32 = vrot.slane %v3459_v25, 4  ;;  %v1554_v41 = vrot.slane %v3459_v25, 1  ;;  %v1529_v42 = vrot.slane %v3459_v25, 6 }
 0x19d   : > { %v1533_v43 = vrot.slane %v3459_v25, 7  ;;  %v1550_v54 = vrot.slane %v3459_v25, 5  ;;  %v1558_v14 = vrot.slane %v3459_v25, 2  ;;  %v1562_v15 = vrot.slane %v3459_v25, 3 }
 0x19e   : > { %v1399_v34 = vmul.f32 10.0, %v1393_v29  ;;  %v2865_v36 = vpack.i.bf16 %v1546_v32, %v1463_v31  ;;  %v2860_v50 = vpack.i.bf16 %v1554_v41, %v1422_v45  ;;  %v2875_v51 = vpack.i.bf16 %v1529_v42, %v1500_v46  ;;  %v1702_v31 = vld [vmem:[%s3159_s25 + $0xf8] sm:$0xff]  ;;  %v1680_v45 = vld [vmem:[%s3159_s25 + $0x48] sm:$0xff] }
 0x19f   : > { %v2880_v52 = vpack.i.bf16 %v1533_v43, %v1504_v47  ;;  %v2870_v63 = vpack.i.bf16 %v1550_v54, %v1467_v58  ;;  %1727 = vmatpush.msra.mxu3 %v1702_v31  ;;  %v1698_v42 = vld [vmem:[%s3159_s25 + $0xd8] sm:$0xff]  ;;  %v1681_v43 = vld [vmem:[%s3159_s25 + $0x50] sm:$0xff]  ;;  %v1696_v46 = vld [vmem:[%s3159_s25 + $0xc8] sm:$0xff] }
 0x1a0   : > { %2851 = vrot.lane.b32.xlu1 %v2850_v35, %s3907_s2  ;;  %2866 = vrot.lane.b32.xlu2 %v2865_v36, %s3907_s2  ;;  %v1409_v39 = vmul.f32 %v3431_v55, %v1399_v34  ;;  %s3914_s2 = smov 96   ;;  %v1701_v34 = vld [vmem:[%s3159_s25 + $0xf0] sm:$0xff]  ;;  %v1684_v35 = vld [vmem:[%s3159_s25 + $0x68] sm:$0xff] }
 0x1a1   : > { %v2968_v38 = vpop.eup %2967  ;;  %2841 = vrot.lane.b32.xlu0 %v2840_v37, %s3909_s23  ;;  %s3911_s23 = smov 112   ;;  %1728 = vmatpush.msra.mxu3 %v1701_v34  ;;  %v1700_v36 = vld [vmem:[%s3159_s25 + $0xe8] sm:$0xff]  ;;  %v1683_v37 = vld [vmem:[%s3159_s25 + $0x60] sm:$0xff]  ;;  %v1694_v54 = vld [vmem:[%s3159_s25 + $0xb8] sm:$0xff] }
 0x1a2   : > { %v1388_v40 = vmul.f32 0.6931472, %v2968_v38  ;;  %v3478_v48 = vadd.f32 %v3435_v62, %v1409_v39  ;;  %1709 = vmatpush.msra.mxu2 %v1684_v35  ;;  %v1699_v38 = vld [vmem:[%s3159_s25 + $0xe0] sm:$0xff]  ;;  %v1682_v39 = vld [vmem:[%s3159_s25 + $0x58] sm:$0xff]  ;;  %v1676_v58 = vld [vmem:[%s3159_s25 + $0x28] sm:$0xff] }
 0x1a3   : > { %1729 = vmatpush.msra.mxu3 %v1700_v36 }
 0x1a4   : > { %v1394_v44 = vmul.f32 0.4342945, %v1388_v40  ;;  %v1594_v56 = vrot.slane %v3478_v48, 2  ;;  %v1598_v57 = vrot.slane %v3478_v48, 3  ;;  %v1567_v4 = vrot.slane %v3478_v48, 4  ;;  %1710 = vmatpush.msra.mxu2 %v1683_v37 }
 0x1a5   : > { %v1571_v10 = vrot.slane %v3478_v48, 5  ;;  %v1579_v21 = vrot.slane %v3478_v48, 7  ;;  %1730 = vmatpush.msra.mxu3 %v1699_v38 }
 0x1a6   : > { %v1400_v49 = vmul.f32 10.0, %v1394_v44  ;;  %v2885_v0 = vpack.i.bf16 %v1594_v56, %v1426_v59  ;;  %v2890_v1 = vpack.i.bf16 %v1598_v57, %v1430_v60  ;;  %1711 = vmatpush.msra.mxu2 %v1682_v39  ;;  %v1697_v44 = vld [vmem:[%s3159_s25 + $0xd0] sm:$0xff]  ;;  %v1692_v59 = vld [vmem:[%s3159_s25 + $0xa8] sm:$0xff]  ;;  %v1675_v60 = vld [vmem:[%s3159_s25 + $0x20] sm:$0xff] }
 0x1a7   : > { %v2910_v28 = vpack.i.bf16 %v1579_v21, %v1446_v24  ;;  %1731 = vmatpush.msra.mxu3 %v1698_v42  ;;  %v1677_v56 = vld [vmem:[%s3159_s25 + $0x30] sm:$0xff] }
 0x1a8   : > { %2861 = vrot.lane.b32.xlu1 %v2860_v50, %s3913_s16  ;;  %2876 = vrot.lane.b32.xlu2 %v2875_v51, %s3914_s2  ;;  %v1410_v53 = vmul.f32 %v3431_v55, %v1400_v49  ;;  %s3964_s16 = smov 32   ;;  %s3965_s2 = smov 48   ;;  %v1575_v55 = vrot.slane %v3478_v48, 6  ;;  %v1679_v49 = vld [vmem:[%s3159_s25 + $0x40] sm:$0xff]  ;;  %v1678_v51 = vld [vmem:[%s3159_s25 + $0x38] sm:$0xff] }
 0x1a9   : > { %2881 = vrot.lane.b32.xlu0 %v2880_v52, %s3911_s23  ;;  %s3963_s23 = smov 80   ;;  %1712 = vmatpush.msra.mxu2 %v1681_v43  ;;  %v1695_v50 = vld [vmem:[%s3159_s25 + $0xc0] sm:$0xff]  ;;  %v1693_v57 = vld [vmem:[%s3159_s25 + $0xb0] sm:$0xff] }
 0x1aa   : > { %v1420_v61 = vadd.f32 %v3435_v62, %v1410_v53  ;;  %v2895_v7 = vpack.i.bf16 %v1575_v55, %v1442_v6  ;;  %v1602_v62 = vrot.slane %v3478_v48, 1  ;;  %1732 = vmatpush.msra.mxu3 %v1697_v44  ;;  %v1689_v6 = vld [vmem:[%s3159_s25 + $0x90] sm:$0xff] }
 0x1ab   : > { %1713 = vmatpush.msra.mxu2 %v1680_v45 }
 0x1ac   : > { %v1615_v5 = vrot.slane %v1420_v61, 4  ;;  %v1619_v11 = vrot.slane %v1420_v61, 5  ;;  %v1607_v12 = vrot.slane %v1420_v61, 2  ;;  %v1611_v13 = vrot.slane %v1420_v61, 3  ;;  %1733 = vmatpush.msra.mxu3 %v1696_v46 }
 0x1ad   : > { %v1623_v19 = vrot.slane %v1420_v61, 6  ;;  %v1627_v20 = vrot.slane %v1420_v61, 7  ;;  %1714 = vmatpush.msra.mxu2 %v1679_v49  ;;  %v1691_v61 = vld [vmem:[%s3159_s25 + $0xa0] sm:$0xff] }
 0x1ae   : > { %v2915_v9 = vpack.i.bf16 %v1615_v5, %v1567_v4  ;;  %v2920_v16 = vpack.i.bf16 %v1619_v11, %v1571_v10  ;;  %v2900_v17 = vpack.i.bf16 %v1607_v12, %v1558_v14  ;;  %v2905_v18 = vpack.i.bf16 %v1611_v13, %v1562_v15  ;;  %1734 = vmatpush.msra.mxu3 %v1695_v50  ;;  %v1690_v4 = vld [vmem:[%s3159_s25 + $0x98] sm:$0xff]  ;;  %v1673_v5 = vld [vmem:[%s3159_s25 + $0x10] sm:$0xff]  ;;  %v1671_v10 = vld [vmem:[%s3159_s25] sm:$0xff] }
 0x1af   : > { %v2925_v26 = vpack.i.bf16 %v1623_v19, %v1471_v22  ;;  %v2930_v27 = vpack.i.bf16 %v1627_v20, %v1475_v23  ;;  %1715 = vmatpush.msra.mxu2 %v1678_v51  ;;  %v1687_v12 = vld [vmem:[%s3159_s25 + $0x80] sm:$0xff] }
 0x1b0   : > { %2871 = vrot.lane.b32.xlu1 %v2870_v63, %s3963_s23  ;;  %2886 = vrot.lane.b32.xlu2 %v2885_v0, %s3964_s16  ;;  %v1674_v0 = vld [vmem:[%s3159_s25 + $0x18] sm:$0xff] }
 0x1b1   : > { %2891 = vrot.lane.b32.xlu0 %v2890_v1, %s3965_s2  ;;  %1735 = vmatpush.msra.mxu3 %v1694_v54 }
 0x1b2   : > { %1716 = vmatpush.msra.mxu2 %v1677_v56 }
 0x1b3   : > { %1736 = vmatpush.msra.mxu3 %v1693_v57 }
 0x1b4   : > { %1717 = vmatpush.msra.mxu2 %v1676_v58 }
 0x1b5   : > { %1737 = vmatpush.msra.mxu3 %v1692_v59 }
 0x1b6   : > { %1718 = vmatpush.msra.mxu2 %v1675_v60 }
 0x1b7   : > { %1738 = vmatpush.msra.mxu3 %v1691_v61 }
 0x1b8   : > { %2896 = vrot.lane.b32.xlu2 %v2895_v7, %s3966_s5  ;;  %2916 = vrot.lane.b32.xlu1 %v2915_v9, %s3967_s9  ;;  %v1672_v7 = vld [vmem:[%s3159_s25 + $0x8] sm:$0xff] }
 0x1b9   : > { %1603 = vrot.lane.b32.xlu0 %v1602_v62, %s3968_s13  ;;  %s3969_s13 = smov 112   ;;  %1719 = vmatpush.msra.mxu2 %v1674_v0  ;;  %v1688_v62 = vld [vmem:[%s3159_s25 + $0x88] sm:$0xff] }
 0x1ba   : > { %1739 = vmatpush.msra.mxu3 %v1690_v4 }
 0x1bb   : > { %1720 = vmatpush.msra.mxu2 %v1673_v5 }
 0x1bc   : > { %1740 = vmatpush.msra.mxu3 %v1689_v6 }
 0x1bd   : > { %1721 = vmatpush.msra.mxu2 %v1672_v7 }
 0x1be   : > { %1741 = vmatpush.msra.mxu3 %v1688_v62 }
 0x1bf   : > { %1722 = vmatpush.msra.mxu2 %v1671_v10 }
 0x1c0   : > { %2921 = vrot.lane.b32.xlu1 %v2920_v16, %s3963_s23  ;;  %2901 = vrot.lane.b32.xlu2 %v2900_v17, %s3964_s16  ;;  %s3973_s23 = sld [smem:[#allocation10_spill]] }
 0x1c1   : > { %2906 = vrot.lane.b32.xlu0 %v2905_v18, %s3965_s2  ;;  %1742 = vmatpush.msra.mxu3 %v1687_v12  ;;  %s3974_s2 = sld [smem:[#allocation13_spill]] }
 0x1c2   : > { %s3975_s16 = sld [smem:[#allocation14_spill]] }
 0x1c8   : > { %2926 = vrot.lane.b32.xlu1 %v2925_v26, %s3966_s5  ;;  %2931 = vrot.lane.b32.xlu2 %v2930_v27, %s3969_s13 }
 0x1c9   : > { %2911 = vrot.lane.b32.xlu0 %v2910_v28, %s3969_s13  ;;  %s3976_s13 = sld [smem:[#allocation17_spill]] }
 0x1f2   : > { %v3514_v29 = vpop.permute.xlu2 %2856 }
 0x1f3   : > { %v2859_v23 = vunpack.i.h.bf16 %v3514_v29  ;;  %v2858_v24 = vunpack.i.l.bf16 %v3514_v29 }
 0x1fa   : > { %v3518_v32 = vpop.permute.xlu2 %2866 }
 0x1fb   : > { %v2869_v28 = vunpack.i.h.bf16 %v3518_v32  ;;  %v2868_v30 = vunpack.i.l.bf16 %v3518_v32 }
 0x202   : > { %v3536_v47 = vpop.permute.xlu2 %2876 }
 0x203   : > { %v2879_v35 = vunpack.i.h.bf16 %v3536_v47  ;;  %v2878_v38 = vunpack.i.l.bf16 %v3536_v47 }
 0x20a   : > { %v3527_v40 = vpop.permute.xlu1 %2846  ;;  %v3550_v63 = vpop.permute.xlu2 %2886 }
 0x20b   : > { %v3529_v41 = vpop.permute.xlu0 %2836  ;;  %v2849_v18 = vunpack.i.h.bf16 %v3527_v40  ;;  %v2848_v36 = vunpack.i.l.bf16 %v3527_v40  ;;  %v2889_v39 = vunpack.i.h.bf16 %v3550_v63  ;;  %v2888_v42 = vunpack.i.l.bf16 %v3550_v63 }
 0x20c   : > { %v2839_v9 = vunpack.i.h.bf16 %v3529_v41  ;;  %v2838_v19 = vunpack.i.l.bf16 %v3529_v41 }
 0x20e   : > { %v1539_v15 = vsel %vm1479_vm1, %v3446_v8, %v2839_v9  ;;  %v1492_v8 = vsel %vm1479_vm1, %v3442_v3, %v2838_v19 }
 0x212   : > { %v3541_v52 = vpop.permute.xlu1 %2851  ;;  %v3565_v13 = vpop.permute.xlu2 %2896 }
 0x213   : > { %v2842_v53 = vpop.permute.xlu0 %2841  ;;  %v2854_v22 = vunpack.i.h.bf16 %v3541_v52  ;;  %v2853_v40 = vunpack.i.l.bf16 %v3541_v52  ;;  %v2899_v50 = vunpack.i.h.bf16 %v3565_v13  ;;  %v2898_v51 = vunpack.i.l.bf16 %v3565_v13 }
 0x214   : > { %v2844_v11 = vunpack.i.h.bf16 %v2842_v53  ;;  %v2843_v20 = vunpack.i.l.bf16 %v2842_v53 }
 0x216   : > { %v1540_v17 = vsel %vm1481_vm2, %v1539_v15, %v2844_v11  ;;  %v1493_v31 = vsel %vm1481_vm2, %v1492_v8, %v2843_v20 }
 0x217   : > { %v1541_v21 = vsel %vm1483_vm3, %v1540_v17, %v2849_v18  ;;  %v1494_v43 = vsel %vm1483_vm3, %v1493_v31, %v2848_v36 }
 0x218   : > { %v1542_v26 = vsel %vm1251_vm0, %v1541_v21, %v2854_v22  ;;  %v1495_v52 = vsel %vm1251_vm0, %v1494_v43, %v2868_v30 }
 0x219   : > { %v1543_v41 = vsel %vm1486_vm4, %v1542_v26, %v2859_v23 }
 0x21a   : > { %v3553_v1 = vpop.permute.xlu1 %2861  ;;  %v2902_v37 = vpop.permute.xlu2 %2901  ;;  %v1544_v54 = vsel %vm1488_vm5, %v1543_v41, %v2879_v35 }
 0x21b   : > { %v3555_v55 = vpop.permute.xlu0 %2881  ;;  %v2863_v33 = vunpack.i.l.bf16 %v3553_v1  ;;  %v2864_v3 = vunpack.i.h.bf16 %v3553_v1  ;;  %v2903_v49 = vunpack.i.l.bf16 %v2902_v37  ;;  %v2904_v57 = vunpack.i.h.bf16 %v2902_v37 }
 0x21c   : > { %v2884_v32 = vunpack.i.h.bf16 %v3555_v55  ;;  %v2883_v63 = vunpack.i.l.bf16 %v3555_v55 }
 0x21d   : > { %v1480_v46 = vsel %vm1479_vm1, %v3439_v2, %v2863_v33  ;;  %v1587_v53 = vsel %vm1479_vm1, %v3459_v25, %v2864_v3  ;;  %v1583_v2 = vsel %vm1251_vm0, %v1541_v21, %v2869_v28 }
 0x21e   : > { %v3606_v56 = vsel %vm1490_vm6, %v1544_v54, %v2884_v32  ;;  %v1482_v60 = vsel %vm1481_vm2, %v1480_v46, %v2888_v42  ;;  %v1588_v0 = vsel %vm1481_vm2, %v1587_v53, %v2903_v49  ;;  %v1631_v4 = vsel %vm1481_vm2, %v1587_v53, %v2889_v39 }
 0x21f   : > { %v1647_v6 = vrot.slane %v3606_v56, 1 }
 0x222   : > { %v2872_v14 = vpop.permute.xlu1 %2871  ;;  %v2932_v13 = vpop.permute.xlu2 %2931 }
 0x223   : > { %v3569_v16 = vpop.permute.xlu0 %2891  ;;  %v2874_v44 = vunpack.i.h.bf16 %v2872_v14  ;;  %v2873_v45 = vunpack.i.l.bf16 %v2872_v14  ;;  %v2934_v22 = vunpack.i.h.bf16 %v2932_v13 }
 0x224   : > { %v2893_v47 = vunpack.i.l.bf16 %v3569_v16  ;;  %v2894_v7 = vunpack.i.h.bf16 %v3569_v16 }
 0x225   : > { %v1496_v58 = vsel %vm1486_vm4, %v1495_v52, %v2873_v45  ;;  %v1584_v59 = vsel %vm1486_vm4, %v1583_v2, %v2874_v44 }
 0x226   : > { %v1484_v1 = vsel %vm1483_vm3, %v1482_v60, %v2893_v47  ;;  %v1537_v10 = vsel %vm1488_vm5, %v1496_v58, %v2878_v38  ;;  %v1632_v19 = vsel %vm1483_vm3, %v1631_v4, %v2894_v7  ;;  %v2938_v60 = vld [vmem:[%s3970_s8] ss:$0 sm:$0xff] }
 0x227   : > { %v1485_v12 = vsel %vm1251_vm0, %v1484_v1, %v2853_v40  ;;  %v1538_v20 = vsel %vm1490_vm6, %v1537_v10, %v2883_v63  ;;  %v1747_v63 = vld [vmem:[%s3971_s3] sm:$0x1]  ;;  %s3979_s3 = sld [smem:[#allocation19_spill]] }
 0x228   : > { %v1487_v26 = vsel %vm1486_vm4, %v1485_v12, %v2858_v24  ;;  %v1646_v3 = vrot.slane %v1538_v20, 1  ;;  %v1755_v1 = vsel %vm1662_vm7, %v1747_v63, %v2938_v60  ;;  %v1804_v20 = vld [vmem:[%s3957_s6 + $0x10] sm:$0xff] }
 0x229   : > { %v1489_v39 = vsel %vm1488_vm5, %v1487_v26, %v2898_v51 }
 0x22a   : > { %v3581_v27 = vpop.permute.xlu1 %2916 }
 0x22b   : > { %v1604_v34 = vpop.permute.xlu0 %1603  ;;  %v2918_v55 = vunpack.i.l.bf16 %v3581_v27  ;;  %v2919_v16 = vunpack.i.h.bf16 %v3581_v27  ;;  %v2933_v27 = vunpack.i.l.bf16 %v2932_v13 }
 0x22c   : > { %v1637_v61 = vsel %vm1479_vm1, %v3478_v48, %v1604_v34  ;;  %v1585_v48 = vsel %vm1488_vm5, %v1584_v59, %v2879_v35  ;;  %vm1842_vm1 = vcmask 1043456  }
 0x22d   : > { %v1638_v11 = vsel %vm1481_vm2, %v1637_v61, %v2904_v57  ;;  %v1586_v21 = vsel %vm1490_vm6, %v1585_v48, %v2884_v32  ;;  %v1633_v23 = vsel %vm1251_vm0, %v1632_v19, %v2918_v55  ;;  %v1805_v19 = vld [vmem:[%s3957_s6 + $0x18] sm:$0xff] }
 0x22e   : > { %v1652_v37 = vrot.slane %v1586_v21, 2  ;;  %1825 = vmatpush.msrb.mxu2 %v1805_v19  ;;  %v1803_v21 = vld [vmem:[%s3957_s6 + $0x8] sm:$0xff] }
 0x230   : > { %1826 = vmatpush.msrb.mxu2 %v1804_v20 }
 0x232   : > { %v2922_v25 = vpop.permute.xlu1 %2921  ;;  %1827 = vmatpush.msrb.mxu2 %v1803_v21 }
 0x233   : > { %v2907_v5 = vpop.permute.xlu0 %2906  ;;  %v2923_v14 = vunpack.i.l.bf16 %v2922_v25  ;;  %v2924_v28 = vunpack.i.h.bf16 %v2922_v25 }
 0x234   : > { %v2909_v9 = vunpack.i.h.bf16 %v2907_v5  ;;  %v2908_v62 = vunpack.i.l.bf16 %v2907_v5  ;;  %v1757_v5 = vld [vmem:[%s3179_s14] sm:$0x3f] }
 0x235   : > { %v1634_v30 = vsel %vm1486_vm4, %v1633_v23, %v2923_v14 }
 0x236   : > { %v1589_v15 = vsel %vm1483_vm3, %v1588_v0, %v2908_v62  ;;  %v1639_v17 = vsel %vm1483_vm3, %v1638_v11, %v2909_v9  ;;  %v1635_v43 = vsel %vm1488_vm5, %v1634_v30, %v2899_v50  ;;  %v3125_v62 = vmov 32.0  }
 0x237   : > { %v1590_v18 = vsel %vm1251_vm0, %v1589_v15, %v2918_v55  ;;  %v1640_v8 = vsel %vm1251_vm0, %v1639_v17, %v2919_v16  ;;  %2969 = vrcp.f32 %v3125_v62  ;;  %vm1890_vm3 = vcmask 48128  }
 0x238   : > { %v1591_v33 = vsel %vm1486_vm4, %v1590_v18, %v2923_v14  ;;  %v1641_v38 = vsel %vm1486_vm4, %v1640_v8, %v2924_v28 }
 0x239   : > { %v1592_v42 = vsel %vm1488_vm5, %v1591_v33, %v2899_v50 }
 0x23a   : > { %v2927_v31 = vpop.permute.xlu1 %2926 }
 0x23b   : > { %v2929_v34 = vunpack.i.h.bf16 %v2927_v31  ;;  %v2928_v35 = vunpack.i.l.bf16 %v2927_v31  ;;  %v2912_v36 = vpop.permute.xlu0 %2911 }
 0x23c   : > { %v2914_v41 = vunpack.i.h.bf16 %v2912_v36  ;;  %v2913_v29 = vunpack.i.l.bf16 %v2912_v36 }
 0x23d   : > { %v1497_v24 = vsel %vm1488_vm5, %v1496_v58, %v2928_v35  ;;  %v1642_v32 = vsel %vm1488_vm5, %v1641_v38, %v2929_v34  ;;  %v2937_v58 = vld [vmem:[%s3164_s29] ss:$0 sm:$0xff]  ;;  %v2970_v10 = vpop.eup %2969 }
 0x23e   : > { %v1491_v44 = vsel %vm1490_vm6, %v1489_v39, %v2913_v29  ;;  %v1593_v45 = vsel %vm1490_vm6, %v1592_v42, %v2914_v41  ;;  %v1636_v40 = vsel %vm1490_vm6, %v1635_v43, %v2914_v41  ;;  %v1498_v46 = vsel %vm1490_vm6, %v1497_v24, %v2933_v27  ;;  %v2939_v35 = vld [vmem:[%s3189_s24] ss:$0 sm:$0xff] }
 0x23f   : > { %v1653_v49 = vrot.slane %v1593_v45, 2  ;;  %v1658_v47 = vrot.slane %v1636_v40, 3  ;;  %v1663_v51 = vsel %vm1662_vm7, %v1491_v44, %v1646_v3  ;;  %v1643_v53 = vsel %vm1490_vm6, %v1642_v32, %v2934_v22  ;;  %v1802_v22 = vld [vmem:[%s3957_s6] sm:$0xff] }
 0x240   : > { %v1666_v54 = vsel %vm1665_vm8, %v1663_v51, %v1652_v37  ;;  %v1659_v50 = vrot.slane %v1643_v53, 3  ;;  %v1664_v56 = vsel %vm1662_vm7, %v1498_v46, %v1647_v6  ;;  %v1769_v48 = vmul.f32 32.0, %v2970_v10  ;;  %1828 = vmatpush.msrb.mxu2 %v1802_v22  ;;  %v2940_v37 = vld [vmem:[%s3194_s30] ss:$0 sm:$0xff]  ;;  %v3690_v46 = vld [vmem:[%s3973_s23 + $0x8] sm:$0xff]  ;;  %v3696_v53 = vld [vmem:[%s3973_s23 + $0x10] sm:$0xff] }
 0x241   : > { %v1669_v57 = vsel %vm1668_vm9, %v1666_v54, %v1658_v47  ;;  %v1667_v52 = vsel %vm1665_vm8, %v1664_v56, %v1653_v49  ;;  %vm1773_vm11 = vweird.f32 %v2970_v10  ;;  %v2941_v41 = vld [vmem:[%s3972_s12] ss:$0 sm:$0xff] }
 0x242   : > { %1723 = vmatmul.f32.vlgmr.msra.gmra.mxu2 %v1669_v57  ;;  %v1670_v2 = vsel %vm1668_vm9, %v1667_v52, %v1659_v50  ;;  %v1770_v11 = vsub.f32 1.0, %v1769_v48  ;;  %v3683_v42 = vld [vmem:[%s3973_s23] sm:$0xff] }
 0x243   : > { %1743 = vmatmul.f32.vlgmr.msra.gmra.mxu3 %v1670_v2 }
 0x244   : > { %v1771_v55 = vmul.f32 %v2970_v10, %v1770_v11 }
 0x246   : > { %v1772_v12 = vadd.f32 %v2970_v10, %v1771_v55 }
 0x248   : > { %v3667_v13 = vsel %vm1773_vm11, %v2970_v10, %v1772_v12 }
 0x2c5   : > { %v1724_v59 = vpop.f32.mrf.mxu2 }
 0x2c6   : > { %v1725_v61 = vadd.f32 %v2937_v58, %v1724_v59  ;;  %v1744_v25 = vpop.f32.mrf.mxu3 }
 0x2c8   : > { %v1745_v0 = vadd.f32 %v1744_v25, %v1725_v61 }
 0x2ca   : > { %v1753_v4 = vrot.slane %v1745_v0, 6 }
 0x2cc   : > { %v1756_v6 = vsel %vm1665_vm8, %v1755_v1, %v1753_v4 }
 0x2cd   : > { %v3663_v7 = vadd.f32 %v1757_v5, %v1756_v6 }
 0x2cf   : > { %v1765_v9 = vsel %vm1764_vm10, %v3663_v7, 0.0 }
 0x2d0   : > { %1766 = vadd.xlane.f32.xlu0 %v1765_v9 }
 0x343   : > { %v1767_v14 = vpop.xlane.xlu0 %1766 }
 0x344   : > { %v1775_v15 = vmul.f32 %v3667_v13, %v1767_v14 }
 0x346   : > { %v1776_v17 = vsub.f32 %v3663_v7, %v1775_v15 }
 0x348   : > { %v1777_v16 = vmul.f32 %v1776_v17, %v1776_v17 }
 0x34a   : > { %v1778_v18 = vsel %vm1764_vm10, %v1777_v16, 0.0 }
 0x34b   : > { %1779 = vadd.xlane.f32.xlu1 %v1778_v18 }
 0x3be   : > { %v1780_v23 = vpop.xlane.xlu1 %1779 }
 0x3bf   : > { %v1781_v8 = vmul.f32 %v1780_v23, %v3667_v13 }
 0x3c1   : > { %v1782_v26 = vadd.f32 1e-06, %v1781_v8 }
 0x3c3   : > { %2971 = vrsqrt.f32 %v1782_v26  ;;  %vm1789_vm13 = vweird.f32 %v1782_v26 }
 0x3c9   : > { %v2972_v27 = vpop.eup %2971 }
 0x3ca   : > { %v1784_v28 = vmul.f32 %v2972_v27, %v1782_v26  ;;  %vm1790_vm12 = vweird.f32 %v2972_v27 }
 0x3cb   : > { %vm1791_vm14 = vmor %vm1789_vm13, %vm1790_vm12  ;;  %vm2508_vm12 = vcmask 254977   ;;  %vm2483_vm13 = vcmask 253952  }
 0x3cc   : > { %v1785_v30 = vmul.f32 %v2972_v27, %v1784_v28  ;;  %v1984_v28 = vld [vmem:[%s3974_s2 + $0x10] sm:$0xff] }
 0x3ce   : > { %v1786_v31 = vmul.f32 0.5, %v1785_v30  ;;  %v1983_v30 = vld [vmem:[%s3974_s2 + $0x8] sm:$0xff] }
 0x3d0   : > { %v1787_v33 = vsub.f32 1.5, %v1786_v31  ;;  %v1982_v31 = vld [vmem:[%s3974_s2] sm:$0xff] }
 0x3d2   : > { %v1788_v34 = vmul.f32 %v2972_v27, %v1787_v33 }
 0x3d4   : > { %v1792_v36 = vsel %vm1791_vm14, %v2972_v27, %v1788_v34  ;;  %v1985_v27 = vld [vmem:[%s3974_s2 + $0x18] sm:$0xff]  ;;  %s3978_s2 = sld [smem:[#allocation16_spill]] }
 0x3d5   : > { %v1793_v3 = vmul.f32 %v1792_v36, %v1776_v17 }
 0x3d7   : > { %v1797_v38 = vmul.f32 %v2939_v35, %v1793_v3 }
 0x3d9   : > { %v1801_v39 = vadd.f32 %v2940_v37, %v1797_v38 }
 0x3db   : > { %2721 = vmatmul.msk.f32.vlgmr.msrb.gmra.mxu2 %vm1481_vm2, %v1801_v39 }
 0x45e   : > { %v1830_v29 = vpop.f32.mrf.mxu2 }
 0x45f   : > { %v1831_v24 = vadd.f32 %v2941_v41, %v1830_v29 }
 0x461   : > { %1848 = vrot.lane.b32.xlu2 %v1831_v24, %s3966_s5  ;;  %v1834_v32 = vrot.slane %v1831_v24, 2  ;;  %v1836_v40 = vrot.slane %v1831_v24, 4  ;;  %v1838_v51 = vrot.slane %v1831_v24, 6 }
 0x463   : > { %v1841_v43 = vsel %vm1840_vm15, %v1831_v24, %v1834_v32  ;;  %v1843_v49 = vsel %vm1842_vm1, %v1834_v32, %v1836_v40  ;;  %v1844_v54 = vsel %vm1665_vm8, %v1836_v40, %v1838_v51 }
 0x464   : > { %v1845_v45 = vmul.f32 %v1841_v43, %v3683_v42  ;;  %v1846_v47 = vmul.f32 %v1843_v49, %v3690_v46  ;;  %v1847_v50 = vmul.f32 %v1844_v54, %v3696_v53  ;;  %v2942_v49 = vld [vmem:[%s3975_s16] ss:$0 sm:$0xff]  ;;  %s3977_s16 = sld [smem:[#allocation15_spill]] }
 0x4bb   : > { %v1849_v44 = vpop.permute.xlu2 %1848 }
 0x4bc   : > { %2722 = vmatpush.xpose.msk.msrb.mxu3 %vm1481_vm2, %v1849_v44 }
 0x4bf   : > { %2723 = vmatmul.msk.f32.vlgmr.msrb.gmra.mxu3 %vm1481_vm2, %v1845_v45 }
 0x4c0   : > { %2005 = vmatpush.msra.mxu3 %v1985_v27  ;;  %v2093_v27 = vld [vmem:[%s3979_s3 + $0x38] sm:$0xff] }
 0x4c2   : > { %2006 = vmatpush.msra.mxu3 %v1984_v28  ;;  %v2092_v28 = vld [vmem:[%s3979_s3 + $0x30] sm:$0xff] }
 0x4c4   : > { %2007 = vmatpush.msra.mxu3 %v1983_v30  ;;  %v2091_v30 = vld [vmem:[%s3979_s3 + $0x28] sm:$0xff] }
 0x4c6   : > { %2008 = vmatpush.msra.mxu3 %v1982_v31  ;;  %v2090_v31 = vld [vmem:[%s3979_s3 + $0x20] sm:$0xff] }
 0x4c7   : > { %2724 = vmatmul.msk.f32.gmra.mxu3 %vm1481_vm2, %v1846_v47 }
 0x4cf   : > { %2725 = vmatmul.msk.f32.gmra.mxu3 %vm1481_vm2, %v1847_v50 }
 0x542   : > { %v1878_v56 = vpop.f32.mrf.mxu3 }
 0x543   : > { %v1887_v57 = vmul.f32 0.35355338, %v1878_v56  ;;  %v2049_v56 = vld [vmem:[%s3976_s13 + $0x18] sm:$0xff] }
 0x544   : > { %2069 = vmatpush.msrb.mxu0 %v2049_v56 }
 0x545   : > { %v1891_v52 = vsel %vm1890_vm3, %v1887_v57, -inf }
 0x546   : > { %1892 = vmax.xlane.f32.xlu2 %v1891_v52 }
 0x54a   : > { %v1881_v2 = vpop.f32.mrf.mxu3 }
 0x54b   : > { %v1888_v58 = vmul.f32 0.35355338, %v1881_v2 }
 0x54d   : > { %v1894_v59 = vsel %vm1890_vm3, %v1888_v58, -inf }
 0x54e   : > { %1895 = vmax.xlane.f32.xlu0 %v1894_v59 }
 0x552   : > { %v1884_v60 = vpop.f32.mrf.mxu3 }
 0x553   : > { %v1889_v61 = vmul.f32 0.35355338, %v1884_v60 }
 0x555   : > { %v1897_v25 = vsel %vm1890_vm3, %v1889_v61, -inf }
 0x556   : > { %1898 = vmax.xlane.f32.xlu1 %v1897_v25  ;;  %v2046_v25 = vld [vmem:[%s3976_s13] sm:$0xff] }
 0x56f   : > { %1924 = vrot.lane.b32.xlu1 %v1831_v24, %s3967_s9 }
 0x5b9   : > { %v1893_v63 = vpop.xlane.xlu2 %1892 }
 0x5ba   : > { %v1900_v0 = vsub.f32 %v1887_v57, %v1893_v63  ;;  %v2048_v57 = vld [vmem:[%s3976_s13 + $0x10] sm:$0xff] }
 0x5bb   : > { %2070 = vmatpush.msrb.mxu0 %v2048_v57 }
 0x5bc   : > { %v1903_v1 = vmul.f32 1.442695, %v1900_v0 }
 0x5be   : > { %2973 = vpow2.f32 %v1903_v1 }
 0x5c1   : > { %v1896_v4 = vpop.xlane.xlu0 %1895 }
 0x5c2   : > { %v1901_v5 = vsub.f32 %v1888_v58, %v1896_v4 }
 0x5c4   : > { %v2974_v6 = vpop.eup %2973  ;;  %v1905_v9 = vmul.f32 1.442695, %v1901_v5 }
 0x5c5   : > { %v1909_v62 = vsel %vm1890_vm3, %v2974_v6, 0.0 }
 0x5c6   : > { %2975 = vpow2.f32 %v1905_v9  ;;  %1910 = vadd.xlane.f32.xlu2 %v1909_v62 }
 0x5c9   : > { %v1899_v10 = vpop.xlane.xlu1 %1898 }
 0x5ca   : > { %v1902_v48 = vsub.f32 %v1889_v61, %v1899_v10  ;;  %v2047_v61 = vld [vmem:[%s3976_s13 + $0x8] sm:$0xff] }
 0x5cb   : > { %2071 = vmatpush.msrb.mxu0 %v2047_v61 }
 0x5cc   : > { %v2976_v11 = vpop.eup %2975  ;;  %v1907_v55 = vmul.f32 1.442695, %v1902_v48  ;;  %v2943_v48 = vld [vmem:[%s3977_s16] ss:$0 sm:$0xff]  ;;  %s3982_s16 = sld [smem:[#allocation23_spill]] }
 0x5cd   : > { %v1912_v12 = vsel %vm1890_vm3, %v2976_v11, 0.0  ;;  %2072 = vmatpush.msrb.mxu0 %v2046_v25 }
 0x5ce   : > { %2977 = vpow2.f32 %v1907_v55  ;;  %1913 = vadd.xlane.f32.xlu0 %v1912_v12  ;;  %v2944_v12 = vld [vmem:[%s3978_s2] ss:$0 sm:$0xff]  ;;  %s3981_s2 = sld [smem:[#allocation20_spill]] }
 0x5d2   : > { %v2161_v61 = vld [vmem:[%s3982_s16 + $0x10] sm:$0xff]  ;;  %v2160_v25 = vld [vmem:[%s3982_s16 + $0x8] sm:$0xff] }
 0x5d4   : > { %v2978_v14 = vpop.eup %2977 }
 0x5d5   : > { %v1915_v15 = vsel %vm1890_vm3, %v2978_v14, 0.0 }
 0x5d6   : > { %1916 = vadd.xlane.f32.xlu2 %v1915_v15 }
 0x5e1   : > { %v1925_v17 = vpop.permute.xlu1 %1924 }
 0x5e2   : > { %2726 = vmatpush.msk.msra.mxu2 %vm1840_vm15, %v1925_v17  ;;  %v2101_v17 = vld [vmem:[%s3979_s3 + $0x78] sm:$0xff] }
 0x5e4   : > { %2106 = vmatpush.msrb.mxu2 %v2101_v17 }
 0x639   : > { %v1911_v16 = vpop.xlane.xlu2 %1910 }
 0x63a   : > { %2979 = vrcp.f32 %v1911_v16  ;;  %v2100_v16 = vld [vmem:[%s3979_s3 + $0x70] sm:$0xff] }
 0x63b   : > { %2107 = vmatpush.msrb.mxu2 %v2100_v16 }
 0x640   : > { %v2980_v18 = vpop.eup %2979 }
 0x641   : > { %v1921_v19 = vmul.f32 %v2980_v18, %v2974_v6  ;;  %v1914_v20 = vpop.xlane.xlu0 %1913  ;;  %v2099_v18 = vld [vmem:[%s3979_s3 + $0x68] sm:$0xff] }
 0x642   : > { %2981 = vrcp.f32 %v1914_v20  ;;  %2108 = vmatpush.msrb.mxu2 %v2099_v18 }
 0x643   : > { %2727 = vmatmul.msk.f32.vlgmr.msra.gmra.mxu2 %vm1890_vm3, %v1921_v19 }
 0x648   : > { %v2982_v21 = vpop.eup %2981 }
 0x649   : > { %v1917_v22 = vpop.xlane.xlu2 %1916  ;;  %v1922_v23 = vmul.f32 %v2982_v21, %v2976_v11  ;;  %v2098_v21 = vld [vmem:[%s3979_s3 + $0x60] sm:$0xff] }
 0x64a   : > { %2983 = vrcp.f32 %v1917_v22  ;;  %2109 = vmatpush.msrb.mxu2 %v2098_v21  ;;  %v2097_v22 = vld [vmem:[%s3979_s3 + $0x58] sm:$0xff] }
 0x64b   : > { %2728 = vmatmul.msk.f32.gmra.mxu2 %vm1890_vm3, %v1922_v23  ;;  %v2096_v23 = vld [vmem:[%s3979_s3 + $0x50] sm:$0xff] }
 0x64c   : > { %2110 = vmatpush.msrb.mxu2 %v2097_v22 }
 0x64e   : > { %2111 = vmatpush.msrb.mxu2 %v2096_v23 }
 0x650   : > { %v2984_v8 = vpop.eup %2983 }
 0x651   : > { %v1923_v26 = vmul.f32 %v2984_v8, %v2978_v14  ;;  %v2095_v8 = vld [vmem:[%s3979_s3 + $0x48] sm:$0xff] }
 0x652   : > { %2112 = vmatpush.msrb.mxu2 %v2095_v8 }
 0x653   : > { %2729 = vmatmul.msk.f32.gmra.mxu2 %vm1890_vm3, %v1923_v26  ;;  %v2094_v26 = vld [vmem:[%s3979_s3 + $0x40] sm:$0xff] }
 0x654   : > { %2113 = vmatpush.msrb.mxu2 %v2094_v26 }
 0x656   : > { %2114 = vmatpush.msrb.mxu2 %v2093_v27 }
 0x658   : > { %2115 = vmatpush.msrb.mxu2 %v2092_v28 }
 0x65a   : > { %2116 = vmatpush.msrb.mxu2 %v2091_v30 }
 0x65c   : > { %2117 = vmatpush.msrb.mxu2 %v2090_v31 }
 0x6c6   : > { %v1954_v33 = vpop.f32.mrf.mxu2 }
 0x6c7   : > { %v1963_v36 = vmul.f32 %v1954_v33, %v3683_v42  ;;  %v2089_v33 = vld [vmem:[%s3979_s3 + $0x18] sm:$0xff] }
 0x6c8   : > { %2118 = vmatpush.msrb.mxu2 %v2089_v33 }
 0x6c9   : > { %v1968_v37 = vrot.slane %v1963_v36, 6 }
 0x6ce   : > { %v1957_v34 = vpop.f32.mrf.mxu2 }
 0x6cf   : > { %v1964_v35 = vmul.f32 %v1957_v34, %v3690_v46  ;;  %v2088_v34 = vld [vmem:[%s3979_s3 + $0x10] sm:$0xff] }
 0x6d0   : > { %2119 = vmatpush.msrb.mxu2 %v2088_v34 }
 0x6d1   : > { %v1969_v3 = vrot.slane %v1964_v35, 6  ;;  %v1974_v29 = vrot.slane %v1964_v35, 4  ;;  %v2087_v35 = vld [vmem:[%s3979_s3 + $0x8] sm:$0xff] }
 0x6d2   : > { %2120 = vmatpush.msrb.mxu2 %v2087_v35 }
 0x6d3   : > { %v1970_v39 = vsel %vm1665_vm8, %v1968_v37, %v1969_v3 }
 0x6d4   : > { %v1972_v32 = vadd.f32 %v1970_v39, %v1963_v36  ;;  %v2086_v36 = vld [vmem:[%s3979_s3] sm:$0xff]  ;;  %s3985_s3 = sld [smem:[#allocation24_spill]] }
 0x6d5   : > { %2121 = vmatpush.msrb.mxu2 %v2086_v36 }
 0x6d6   : > { %v1960_v38 = vpop.f32.mrf.mxu2 }
 0x6d7   : > { %v1965_v41 = vmul.f32 %v1960_v38, %v3696_v53 }
 0x6d9   : > { %v1975_v24 = vrot.slane %v1965_v41, 4  ;;  %v1979_v45 = vrot.slane %v1965_v41, 2 }
 0x6da   : > { %v2949_v17 = vld [vmem:[%s3985_s3] ss:$0 sm:$0xff]  ;;  %s3988_s3 = sld [smem:[#allocation29_spill]] }
 0x6db   : > { %v1976_v43 = vsel %vm1842_vm1, %v1974_v29, %v1975_v24 }
 0x6dc   : > { %v1978_v44 = vadd.f32 %v1976_v43, %v1972_v32 }
 0x6de   : > { %v1981_v40 = vadd.f32 %v1979_v45, %v1978_v44 }
 0x6e0   : > { %2730 = vmatmul.msk.f32.vlgmr.msra.gmra.mxu3 %vm1481_vm2, %v1981_v40 }
 0x763   : > { %v2010_v47 = vpop.f32.mrf.mxu3 }
 0x764   : > { %v2011_v51 = vadd.f32 %v2942_v49, %v2010_v47  ;;  %v2946_v47 = vld [vmem:[%s3981_s2] ss:$0 sm:$0xff]  ;;  %s3984_s2 = sld [smem:[#allocation22_spill]] }
 0x766   : > { %v3724_v54 = vadd.f32 %v2011_v51, %v3663_v7  ;;  %v1242_v7 = vld [vmem:[%s3399_s22 + $0x30] sm:$0x7]  ;;  %s3980_s22 = sld [smem:[#allocation18_spill]] }
 0x767   : > { %2720 = vmatmul.msk.f32.gmra.mxu0 %vm1251_vm0, %v1242_v7  ;;  %v2162_v7 = vld [vmem:[%s3982_s16 + $0x18] sm:$0xff] }
 0x768   : > { %v2016_v50 = vsel %vm1764_vm10, %v3724_v54, 0.0  ;;  %2182 = vmatpush.msrb.mxu3 %v2162_v7 }
 0x769   : > { %2017 = vadd.xlane.f32.xlu0 %v2016_v50 }
 0x76a   : > { %2183 = vmatpush.msrb.mxu3 %v2161_v61 }
 0x76c   : > { %v2945_v3 = vld [vmem:[%s3980_s22] ss:$0 sm:$0xff]  ;;  %s3983_s22 = sld [smem:[#allocation21_spill]]  ;;  %2184 = vmatpush.msrb.mxu3 %v2160_v25 }
 0x7dc   : > { %v2018_v52 = vpop.xlane.xlu0 %2017 }
 0x7dd   : > { %v2019_v2 = vmul.f32 %v2018_v52, %v3667_v13 }
 0x7df   : > { %v2020_v58 = vsub.f32 %v3724_v54, %v2019_v2 }
 0x7e1   : > { %v2021_v59 = vmul.f32 %v2020_v58, %v2020_v58 }
 0x7e3   : > { %v2022_v60 = vsel %vm1764_vm10, %v2021_v59, 0.0 }
 0x7e4   : > { %2023 = vadd.xlane.f32.xlu2 %v2022_v60  ;;  %v1308_v19 = vpop.f32.mrf.mxu0 }
 0x7e5   : > { %v1317_v20 = vmul.f32 %v1308_v19, %v1308_v19 }
 0x7e7   : > { %1368 = vmatmul.f32.gmra.mxu1 %v1317_v20 }
 0x857   : > { %v2024_v63 = vpop.xlane.xlu2 %2023 }
 0x858   : > { %v2025_v0 = vmul.f32 %v2024_v63, %v3667_v13 }
 0x85a   : > { %v2026_v1 = vadd.f32 1e-06, %v2025_v0 }
 0x85c   : > { %2985 = vrsqrt.f32 %v2026_v1  ;;  %vm2033_vm4 = vweird.f32 %v2026_v1 }
 0x862   : > { %v2986_v4 = vpop.eup %2985 }
 0x863   : > { %v2028_v5 = vmul.f32 %v2986_v4, %v2026_v1  ;;  %vm2034_vm0 = vweird.f32 %v2986_v4 }
 0x864   : > { %vm2035_vm5 = vmor %vm2033_vm4, %vm2034_vm0  ;;  %v1369_v49 = vpop.f32.mrf.mxu1 }
 0x865   : > { %v2029_v6 = vmul.f32 %v2986_v4, %v2028_v5 }
 0x867   : > { %v2030_v9 = vmul.f32 0.5, %v2029_v6 }
 0x869   : > { %v2031_v62 = vsub.f32 1.5, %v2030_v9 }
 0x86b   : > { %v2032_v10 = vmul.f32 %v2986_v4, %v2031_v62 }
 0x86d   : > { %v2036_v11 = vsel %vm2035_vm5, %v2986_v4, %v2032_v10 }
 0x86e   : > { %v2037_v55 = vmul.f32 %v2036_v11, %v2020_v58 }
 0x870   : > { %v2041_v14 = vmul.f32 %v2943_v48, %v2037_v55  ;;  %v2947_v48 = vld [vmem:[%s3983_s22] ss:$0 sm:$0xff]  ;;  %s3989_s22 = sld [smem:[#allocation31_spill]] }
 0x872   : > { %v2045_v15 = vadd.f32 %v2944_v12, %v2041_v14  ;;  %v2948_v12 = vld [vmem:[%s3984_s2] ss:$0 sm:$0xff]  ;;  %s3990_s2 = sld [smem:[#allocation27_spill]] }
 0x874   : > { %2731 = vmatmul.msk.f32.vlgmr.msrb.gmra.mxu0 %vm1481_vm2, %v2045_v15 }
 0x8f1   : > { %v2074_v37 = vpop.f32.mrf.mxu0 }
 0x8f2   : > { %v2075_v38 = vadd.f32 %v2945_v3, %v2074_v37 }
 0x8f4   : > { %v2077_v39 = vmul.f32 %v2075_v38, %v2075_v38 }
 0x8f6   : > { %v2078_v41 = vmul.f32 %v2077_v39, %v2075_v38 }
 0x8f8   : > { %v2079_v29 = vmul.f32 0.044715, %v2078_v41 }
 0x8fa   : > { %v2080_v24 = vadd.f32 %v2079_v29, %v2075_v38 }
 0x8fc   : > { %v2081_v32 = vmul.f32 0.7978846, %v2080_v24 }
 0x8fe   : > { %2987 = vtanh.f32 %v2081_v32 }
 0x904   : > { %v2988_v43 = vpop.eup %2987 }
 0x905   : > { %v2083_v44 = vadd.f32 1.0, %v2988_v43 }
 0x907   : > { %v2084_v45 = vmul.f32 0.5, %v2083_v44 }
 0x909   : > { %v2085_v40 = vmul.f32 %v2084_v45, %v2075_v38 }
 0x90b   : > { %2122 = vmatmul.f32.vlgmr.msrb.gmra.mxu2 %v2085_v40 }
 0x98e   : > { %v2123_v51 = vpop.f32.mrf.mxu2 }
 0x98f   : > { %v2124_v50 = vadd.f32 %v2946_v47, %v2123_v51 }
 0x991   : > { %v3760_v56 = vadd.f32 %v2124_v50, %v3724_v54  ;;  %v2159_v54 = vld [vmem:[%s3982_s16] sm:$0xff] }
 0x992   : > { %2185 = vmatpush.msrb.mxu3 %v2159_v54 }
 0x993   : > { %v2129_v57 = vsel %vm1764_vm10, %v3760_v56, 0.0 }
 0x994   : > { %2130 = vadd.xlane.f32.xlu0 %v2129_v57 }
 0xa07   : > { %v2131_v52 = vpop.xlane.xlu0 %2130 }
 0xa08   : > { %v2132_v2 = vmul.f32 %v2131_v52, %v3667_v13 }
 0xa0a   : > { %v2133_v58 = vsub.f32 %v3760_v56, %v2132_v2 }
 0xa0c   : > { %v2134_v59 = vmul.f32 %v2133_v58, %v2133_v58 }
 0xa0e   : > { %v2135_v60 = vsel %vm1764_vm10, %v2134_v59, 0.0 }
 0xa0f   : > { %2136 = vadd.xlane.f32.xlu2 %v2135_v60 }
 0xa82   : > { %v2137_v63 = vpop.xlane.xlu2 %2136 }
 0xa83   : > { %v2138_v0 = vmul.f32 %v2137_v63, %v3667_v13 }
 0xa85   : > { %v2139_v1 = vadd.f32 1e-06, %v2138_v0 }
 0xa87   : > { %2989 = vrsqrt.f32 %v2139_v1  ;;  %vm2146_vm7 = vweird.f32 %v2139_v1 }
 0xa8d   : > { %v2990_v4 = vpop.eup %2989 }
 0xa8e   : > { %v2141_v5 = vmul.f32 %v2990_v4, %v2139_v1  ;;  %vm2147_vm6 = vweird.f32 %v2990_v4 }
 0xa8f   : > { %vm2148_vm9 = vmor %vm2146_vm7, %vm2147_vm6 }
 0xa90   : > { %v2142_v6 = vmul.f32 %v2990_v4, %v2141_v5 }
 0xa92   : > { %v2143_v9 = vmul.f32 0.5, %v2142_v6 }
 0xa94   : > { %v2144_v62 = vsub.f32 1.5, %v2143_v9 }
 0xa96   : > { %v2145_v10 = vmul.f32 %v2990_v4, %v2144_v62 }
 0xa98   : > { %v2149_v11 = vsel %vm2148_vm9, %v2990_v4, %v2145_v10  ;;  %vm2598_vm9 = vcmask 73728  }
 0xa99   : > { %v2150_v55 = vmul.f32 %v2149_v11, %v2133_v58 }
 0xa9b   : > { %v2154_v14 = vmul.f32 %v2947_v48, %v2150_v55 }
 0xa9d   : > { %v2158_v15 = vadd.f32 %v2948_v12, %v2154_v14 }
 0xa9f   : > { %2732 = vmatmul.msk.f32.vlgmr.msrb.gmra.mxu3 %vm1481_vm2, %v2158_v15 }
 0xb22   : > { %v2187_v16 = vpop.f32.mrf.mxu3 }
 0xb23   : > { %v2188_v18 = vadd.f32 %v2949_v17, %v2187_v16 }
 0xb25   : > { %2203 = vrot.lane.b32.xlu0 %v2188_v18, %s3966_s5  ;;  %v2191_v19 = vrot.slane %v2188_v18, 2  ;;  %v2193_v23 = vrot.slane %v2188_v18, 4  ;;  %v2195_v27 = vrot.slane %v2188_v18, 6  ;;  %s3986_s5 = sld [smem:[#allocation25_spill]] }
 0xb27   : > { %v2197_v20 = vsel %vm1840_vm15, %v2188_v18, %v2191_v19  ;;  %v2198_v8 = vsel %vm1842_vm1, %v2191_v19, %v2193_v23  ;;  %v2199_v28 = vsel %vm1665_vm8, %v2193_v23, %v2195_v27 }
 0xb28   : > { %v2200_v22 = vmul.f32 %v2197_v20, %v3683_v42  ;;  %v2201_v26 = vmul.f32 %v2198_v8, %v3690_v46  ;;  %v2202_v30 = vmul.f32 %v2199_v28, %v3696_v53 }
 0xb2b   : > { %v2339_v58 = vld [vmem:[%s3986_s5 + $0x18] sm:$0xff]  ;;  %v2338_v59 = vld [vmem:[%s3986_s5 + $0x10] sm:$0xff]  ;;  %v2337_v6 = vld [vmem:[%s3986_s5 + $0x8] sm:$0xff] }
 0xb2c   : > { %2359 = vmatpush.msrb.mxu1 %v2339_v58  ;;  %v2336_v9 = vld [vmem:[%s3986_s5] sm:$0xff]  ;;  %v2451_v58 = vld [vmem:[%s3989_s22 + $0x58] sm:$0xff]  ;;  %s2609_s5 = scalar_lea.hbm %s3339_s4, %s3362_s0  ;;  %s3033_s0 = scalar_lea.hbm %s3339_s4, 2 }
 0xb2e   : > { %2360 = vmatpush.msrb.mxu1 %v2338_v59  ;;  %v2450_v59 = vld [vmem:[%s3989_s22 + $0x50] sm:$0xff] }
 0xb30   : > { %2361 = vmatpush.msrb.mxu1 %v2337_v6 }
 0xb32   : > { %2362 = vmatpush.msrb.mxu1 %v2336_v9 }
 0xb97   : > { %v2204_v21 = vpop.permute.xlu0 %2203 }
 0xb98   : > { %2733 = vmatpush.xpose.msk.msra.mxu0 %vm1481_vm2, %v2204_v21 }
 0xb9b   : > { %2734 = vmatmul.msk.f32.vlgmr.msra.gmra.mxu0 %vm1481_vm2, %v2200_v22 }
 0xba3   : > { %2735 = vmatmul.msk.f32.gmra.mxu0 %vm1481_vm2, %v2201_v26 }
 0xbab   : > { %2736 = vmatmul.msk.f32.gmra.mxu0 %vm1481_vm2, %v2202_v30 }
 0xc18   : > { %v2233_v31 = vpop.f32.mrf.mxu0 }
 0xc19   : > { %v2242_v33 = vmul.f32 0.35355338, %v2233_v31 }
 0xc1b   : > { %v2245_v34 = vsel %vm1890_vm3, %v2242_v33, -inf }
 0xc1c   : > { %2246 = vmax.xlane.f32.xlu1 %v2245_v34  ;;  %v2403_v34 = vld [vmem:[%s3988_s3 + $0x18] sm:$0xff] }
 0xc1d   : > { %2423 = vmatpush.msra.mxu2 %v2403_v34 }
 0xc20   : > { %v2236_v35 = vpop.f32.mrf.mxu0 }
 0xc21   : > { %v2243_v36 = vmul.f32 0.35355338, %v2236_v35  ;;  %v2401_v35 = vld [vmem:[%s3988_s3 + $0x8] sm:$0xff] }
 0xc23   : > { %v2248_v3 = vsel %vm1890_vm3, %v2243_v36, -inf }
 0xc24   : > { %2249 = vmax.xlane.f32.xlu2 %v2248_v3  ;;  %v2455_v3 = vld [vmem:[%s3989_s22 + $0x78] sm:$0xff] }
 0xc25   : > { %2460 = vmatpush.msrb.mxu0 %v2455_v3 }
 0xc28   : > { %v2239_v37 = vpop.f32.mrf.mxu0 }
 0xc29   : > { %v2244_v38 = vmul.f32 0.35355338, %v2239_v37  ;;  %v2454_v37 = vld [vmem:[%s3989_s22 + $0x70] sm:$0xff] }
 0xc2a   : > { %2461 = vmatpush.msrb.mxu0 %v2454_v37 }
 0xc2b   : > { %v2251_v39 = vsel %vm1890_vm3, %v2244_v38, -inf }
 0xc2c   : > { %2252 = vmax.xlane.f32.xlu2 %v2251_v39 }
 0xc8f   : > { %v2247_v41 = vpop.xlane.xlu1 %2246 }
 0xc90   : > { %v2254_v29 = vsub.f32 %v2242_v33, %v2247_v41 }
 0xc92   : > { %v2257_v24 = vmul.f32 1.442695, %v2254_v29 }
 0xc94   : > { %2991 = vpow2.f32 %v2257_v24 }
 0xc97   : > { %v2250_v32 = vpop.xlane.xlu2 %2249 }
 0xc98   : > { %v2255_v43 = vsub.f32 %v2243_v36, %v2250_v32  ;;  %v2400_v36 = vld [vmem:[%s3988_s3] sm:$0xff] }
 0xc9a   : > { %v2992_v44 = vpop.eup %2991  ;;  %v2259_v45 = vmul.f32 1.442695, %v2255_v43 }
 0xc9b   : > { %v2263_v40 = vsel %vm1890_vm3, %v2992_v44, 0.0 }
 0xc9c   : > { %2993 = vpow2.f32 %v2259_v45  ;;  %2264 = vadd.xlane.f32.xlu0 %v2263_v40 }
 0xc9f   : > { %v2253_v49 = vpop.xlane.xlu2 %2252 }
 0xca0   : > { %v2256_v47 = vsub.f32 %v2244_v38, %v2253_v49  ;;  %v2453_v38 = vld [vmem:[%s3989_s22 + $0x68] sm:$0xff]  ;;  %v2951_v49 = vld [vmem:[%s3990_s2] ss:$0 sm:$0xff]  ;;  %s3992_s2 = sld [smem:[#allocation30_spill]] }
 0xca1   : > { %2462 = vmatpush.msrb.mxu0 %v2453_v38 }
 0xca2   : > { %v2994_v51 = vpop.eup %2993  ;;  %v2261_v50 = vmul.f32 1.442695, %v2256_v47 }
 0xca3   : > { %v2266_v57 = vsel %vm1890_vm3, %v2994_v51, 0.0 }
 0xca4   : > { %2995 = vpow2.f32 %v2261_v50  ;;  %2267 = vadd.xlane.f32.xlu2 %v2266_v57 }
 0xca6   : > { %v2953_v6 = vld [vmem:[%s3992_s2] ss:$0 sm:$0xff]  ;;  %s3994_s2 = sld [smem:[#allocation33_spill]] }
 0xcaa   : > { %v2996_v52 = vpop.eup %2995 }
 0xcab   : > { %v2269_v2 = vsel %vm1890_vm3, %v2996_v52, 0.0 }
 0xcac   : > { %2270 = vadd.xlane.f32.xlu1 %v2269_v2  ;;  %v2452_v2 = vld [vmem:[%s3989_s22 + $0x60] sm:$0xff] }
 0xcad   : > { %2463 = vmatpush.msrb.mxu0 %v2452_v2 }
 0xcaf   : > { %2464 = vmatpush.msrb.mxu0 %v2451_v58 }
 0xcb1   : > { %2465 = vmatpush.msrb.mxu0 %v2450_v59 }
 0xcbc   : > { %2278 = vrot.lane.b32.xlu2 %v2188_v18, %s3967_s9  ;;  %s3987_s9 = sld [smem:[#allocation26_spill]] }
 0xd0f   : > { %v2265_v60 = vpop.xlane.xlu0 %2264 }
 0xd10   : > { %2997 = vrcp.f32 %v2265_v60  ;;  %v2449_v60 = vld [vmem:[%s3989_s22 + $0x48] sm:$0xff] }
 0xd11   : > { %2466 = vmatpush.msrb.mxu0 %v2449_v60 }
 0xd16   : > { %v2998_v61 = vpop.eup %2997 }
 0xd17   : > { %v2268_v7 = vpop.xlane.xlu2 %2267  ;;  %v2275_v25 = vmul.f32 %v2998_v61, %v2992_v44  ;;  %v2447_v61 = vld [vmem:[%s3989_s22 + $0x38] sm:$0xff] }
 0xd18   : > { %2999 = vrcp.f32 %v2268_v7  ;;  %v2448_v7 = vld [vmem:[%s3989_s22 + $0x40] sm:$0xff] }
 0xd19   : > { %2467 = vmatpush.msrb.mxu0 %v2448_v7 }
 0xd1b   : > { %2468 = vmatpush.msrb.mxu0 %v2447_v61 }
 0xd1e   : > { %v3000_v0 = vpop.eup %2999 }
 0xd1f   : > { %v2279_v54 = vpop.permute.xlu2 %2278  ;;  %v2271_v63 = vpop.xlane.xlu1 %2270  ;;  %v2276_v1 = vmul.f32 %v3000_v0, %v2994_v51  ;;  %v2443_v0 = vld [vmem:[%s3989_s22 + $0x18] sm:$0xff] }
 0xd20   : > { %2737 = vmatpush.msk.msra.mxu3 %vm1840_vm15, %v2279_v54  ;;  %3001 = vrcp.f32 %v2271_v63  ;;  %v2445_v54 = vld [vmem:[%s3989_s22 + $0x28] sm:$0xff]  ;;  %v2444_v63 = vld [vmem:[%s3989_s22 + $0x20] sm:$0xff] }
 0xd21   : > { %2738 = vmatmul.msk.f32.vlgmr.msra.gmra.mxu3 %vm1890_vm3, %v2275_v25  ;;  %v2446_v25 = vld [vmem:[%s3989_s22 + $0x30] sm:$0xff] }
 0xd22   : > { %2469 = vmatpush.msrb.mxu0 %v2446_v25 }
 0xd24   : > { %2470 = vmatpush.msrb.mxu0 %v2445_v54 }
 0xd26   : > { %v3002_v4 = vpop.eup %3001  ;;  %2471 = vmatpush.msrb.mxu0 %v2444_v63 }
 0xd27   : > { %v2277_v5 = vmul.f32 %v3002_v4, %v2996_v52  ;;  %v2441_v4 = vld [vmem:[%s3989_s22 + $0x8] sm:$0xff] }
 0xd28   : > { %2472 = vmatpush.msrb.mxu0 %v2443_v0 }
 0xd29   : > { %2739 = vmatmul.msk.f32.gmra.mxu3 %vm1890_vm3, %v2276_v1  ;;  %v2442_v1 = vld [vmem:[%s3989_s22 + $0x10] sm:$0xff] }
 0xd2a   : > { %2473 = vmatpush.msrb.mxu0 %v2442_v1 }
 0xd2c   : > { %2474 = vmatpush.msrb.mxu0 %v2441_v4 }
 0xd31   : > { %2740 = vmatmul.msk.f32.gmra.mxu3 %vm1890_vm3, %v2277_v5  ;;  %v2440_v5 = vld [vmem:[%s3989_s22] sm:$0xff] }
 0xd32   : > { %2475 = vmatpush.msrb.mxu0 %v2440_v5 }
 0xda4   : > { %v2308_v62 = vpop.f32.mrf.mxu3 }
 0xda5   : > { %v2317_v11 = vmul.f32 %v2308_v62, %v3683_v42  ;;  %v2950_v42 = vld [vmem:[%s3987_s9] ss:$0 sm:$0xff]  ;;  %s3991_s9 = sld [smem:[#allocation28_spill]] }
 0xda7   : > { %v2322_v12 = vrot.slane %v2317_v11, 6 }
 0xdab   : > { %v2952_v50 = vld [vmem:[%s3991_s9] ss:$0 sm:$0xff]  ;;  %s3993_s9 = sld [smem:[#allocation32_spill]] }
 0xdac   : > { %v2311_v10 = vpop.f32.mrf.mxu3 }
 0xdad   : > { %v2318_v48 = vmul.f32 %v2311_v10, %v3690_v46 }
 0xdaf   : > { %v2323_v55 = vrot.slane %v2318_v48, 6  ;;  %v2328_v16 = vrot.slane %v2318_v48, 4 }
 0xdb1   : > { %v2324_v15 = vsel %vm1665_vm8, %v2322_v12, %v2323_v55 }
 0xdb2   : > { %v2326_v19 = vadd.f32 %v2324_v15, %v2317_v11 }
 0xdb4   : > { %v2314_v14 = vpop.f32.mrf.mxu3 }
 0xdb5   : > { %v2319_v17 = vmul.f32 %v2314_v14, %v3696_v53 }
 0xdb7   : > { %v2329_v18 = vrot.slane %v2319_v17, 4  ;;  %v2333_v22 = vrot.slane %v2319_v17, 2 }
 0xdb9   : > { %v2330_v20 = vsel %vm1842_vm1, %v2328_v16, %v2329_v18  ;;  %v2954_v18 = vld [vmem:[%s3993_s9] ss:$0 sm:$0xff]  ;;  %s3995_s9 = sld [smem:[#allocation34_spill]] }
 0xdba   : > { %v2332_v21 = vadd.f32 %v2330_v20, %v2326_v19 }
 0xdbc   : > { %v2335_v23 = vadd.f32 %v2333_v22, %v2332_v21 }
 0xdbe   : > { %2741 = vmatmul.msk.f32.vlgmr.msrb.gmra.mxu1 %vm1481_vm2, %v2335_v23 }
 0xdbf   : > { %v2956_v58 = vld [vmem:[%s3995_s9] ss:$0 sm:$0xff] }
 0xdc0   : > { %v2482_v7 = vld [vmem:[%s3995_s9] sm:$0x1]  ;;  %s2613_s9 = sshll.u32 %s2609_s5, 4  ;;  %s2614_s9 = int_to_ptr.hbm [resolvable:$true] %s2613_s9 }
 0xdc1   : > { %s3027_s12 = sshra.s32 %s2614_s9, 4  ;;  %s3028_s12 = int_to_ptr.hbm [resolvable:$true] %s3027_s12 }
 0xdc2   : > { %s3029_s13 = scalar_lea.hbm %s3028_s12, 1  ;;  %p3034_p0 = scmp.lt.s32.totalorder %s3028_s12, %s3339_s4 }
 0xdc3   : > { %p3030_p11 = scmp.ne.s32.totalorder %s3028_s12, %s3029_s13  ;;  %p3035_p1 = scmp.lt.s32.totalorder %s3033_s0, %s3029_s13 }
 0xdc5   : > { %p3031_p12 = pnand %p3030_p11, %p3379_p5  ;;  %p3036_p2 = por %p3035_p1, %p3034_p0 }
 0xdc7   : > { %p3032_p13 = pneg %p3031_p12 }
 0xdc9   : > { %p3037_p3 = pnand %p3036_p2, %p3032_p13 }
 0xe3b   : > { %v2364_v46 = vpop.f32.mrf.mxu1 }
 0xe3c   : > { %v2365_v8 = vadd.f32 %v2950_v42, %v2364_v46 }
 0xe3e   : > { %v3810_v26 = vadd.f32 %v2365_v8, %v3760_v56  ;;  %v2402_v56 = vld [vmem:[%s3988_s3 + $0x10] sm:$0xff]  ;;  %s1229_s3 = sand.u32 1, %s3067_s10  }
 0xe3f   : > { %2424 = vmatpush.msra.mxu2 %v2402_v56  ;;  %s1230_s6 = scalar_lea.vmem [#allocation2], %s1229_s3 }
 0xe40   : > { %v2370_v53 = vsel %vm1764_vm10, %v3810_v26, 0.0  ;;  %s2611_s8 = sshll.u32 %s1230_s6, 4  ;;  %s2612_s8 = int_to_ptr.vmem [resolvable:$true] %s2611_s8 }
 0xe41   : > { %2371 = vadd.xlane.f32.xlu1 %v2370_v53  ;;  %2425 = vmatpush.msra.mxu2 %v2401_v35 }
 0xe43   : > { %2426 = vmatpush.msra.mxu2 %v2400_v36 }
 0xeb4   : > { %v2372_v27 = vpop.xlane.xlu1 %2371 }
 0xeb5   : > { %v2373_v28 = vmul.f32 %v2372_v27, %v3667_v13 }
 0xeb7   : > { %v2374_v30 = vsub.f32 %v3810_v26, %v2373_v28 }
 0xeb9   : > { %v2375_v31 = vmul.f32 %v2374_v30, %v2374_v30 }
 0xebb   : > { %v2376_v33 = vsel %vm1764_vm10, %v2375_v31, 0.0 }
 0xebc   : > { %2377 = vadd.xlane.f32.xlu2 %v2376_v33 }
 0xf2f   : > { %v2378_v39 = vpop.xlane.xlu2 %2377 }
 0xf30   : > { %v2379_v41 = vmul.f32 %v2378_v39, %v3667_v13 }
 0xf32   : > { %v2380_v29 = vadd.f32 1e-06, %v2379_v41 }
 0xf34   : > { %3003 = vrsqrt.f32 %v2380_v29  ;;  %vm2387_vm10 = vweird.f32 %v2380_v29 }
 0xf3a   : > { %v3004_v24 = vpop.eup %3003 }
 0xf3b   : > { %v2382_v32 = vmul.f32 %v3004_v24, %v2380_v29  ;;  %vm2388_vm8 = vweird.f32 %v3004_v24 }
 0xf3c   : > { %vm2389_vm11 = vmor %vm2387_vm10, %vm2388_vm8 }
 0xf3d   : > { %v2383_v43 = vmul.f32 %v3004_v24, %v2382_v32 }
 0xf3f   : > { %v2384_v44 = vmul.f32 0.5, %v2383_v43 }
 0xf41   : > { %v2385_v45 = vsub.f32 1.5, %v2384_v44 }
 0xf43   : > { %v2386_v40 = vmul.f32 %v3004_v24, %v2385_v45 }
 0xf45   : > { %v2390_v47 = vsel %vm2389_vm11, %v3004_v24, %v2386_v40 }
 0xf46   : > { %v2391_v51 = vmul.f32 %v2390_v47, %v2374_v30 }
 0xf48   : > { %v2395_v57 = vmul.f32 %v2951_v49, %v2391_v51  ;;  %v2955_v51 = vld [vmem:[%s3994_s2] ss:$0 sm:$0xff] }
 0xf4a   : > { %v2399_v52 = vadd.f32 %v2952_v50, %v2395_v57 }
 0xf4c   : > { %2742 = vmatmul.msk.f32.vlgmr.msra.gmra.mxu2 %vm1481_vm2, %v2399_v52  ;;  %v2481_v52 = vld [vmem:[%s3994_s2] sm:$0x1]  ;;  %s3996_s2 = sld [smem:[#allocation35_spill]] }
 0xfcf   : > { %v2428_v9 = vpop.f32.mrf.mxu2 }
 0xfd0   : > { %v2429_v62 = vadd.f32 %v2953_v6, %v2428_v9 }
 0xfd2   : > { %v2431_v10 = vmul.f32 %v2429_v62, %v2429_v62 }
 0xfd4   : > { %v2432_v48 = vmul.f32 %v2431_v10, %v2429_v62 }
 0xfd6   : > { %v2433_v11 = vmul.f32 0.044715, %v2432_v48  ;;  %v2573_v48 = vld [vmem:[%s3329_s20 + $0x18] sm:$0xff] }
 0xfd7   : > { %2590 = vmatpush.msra.mxu1 %v2573_v48 }
 0xfd8   : > { %v2434_v55 = vadd.f32 %v2433_v11, %v2429_v62  ;;  %v2572_v11 = vld [vmem:[%s3329_s20 + $0x10] sm:$0xff] }
 0xfd9   : > { %2591 = vmatpush.msra.mxu1 %v2572_v11 }
 0xfda   : > { %v2435_v12 = vmul.f32 0.7978846, %v2434_v55  ;;  %v2571_v55 = vld [vmem:[%s3329_s20 + $0x8] sm:$0xff] }
 0xfdb   : > { %2592 = vmatpush.msra.mxu1 %v2571_v55 }
 0xfdc   : > { %3005 = vtanh.f32 %v2435_v12  ;;  %v2570_v12 = vld [vmem:[%s3329_s20] sm:$0xff] }
 0xfdd   : > { %2593 = vmatpush.msra.mxu1 %v2570_v12 }
 0xfe2   : > { %v3006_v14 = vpop.eup %3005 }
 0xfe3   : > { %v2437_v15 = vadd.f32 1.0, %v3006_v14 }
 0xfe5   : > { %v2438_v17 = vmul.f32 0.5, %v2437_v15 }
 0xfe7   : > { %v2439_v16 = vmul.f32 %v2438_v17, %v2429_v62 }
 0xfe9   : > { %2476 = vmatmul.f32.vlgmr.msrb.gmra.mxu0 %v2439_v16 }
0x1066   : > { %v2477_v19 = vpop.f32.mrf.mxu0 }
0x1067   : > { %v2478_v20 = vadd.f32 %v2954_v18, %v2477_v19 }
0x1069   : > { %v2480_v21 = vadd.f32 %v2478_v20, %v3810_v26 }
0x106b   : > { %v2509_v22 = vsel %vm2508_vm12, %v2480_v21, 0.0  ;;  %v2484_v23 = vsel %vm2483_vm13, %v2480_v21, 0.0 }
0x106c   : > { %2510 = vadd.xlane.f32.xlu1 %v2509_v22  ;;  %2485 = vadd.xlane.f32.xlu0 %v2484_v23  ;;  %v2544_v23 = vld [vmem:[%s3996_s2] sm:$0x1]  ;;  %s2601_s2 = scalar_lea.sflag [#allocation3], %s1229_s3 }
0x10df   : > { %v2511_v42 = vpop.xlane.xlu1 %2510  ;;  %v2486_v46 = vpop.xlane.xlu0 %2485 }
0x10e0   : > { %v2512_v8 = vmul.f32 %v2511_v42, %v3667_v13  ;;  %v2487_v53 = vmul.f32 %v2486_v46, %v3667_v13 }
0x10e2   : > { %v2513_v27 = vsub.f32 %v2480_v21, %v2512_v8  ;;  %v2488_v28 = vsub.f32 %v2480_v21, %v2487_v53  ;;  %v2545_v8 = vld [vmem:[%s3324_s19] sm:$0x1] }
0x10e4   : > { %v2514_v30 = vmul.f32 %v2513_v27, %v2513_v27  ;;  %v2489_v31 = vmul.f32 %v2488_v28, %v2488_v28 }
0x10e6   : > { %v2515_v33 = vsel %vm2508_vm12, %v2514_v30, 0.0  ;;  %v2490_v34 = vsel %vm2483_vm13, %v2489_v31, 0.0 }
0x10e7   : > { %2516 = vadd.xlane.f32.xlu1 %v2515_v33  ;;  %2491 = vadd.xlane.f32.xlu0 %v2490_v34 }
0x115a   : > { %v2517_v26 = vpop.xlane.xlu1 %2516  ;;  %v2492_v56 = vpop.xlane.xlu0 %2491 }
0x115b   : > { %v2518_v35 = vmul.f32 %v2517_v26, %v3667_v13  ;;  %v2493_v36 = vmul.f32 %v2492_v56, %v3667_v13 }
0x115d   : > { %v2519_v3 = vadd.f32 1e-06, %v2518_v35  ;;  %v2494_v37 = vadd.f32 1e-06, %v2493_v36 }
0x115f   : > { %3007 = vrsqrt.f32 %v2519_v3  ;;  %vm2526_vm1 = vweird.f32 %v2519_v3  ;;  %vm2501_vm0 = vweird.f32 %v2494_v37 }
0x1160   : > { %3009 = vrsqrt.f32 %v2494_v37 }
0x1165   : > { %v3008_v38 = vpop.eup %3007 }
0x1166   : > { %v3010_v39 = vpop.eup %3009  ;;  %v2521_v41 = vmul.f32 %v3008_v38, %v2519_v3  ;;  %vm2527_vm14 = vweird.f32 %v3008_v38 }
0x1167   : > { %v2496_v29 = vmul.f32 %v3010_v39, %v2494_v37  ;;  %vm2502_vm15 = vweird.f32 %v3010_v39  ;;  %vm2528_vm3 = vmor %vm2526_vm1, %vm2527_vm14 }
0x1168   : > { %v2522_v24 = vmul.f32 %v3008_v38, %v2521_v41  ;;  %vm2503_vm4 = vmor %vm2501_vm0, %vm2502_vm15 }
0x1169   : > { %v2497_v32 = vmul.f32 %v3010_v39, %v2496_v29 }
0x116a   : > { %v2523_v43 = vmul.f32 0.5, %v2522_v24 }
0x116b   : > { %v2498_v44 = vmul.f32 0.5, %v2497_v32 }
0x116c   : > { %v2524_v45 = vsub.f32 1.5, %v2523_v43 }
0x116d   : > { %v2499_v40 = vsub.f32 1.5, %v2498_v44 }
0x116e   : > { %v2525_v49 = vmul.f32 %v3008_v38, %v2524_v45 }
0x116f   : > { %v2500_v47 = vmul.f32 %v3010_v39, %v2499_v40 }
0x1170   : > { %v2529_v50 = vsel %vm2528_vm3, %v3008_v38, %v2525_v49 }
0x1171   : > { %v2504_v57 = vsel %vm2503_vm4, %v3010_v39, %v2500_v47  ;;  %v2530_v2 = vmul.f32 %v2529_v50, %v2513_v27  ;;  %v2574_v27 = vld [vmem:[%s3334_s27] sm:$0x1] }
0x1172   : > { %v2505_v59 = vmul.f32 %v2504_v57, %v2488_v28 }
0x1173   : > { %v2534_v60 = vmul.f32 %v2955_v51, %v2530_v2 }
0x1174   : > { %v2506_v61 = vmul.f32 %v2505_v59, %v2481_v52 }
0x1175   : > { %v2538_v25 = vadd.f32 %v2956_v58, %v2534_v60 }
0x1176   : > { %v2507_v54 = vadd.f32 %v2506_v61, %v2482_v7 }
0x1177   : > { %v2540_v63 = vrot.slane %v2538_v25, 1 }
0x1179   : > { %v2542_v0 = vadd.f32 %v2540_v63, %v2507_v54 }
0x117b   : > { %v2543_v1 = vmul.f32 0.5, %v2542_v0 }
0x117d   : > { %v2546_v4 = vsel %vm2483_vm13, %v2543_v1, 0.0 }
0x117e   : > { %2547 = vadd.xlane.f32.xlu1 %v2546_v4 }
0x11f1   : > { %v2548_v5 = vpop.xlane.xlu1 %2547 }
0x11f2   : > { %v2549_v6 = vmul.f32 %v2548_v5, %v3667_v13 }
0x11f4   : > { %v2550_v9 = vsub.f32 %v2543_v1, %v2549_v6 }
0x11f6   : > { %v2551_v62 = vmul.f32 %v2550_v9, %v2550_v9 }
0x11f8   : > { %v2552_v10 = vsel %vm2483_vm13, %v2551_v62, 0.0 }
0x11f9   : > { %2553 = vadd.xlane.f32.xlu0 %v2552_v10 }
0x126c   : > { %v2554_v14 = vpop.xlane.xlu0 %2553 }
0x126d   : > { %v2555_v15 = vmul.f32 %v2554_v14, %v3667_v13 }
0x126f   : > { %v2556_v17 = vadd.f32 1e-05, %v2555_v15 }
0x1271   : > { %3011 = vrsqrt.f32 %v2556_v17  ;;  %vm2563_vm6 = vweird.f32 %v2556_v17 }
0x1277   : > { %v3012_v16 = vpop.eup %3011 }
0x1278   : > { %v2558_v18 = vmul.f32 %v3012_v16, %v2556_v17  ;;  %vm2564_vm5 = vweird.f32 %v3012_v16 }
0x1279   : > { %vm2565_vm7 = vmor %vm2563_vm6, %vm2564_vm5 }
0x127a   : > { %v2559_v19 = vmul.f32 %v3012_v16, %v2558_v18 }
0x127c   : > { %v2560_v20 = vmul.f32 0.5, %v2559_v19 }
0x127e   : > { %v2561_v21 = vsub.f32 1.5, %v2560_v20 }
0x1280   : > { %v2562_v22 = vmul.f32 %v3012_v16, %v2561_v21 }
0x1282   : > { %v2566_v42 = vsel %vm2565_vm7, %v3012_v16, %v2562_v22 }
0x1283   : > { %v2567_v46 = vmul.f32 %v2566_v42, %v2550_v9 }
0x1285   : > { %v2568_v13 = vmul.f32 %v2567_v46, %v2544_v23 }
0x1287   : > { %v2569_v53 = vadd.f32 %v2568_v13, %v2545_v8 }
0x1289   : > { %2743 = vmatmul.msk.f32.vlgmr.msra.gmra.mxu1 %vm1481_vm2, %v2569_v53 }
0x1306   : > { %v2595_v28 = vpop.f32.mrf.mxu1 }
0x1307   : > { %v2596_v30 = vadd.f32 %v2595_v28, %v2574_v27 }
0x1309   : > { %2599 = vst.msk [vmem:[%s1230_s6] sm:$0x1] %vm2598_vm9, %v2596_v30 }
0x130a   : > { %3040 = shalt.err (!%p3037_p3)
}
0x130b   : > { %2747 = dma.vmem_to_hbm [thread:$0]  (%p3379_p5), %s2612_s8, 16, %s2614_s9, %s2601_s2  }
0x130c PF: > { %p2753_p4 = scmp.ge.s32.totalorder %s3075_s15, 2  ;;  %s2625_s6 = sand.u32 1, %s3063_s7  }
0x130d   : > { %s2626_s5 = scalar_lea.sflag [#allocation3], %s2625_s6 }
0x130e   : > { %p2750_p7 = pnand %p2753_p4, %p3383_p6 }
0x1310   : > { %p2751_p8 = pneg %p2750_p7 }
0x1312   : > { %3058 = dma.done.wait (%p2751_p8), %s2626_s5, 16  }
0x1313   : > { %3060 = vsyncadd (%p2751_p8), %s2626_s5, 4294967280  ;;  %p93_p9 = scmp.ge.s32.totalorder %s3366_s18, 4   ;;  %s3997_s7 = smov %s3067_s10 }
0x1314   : > { %s3998_s10 = smov %s3071_s11  ;;  %s3999_s11 = smov %s3377_s26 }
0x1315   : > { %s4000_s15 = smov %s3366_s18  ;;  %95 = sbr.rel (!%p93_p9) target bundleno = 81 (0x51), region = 260 }
0x131a   :  { %2631 = vsyncpa [#allocation3], 1 }
0x131b   :  { %2633 = vsyncpa [#allocation3 + $0x1], 1 }

</bundles_post_ra>
